<compile_context>
chip_gen: v6e
topology: v6e:2x2x1
jax: 0.10.0
libtpu: 0.0.40
codegen_flags: <defaults>
</compile_context>

<pallas_src>
import functools

import jax
import jax.numpy as jnp
from jax.experimental import pallas as pl
from jax.experimental.pallas import tpu as pltpu

_VMEM_LIMIT = 48 * 1024 * 1024     # safe on v7x (64 MiB physical)


def _round_up(v, m):
    return -(-v // m) * m


def _pick_tile(dim, cap, gran=128):
    """Largest tile <= cap that divides `dim` (multiple of gran), else whole dim."""
    if dim <= cap:
        return dim
    t = (cap // gran) * gran
    while t >= gran:
        if dim % t == 0:
            return t
        t -= gran
    return dim   # fallback: whole dim (legal; only hit for unaligned dims)


# ----------------------------------------------------------------------------
# Fused matmul kernels:  out = relu?( (x @ w) * scale + bias )
# grid = (M tiles, N tiles, K tiles); K last ("arbitrary"), M/N "parallel".
# ----------------------------------------------------------------------------

def _mm_single_k_kernel(x_ref, w_ref, s_ref, b_ref, o_ref, *, relu):
    # K fits one block: no accumulator scratch, epilogue written directly.
    y = jnp.dot(x_ref[...], w_ref[...], preferred_element_type=jnp.float32)
    y = y * s_ref[...] + b_ref[...]
    if relu:
        y = jnp.maximum(y, 0.0)
    o_ref[...] = y.astype(o_ref.dtype)


def _mm_multi_k_kernel(x_ref, w_ref, s_ref, b_ref, o_ref, acc_ref, *, relu):
    k = pl.program_id(2)

    @pl.when(k == 0)
    def _():
        acc_ref[...] = jnp.zeros_like(acc_ref)

    acc_ref[...] += jnp.dot(x_ref[...], w_ref[...],
                            preferred_element_type=jnp.float32)

    @pl.when(k == pl.num_programs(2) - 1)
    def _():
        y = acc_ref[...] * s_ref[...] + b_ref[...]
        if relu:
            y = jnp.maximum(y, 0.0)
        o_ref[...] = y.astype(o_ref.dtype)


def matmul_fused(x, w, scale, bias, *, relu, out_dtype,
                 tile_m=256, tile_n=1024, tile_k=4096):
    """x: [M, K]; w: [K, N] (bf16, pre-padded); scale/bias: [1, N] f32.

    K and N are never padded here (tiles are divisors of the dims, which are
    prepared at init time); only tiny M pads for small batches.
    """
    M, K = x.shape
    Kw, N = w.shape
    assert K == Kw, (K, Kw)

    tm = min(tile_m, _round_up(M, 16))       # bf16 min sublane tile is 16
    tk = _pick_tile(K, tile_k)
    tn = _pick_tile(N, tile_n)
    assert K % tk == 0 and N % tn == 0

    Mp = _round_up(M, tm)
    x = x.astype(jnp.bfloat16)
    if Mp != M:
        x = jnp.pad(x, ((0, Mp - M), (0, 0)))

    k_steps = K // tk
    if k_steps == 1:
        kernel = functools.partial(_mm_single_k_kernel, relu=relu)
        scratch = []
    else:
        kernel = functools.partial(_mm_multi_k_kernel, relu=relu)
        scratch = [pltpu.VMEM((tm, tn), jnp.float32)]

    out = pl.pallas_call(
        kernel,
        out_shape=jax.ShapeDtypeStruct((Mp, N), out_dtype),
        grid_spec=pltpu.PrefetchScalarGridSpec(
            num_scalar_prefetch=0,
            grid=(Mp // tm, N // tn, k_steps),
            in_specs=[
                pl.BlockSpec((tm, tk), lambda m, n, k: (m, k)),
                pl.BlockSpec((tk, tn), lambda m, n, k: (k, n)),
                pl.BlockSpec((1, tn), lambda m, n, k: (0, n)),
                pl.BlockSpec((1, tn), lambda m, n, k: (0, n)),
            ],
            out_specs=pl.BlockSpec((tm, tn), lambda m, n, k: (m, n)),
            scratch_shapes=scratch,
        ),
        compiler_params=pltpu.CompilerParams(
            dimension_semantics=("parallel", "parallel", "arbitrary"),
            vmem_limit_bytes=_VMEM_LIMIT),
    )(x, w.astype(jnp.bfloat16), scale, bias)

    return out[:M] if Mp != M else out


# ----------------------------------------------------------------------------
# Fused 3x3 / stride 2 / pad 1 maxpool (inputs are post-ReLU, i.e. >= 0, so
# zero padding is exact).  The kernel reads a free reshaped view
# (B, Hpad/2, 2, Wpad/2, 2C) of the zero-padded conv output; all striding is
# done with safe in-VMEM slices (no tap-stack materialization in HBM).
# ----------------------------------------------------------------------------

def _maxpool3x3s2_kernel(x_ref, o_ref):
    Hh, _, Wq, C2 = x_ref.shape
    C = C2 // 2
    Hp, Wp = Hh - 1, Wq - 1
    x = x_ref[...]                                   # (Hh, 2, Wq, 2C)
    ev_r = x[:, 0]                                   # even rows (Hh, Wq, 2C)
    od_r = x[:, 1]                                   # odd  rows
    # H-direction window max at even starts: rows 2i, 2i+1, 2i+2.
    rm = jnp.maximum(jnp.maximum(ev_r[:Hp], od_r[:Hp]), ev_r[1:Hp + 1])
    ec = rm[:, :, :C]                                # even cols (Hp, Wq, C)
    oc = rm[:, :, C:]                                # odd  cols
    # W-direction window max at even starts: cols 2j, 2j+1, 2j+2.
    o_ref[...] = jnp.maximum(jnp.maximum(ec[:, :Wp], oc[:, :Wp]),
                             ec[:, 1:Wp + 1])


def maxpool_3x3_s2_p1(y):
    """y: [B, Ho, Wo, C] non-negative (post-ReLU), C multiple of 128."""
    B, Ho, Wo, C = y.shape
    Hp = (Ho + 2 - 3) // 2 + 1
    Wp = (Wo + 2 - 3) // 2 + 1
    Hpad, Wpad = 2 * (Hp + 1), 2 * (Wp + 1)
    yp = jnp.pad(y, ((0, 0), (1, Hpad - Ho - 1), (1, Wpad - Wo - 1), (0, 0)))
    x5 = yp.reshape(B, Hpad // 2, 2, Wpad // 2, 2 * C)   # free view
    return pl.pallas_call(
        _maxpool3x3s2_kernel,
        out_shape=jax.ShapeDtypeStruct((B, Hp, Wp, C), y.dtype),
        grid_spec=pltpu.PrefetchScalarGridSpec(
            num_scalar_prefetch=0,
            grid=(B,),
            in_specs=[pl.BlockSpec((None, Hpad // 2, 2, Wpad // 2, 2 * C),
                                   lambda b: (b, 0, 0, 0, 0))],
            out_specs=pl.BlockSpec((None, Hp, Wp, C), lambda b: (b, 0, 0, 0)),
        ),
        compiler_params=pltpu.CompilerParams(
            dimension_semantics=("parallel",),
            vmem_limit_bytes=_VMEM_LIMIT),
    )(x5)


# ----------------------------------------------------------------------------
# Layout plumbing (wrapper-side only)
# ----------------------------------------------------------------------------

def im2col(x_nhwc, kh, kw, stride, pad):
    """[B,H,W,C] -> patch matrix [B*Ho*Wo, kh*kw*C] (tap-major, then C)."""
    B, H, W, C = x_nhwc.shape
    Ho = (H + 2 * pad - kh) // stride + 1
    Wo = (W + 2 * pad - kw) // stride + 1
    xp = jnp.pad(x_nhwc, ((0, 0), (pad, pad), (pad, pad), (0, 0)))
    cols = [xp[:, i:i + stride * Ho:stride, j:j + stride * Wo:stride, :]
            for i in range(kh) for j in range(kw)]
    patches = jnp.concatenate(cols, axis=-1)              # [B,Ho,Wo,kh*kw*C]
    return patches.reshape(B * Ho * Wo, kh * kw * C), (B, Ho, Wo)


# ----------------------------------------------------------------------------
# embed.forward
# ----------------------------------------------------------------------------

def embed_forward(x_nchw, params, *, emb):
    # NCHW -> NHWC + bf16 cast fused into one wrapper op.
    x = jnp.transpose(x_nchw, (0, 2, 3, 1)).astype(jnp.bfloat16)

    # --- stem conv 7x7 / s2 / p3 + folded BN + ReLU (single im2col matmul,
    #     K = 147 handled as one unpadded K block) ---
    patches, (B, Ho, Wo) = im2col(x, 7, 7, 2, 3)           # bf16 [M, 147]
    cout_pad = params["stem_w"].shape[1]
    y = matmul_fused(patches, params["stem_w"], params["stem_scale"],
                     params["stem_bias"], relu=True, out_dtype=jnp.bfloat16,
                     tile_m=4096, tile_n=128, tile_k=512)
    y = y.reshape(B, Ho, Wo, cout_pad)

    # --- stem maxpool 3x3 / s2 / p1 (fused Pallas kernel) ---
    y = maxpool_3x3_s2_p1(y)                               # (B, Hp, Wp, Cpad)

    # --- Flatten: free reshape; fc1_w rows were permuted at init to HWC
    #     order (padded-channel rows are zero) so no transpose is needed. ---
    feat = y.reshape(B, -1)

    # --- MLP head: Linear -> ReLU -> Linear ---
    h = matmul_fused(feat, params["fc1_w"], params["fc1_s"], params["fc1_b"],
                     relu=True, out_dtype=jnp.bfloat16,
                     tile_m=256, tile_n=1024, tile_k=4096)
    out = matmul_fused(h, params["fc2_w"], params["fc2_s"], params["fc2_b"],
                       relu=False, out_dtype=jnp.float32,
                       tile_m=256, tile_n=128, tile_k=4096)
    return out[:, :emb]


def init_params(key, cin, stem_cout, hp, wp, hidden, emb):
    """All padding / layout permutation of weights happens here, once."""
    ks = jax.random.split(key, 8)
    cout_pad = _round_up(stem_cout, 128)     # lane-dense conv output
    emb_pad = _round_up(emb, 128)            # lane-dense fc2 output

    # Conv weight in im2col layout [7*7*Cin, Cout] (torch: [Cout,Cin,7,7]).
    w = 0.05 * jax.random.normal(ks[0], (7 * 7 * cin, stem_cout), jnp.float32)
    gamma = 1.0 + 0.1 * jax.random.normal(ks[1], (stem_cout,), jnp.float32)
    beta = 0.1 * jax.random.normal(ks[2], (stem_cout,), jnp.float32)
    mean = 0.1 * jax.random.normal(ks[3], (stem_cout,), jnp.float32)
    var = jnp.abs(jax.random.normal(ks[4], (stem_cout,), jnp.float32)) + 0.5
    scale = gamma / jnp.sqrt(var + 1e-5)
    bias = beta - mean * scale
    stem_w = jnp.pad(w, ((0, 0), (0, cout_pad - stem_cout))).astype(jnp.bfloat16)
    stem_scale = jnp.pad(scale, (0, cout_pad - stem_cout)).reshape(1, cout_pad)
    stem_bias = jnp.pad(bias, (0, cout_pad - stem_cout)).reshape(1, cout_pad)

    # fc1: torch Linear(stem_cout*hp*wp -> hidden), flatten order (c, h, w).
    # Permute input rows once to our (h, w, c_padded) flatten order; rows for
    # the padded channels are zero.
    flat_t = stem_cout * hp * wp
    w1 = 0.02 * jax.random.normal(ks[5], (flat_t, hidden), jnp.float32)
    w1 = w1.reshape(stem_cout, hp, wp, hidden).transpose(1, 2, 0, 3)
    w1 = jnp.pad(w1, ((0, 0), (0, 0), (0, cout_pad - stem_cout), (0, 0)))
    fc1_w = w1.reshape(hp * wp * cout_pad, hidden).astype(jnp.bfloat16)
    fc1_b = jnp.zeros((1, hidden), jnp.float32)
    fc1_s = jnp.ones((1, hidden), jnp.float32)

    # fc2: torch Linear(hidden -> emb); N padded to 128 once here.
    w2 = 0.02 * jax.random.normal(ks[6], (hidden, emb), jnp.float32)
    fc2_w = jnp.pad(w2, ((0, 0), (0, emb_pad - emb))).astype(jnp.bfloat16)
    b2 = 0.01 * jax.random.normal(ks[7], (emb,), jnp.float32)
    fc2_b = jnp.pad(b2, (0, emb_pad - emb)).reshape(1, emb_pad)
    fc2_s = jnp.ones((1, emb_pad), jnp.float32)

    return {
        "stem_w": stem_w, "stem_scale": stem_scale, "stem_bias": stem_bias,
        "fc1_w": fc1_w, "fc1_s": fc1_s, "fc1_b": fc1_b,
        "fc2_w": fc2_w, "fc2_s": fc2_s, "fc2_b": fc2_b,
    }


if __name__ == "__main__":
    # Small shapes (real module: 224/128px images, 32768 -> 16000 -> emb).
    # Spatial=32 so the fc1 K dim (8*8*128 = 8192) exercises the multi-K-step
    # accumulator path while the stem/fc2 exercise the single-K-step path.
    B, CIN, H, W = 2, 3, 32, 32
    STEM_COUT = 64
    EMBEDDING_SIZE = 32          # config.embedding_size
    HIDDEN = 256                 # stands in for 16000

    Ho = (H + 2 * 3 - 7) // 2 + 1          # conv 7x7/s2/p3
    Hp = (Ho + 2 - 3) // 2 + 1             # pool 3x3/s2/p1
    Wo, Wp = Ho, Hp

    key = jax.random.PRNGKey(0)
    kx, kp = jax.random.split(key)
    x = jax.random.normal(kx, (B, CIN, H, W), jnp.float32)   # NCHW, like torch
    params = init_params(kp, CIN, STEM_COUT, Hp, Wp, HIDDEN, EMBEDDING_SIZE)

    fwd = jax.jit(embed_forward, static_argnames=("emb",))
    out = jax.block_until_ready(fwd(x, params, emb=EMBEDDING_SIZE))
    assert out.shape == (B, EMBEDDING_SIZE), out.shape
    assert bool(jnp.all(jnp.isfinite(out)))
    print("KERNEL_OK")
</pallas_src>

<mosaic_0001>
module attributes {stable_mosaic.version = 11 : i64} {
  func.func @_maxpool3x3s2_kernel(%arg0: i32, %arg1: memref<1x9x2x9x256xbf16, #tpu.memory_space<vmem>>, %arg2: memref<1x8x8x128xbf16, #tpu.memory_space<vmem>>) attributes {dimension_semantics = [#tpu.dimension_semantics<parallel>], iteration_bounds = array<i64: 2>, scalar_prefetch = 0 : i64, scratch_operands = 0 : i64, tpu.core_type = #tpu.core_type<tc>, window_params = [{transform_indices = @transform_0, window_bounds = array<i64: 1, 9, 2, 9, 256>}, {transform_indices = @transform_1, window_bounds = array<i64: 1, 8, 8, 128>}]} {
    %c0 = arith.constant 0 : index
    %c0_0 = arith.constant 0 : index
    %c0_1 = arith.constant 0 : index
    %c0_2 = arith.constant 0 : index
    %c0_3 = arith.constant 0 : index
    %0 = vector.load %arg1[%c0, %c0_0, %c0_1, %c0_2, %c0_3] : memref<1x9x2x9x256xbf16, #tpu.memory_space<vmem>>, vector<1x9x2x9x256xbf16>
    %1 = vector.shape_cast %0 : vector<1x9x2x9x256xbf16> to vector<9x2x9x256xbf16>
    %2 = vector.extract_strided_slice %1 {offsets = [0, 0, 0, 0], sizes = [9, 1, 9, 256], strides = [1, 1, 1, 1]} : vector<9x2x9x256xbf16> to vector<9x1x9x256xbf16>
    %3 = vector.shape_cast %2 : vector<9x1x9x256xbf16> to vector<9x9x256xbf16>
    %4 = vector.extract_strided_slice %1 {offsets = [0, 1, 0, 0], sizes = [9, 1, 9, 256], strides = [1, 1, 1, 1]} : vector<9x2x9x256xbf16> to vector<9x1x9x256xbf16>
    %5 = vector.shape_cast %4 : vector<9x1x9x256xbf16> to vector<9x9x256xbf16>
    %6 = vector.extract_strided_slice %3 {offsets = [0, 0, 0], sizes = [8, 9, 256], strides = [1, 1, 1]} : vector<9x9x256xbf16> to vector<8x9x256xbf16>
    %7 = vector.extract_strided_slice %5 {offsets = [0, 0, 0], sizes = [8, 9, 256], strides = [1, 1, 1]} : vector<9x9x256xbf16> to vector<8x9x256xbf16>
    %8 = arith.maximumf %6, %7 : vector<8x9x256xbf16>
    %9 = vector.extract_strided_slice %3 {offsets = [1, 0, 0], sizes = [8, 9, 256], strides = [1, 1, 1]} : vector<9x9x256xbf16> to vector<8x9x256xbf16>
    %10 = arith.maximumf %8, %9 : vector<8x9x256xbf16>
    %11 = vector.extract_strided_slice %10 {offsets = [0, 0, 0], sizes = [8, 9, 128], strides = [1, 1, 1]} : vector<8x9x256xbf16> to vector<8x9x128xbf16>
    %12 = vector.extract_strided_slice %10 {offsets = [0, 0, 128], sizes = [8, 9, 128], strides = [1, 1, 1]} : vector<8x9x256xbf16> to vector<8x9x128xbf16>
    %13 = vector.extract_strided_slice %11 {offsets = [0, 0, 0], sizes = [8, 8, 128], strides = [1, 1, 1]} : vector<8x9x128xbf16> to vector<8x8x128xbf16>
    %14 = vector.extract_strided_slice %12 {offsets = [0, 0, 0], sizes = [8, 8, 128], strides = [1, 1, 1]} : vector<8x9x128xbf16> to vector<8x8x128xbf16>
    %15 = arith.maximumf %13, %14 : vector<8x8x128xbf16>
    %16 = vector.extract_strided_slice %11 {offsets = [0, 1, 0], sizes = [8, 8, 128], strides = [1, 1, 1]} : vector<8x9x128xbf16> to vector<8x8x128xbf16>
    %17 = arith.maximumf %15, %16 : vector<8x8x128xbf16>
    %c0_4 = arith.constant 0 : index
    %c0_5 = arith.constant 0 : index
    %c0_6 = arith.constant 0 : index
    %c0_7 = arith.constant 0 : index
    %18 = vector.load %arg2[%c0_4, %c0_5, %c0_6, %c0_7] : memref<1x8x8x128xbf16, #tpu.memory_space<vmem>>, vector<1x8x8x128xbf16>
    %19 = vector.shape_cast %18 : vector<1x8x8x128xbf16> to vector<8x8x128xbf16>
    %20 = vector.shape_cast %17 : vector<8x8x128xbf16> to vector<1x8x8x128xbf16>
    tpu.vector_store %arg2[%c0_4, %c0_5, %c0_6, %c0_7], %20 {strides = array<i32>} : memref<1x8x8x128xbf16, #tpu.memory_space<vmem>>, vector<1x8x8x128xbf16>,
    return
  }
  func.func @transform_0(%arg0: i32) -> (i32, i32, i32, i32, i32) {
    %c0_i32 = arith.constant 0 : i32
    %c0_i32_0 = arith.constant 0 : i32
    %c0_i32_1 = arith.constant 0 : i32
    %c0_i32_2 = arith.constant 0 : i32
    %c0_i32_3 = arith.constant 0 : i32
    return %arg0, %c0_i32, %c0_i32_0, %c0_i32_1, %c0_i32_2 : i32, i32, i32, i32, i32
  }
  func.func @transform_1(%arg0: i32) -> (i32, i32, i32, i32) {
    %c0_i32 = arith.constant 0 : i32
    %c0_i32_0 = arith.constant 0 : i32
    %c0_i32_1 = arith.constant 0 : i32
    %c0_i32_2 = arith.constant 0 : i32
    return %arg0, %c0_i32, %c0_i32_0, %c0_i32_1 : i32, i32, i32, i32
  }
}

module attributes {stable_mosaic.version = 11 : i64} {
  func.func @_mm_single_k_kernel(%arg0: i32, %arg1: i32, %arg2: i32, %arg3: memref<512x147xbf16, #tpu.memory_space<vmem>>, %arg4: memref<147x128xbf16, #tpu.memory_space<vmem>>, %arg5: memref<1x128xf32, #tpu.memory_space<vmem>>, %arg6: memref<1x128xf32, #tpu.memory_space<vmem>>, %arg7: memref<512x128xbf16, #tpu.memory_space<vmem>>) attributes {dimension_semantics = [#tpu.dimension_semantics<parallel>, #tpu.dimension_semantics<parallel>, #tpu.dimension_semantics<arbitrary>], iteration_bounds = array<i64: 1, 1, 1>, scalar_prefetch = 0 : i64, scratch_operands = 0 : i64, tpu.core_type = #tpu.core_type<tc>, window_params = [{transform_indices = @transform_0, window_bounds = array<i64: 512, 147>}, {transform_indices = @transform_1, window_bounds = array<i64: 147, 128>}, {transform_indices = @transform_2, window_bounds = array<i64: 1, 128>}, {transform_indices = @transform_3, window_bounds = array<i64: 1, 128>}, {transform_indices = @transform_4, window_bounds = array<i64: 512, 128>}]} {
    %c0 = arith.constant 0 : index
    %c0_0 = arith.constant 0 : index
    %0 = vector.load %arg3[%c0, %c0_0] : memref<512x147xbf16, #tpu.memory_space<vmem>>, vector<512x147xbf16>
    %c0_1 = arith.constant 0 : index
    %c0_2 = arith.constant 0 : index
    %1 = vector.load %arg4[%c0_1, %c0_2] : memref<147x128xbf16, #tpu.memory_space<vmem>>, vector<147x128xbf16>
    %cst = arith.constant dense<0.000000e+00> : vector<512x128xf32>
    %2 = tpu.matmul %0, %1, %cst {dimension_numbers = #tpu.dot_dimension_numbers<[1], [0], [0], [1], [0, 0, 1, 1], [], []>} : vector<512x147xbf16>, vector<147x128xbf16>, vector<512x128xf32> -> vector<512x128xf32>
    %c0_3 = arith.constant 0 : index
    %c0_4 = arith.constant 0 : index
    %3 = vector.load %arg5[%c0_3, %c0_4] : memref<1x128xf32, #tpu.memory_space<vmem>>, vector<1x128xf32>
    %4 = vector.broadcast %3 : vector<1x128xf32> to vector<512x128xf32>
    %5 = arith.mulf %2, %4 : vector<512x128xf32>
    %c0_5 = arith.constant 0 : index
    %c0_6 = arith.constant 0 : index
    %6 = vector.load %arg6[%c0_5, %c0_6] : memref<1x128xf32, #tpu.memory_space<vmem>>, vector<1x128xf32>
    %7 = vector.broadcast %6 : vector<1x128xf32> to vector<512x128xf32>
    %8 = arith.addf %5, %7 : vector<512x128xf32>
    %cst_7 = arith.constant 0.000000e+00 : f32
    %9 = vector.broadcast %cst_7 : f32 to vector<512x128xf32>
    %10 = arith.maximumf %8, %9 : vector<512x128xf32>
    %11 = arith.truncf %10 : vector<512x128xf32> to vector<512x128xbf16>
    %c0_8 = arith.constant 0 : index
    %c0_9 = arith.constant 0 : index
    %12 = vector.load %arg7[%c0_8, %c0_9] : memref<512x128xbf16, #tpu.memory_space<vmem>>, vector<512x128xbf16>
    tpu.vector_store %arg7[%c0_8, %c0_9], %11 {strides = array<i32>} : memref<512x128xbf16, #tpu.memory_space<vmem>>, vector<512x128xbf16>,
    return
  }
  func.func @transform_0(%arg0: i32, %arg1: i32, %arg2: i32) -> (i32, i32) {
    %c0_i32 = arith.constant 0 : i32
    return %arg0, %arg2 : i32, i32
  }
  func.func @transform_1(%arg0: i32, %arg1: i32, %arg2: i32) -> (i32, i32) {
    %c0_i32 = arith.constant 0 : i32
    return %arg2, %arg1 : i32, i32
  }
  func.func @transform_2(%arg0: i32, %arg1: i32, %arg2: i32) -> (i32, i32) {
    %c0_i32 = arith.constant 0 : i32
    %c0_i32_0 = arith.constant 0 : i32
    return %c0_i32, %arg1 : i32, i32
  }
  func.func @transform_3(%arg0: i32, %arg1: i32, %arg2: i32) -> (i32, i32) {
    %c0_i32 = arith.constant 0 : i32
    %c0_i32_0 = arith.constant 0 : i32
    return %c0_i32, %arg1 : i32, i32
  }
  func.func @transform_4(%arg0: i32, %arg1: i32, %arg2: i32) -> (i32, i32) {
    %c0_i32 = arith.constant 0 : i32
    return %arg0, %arg1 : i32, i32
  }
}

module attributes {stable_mosaic.version = 11 : i64} {
  func.func @_mm_multi_k_kernel(%arg0: i32, %arg1: i32, %arg2: i32, %arg3: memref<16x4096xbf16, #tpu.memory_space<vmem>>, %arg4: memref<4096x256xbf16, #tpu.memory_space<vmem>>, %arg5: memref<1x256xf32, #tpu.memory_space<vmem>>, %arg6: memref<1x256xf32, #tpu.memory_space<vmem>>, %arg7: memref<16x256xbf16, #tpu.memory_space<vmem>>, %arg8: memref<16x256xf32, #tpu.memory_space<vmem>>) attributes {dimension_semantics = [#tpu.dimension_semantics<parallel>, #tpu.dimension_semantics<parallel>, #tpu.dimension_semantics<arbitrary>], iteration_bounds = array<i64: 1, 1, 2>, scalar_prefetch = 0 : i64, scratch_operands = 1 : i64, tpu.core_type = #tpu.core_type<tc>, window_params = [{transform_indices = @transform_0, window_bounds = array<i64: 16, 4096>}, {transform_indices = @transform_1, window_bounds = array<i64: 4096, 256>}, {transform_indices = @transform_2, window_bounds = array<i64: 1, 256>}, {transform_indices = @transform_3, window_bounds = array<i64: 1, 256>}, {transform_indices = @transform_4, window_bounds = array<i64: 16, 256>}]} {
    %c0_i32 = arith.constant 0 : i32
    %0 = arith.cmpi eq, %arg2, %c0_i32 : i32
    %1 = arith.extui %0 : i1 to i32
    %c0_i32_0 = arith.constant 0 : i32
    %2 = arith.cmpi ne, %1, %c0_i32_0 : i32
    scf.if %2 {
      %cst_9 = arith.constant 0.000000e+00 : f32
      %12 = vector.broadcast %cst_9 : f32 to vector<16x256xf32>
      %c0_10 = arith.constant 0 : index
      %c0_11 = arith.constant 0 : index
      %13 = vector.load %arg8[%c0_10, %c0_11] : memref<16x256xf32, #tpu.memory_space<vmem>>, vector<16x256xf32>
      tpu.vector_store %arg8[%c0_10, %c0_11], %12 {strides = array<i32>} : memref<16x256xf32, #tpu.memory_space<vmem>>, vector<16x256xf32>,
    } else {
    }
    %c0 = arith.constant 0 : index
    %c0_1 = arith.constant 0 : index
    %3 = vector.load %arg8[%c0, %c0_1] : memref<16x256xf32, #tpu.memory_space<vmem>>, vector<16x256xf32>
    %c0_2 = arith.constant 0 : index
    %c0_3 = arith.constant 0 : index
    %4 = vector.load %arg3[%c0_2, %c0_3] : memref<16x4096xbf16, #tpu.memory_space<vmem>>, vector<16x4096xbf16>
    %c0_4 = arith.constant 0 : index
    %c0_5 = arith.constant 0 : index
    %5 = vector.load %arg4[%c0_4, %c0_5] : memref<4096x256xbf16, #tpu.memory_space<vmem>>, vector<4096x256xbf16>
    %cst = arith.constant dense<0.000000e+00> : vector<16x256xf32>
    %6 = tpu.matmul %4, %5, %cst {dimension_numbers = #tpu.dot_dimension_numbers<[1], [0], [0], [1], [0, 0, 1, 1], [], []>} : vector<16x4096xbf16>, vector<4096x256xbf16>, vector<16x256xf32> -> vector<16x256xf32>
    %7 = arith.addf %3, %6 : vector<16x256xf32>
    %c0_6 = arith.constant 0 : index
    %c0_7 = arith.constant 0 : index
    %8 = vector.load %arg8[%c0_6, %c0_7] : memref<16x256xf32, #tpu.memory_space<vmem>>, vector<16x256xf32>
    tpu.vector_store %arg8[%c0_6, %c0_7], %7 {strides = array<i32>} : memref<16x256xf32, #tpu.memory_space<vmem>>, vector<16x256xf32>,
    %c1_i32 = arith.constant 1 : i32
    %9 = arith.cmpi eq, %arg2, %c1_i32 : i32
    %10 = arith.extui %9 : i1 to i32
    %c0_i32_8 = arith.constant 0 : i32
    %11 = arith.cmpi ne, %10, %c0_i32_8 : i32
    scf.if %11 {
      %c0_9 = arith.constant 0 : index
      %c0_10 = arith.constant 0 : index
      %12 = vector.load %arg8[%c0_9, %c0_10] : memref<16x256xf32, #tpu.memory_space<vmem>>, vector<16x256xf32>
      %c0_11 = arith.constant 0 : index
      %c0_12 = arith.constant 0 : index
      %13 = vector.load %arg5[%c0_11, %c0_12] : memref<1x256xf32, #tpu.memory_space<vmem>>, vector<1x256xf32>
      %14 = vector.broadcast %13 : vector<1x256xf32> to vector<16x256xf32>
      %15 = arith.mulf %12, %14 : vector<16x256xf32>
      %c0_13 = arith.constant 0 : index
      %c0_14 = arith.constant 0 : index
      %16 = vector.load %arg6[%c0_13, %c0_14] : memref<1x256xf32, #tpu.memory_space<vmem>>, vector<1x256xf32>
      %17 = vector.broadcast %16 : vector<1x256xf32> to vector<16x256xf32>
      %18 = arith.addf %15, %17 : vector<16x256xf32>
      %cst_15 = arith.constant 0.000000e+00 : f32
      %19 = vector.broadcast %cst_15 : f32 to vector<16x256xf32>
      %20 = arith.maximumf %18, %19 : vector<16x256xf32>
      %21 = arith.truncf %20 : vector<16x256xf32> to vector<16x256xbf16>
      %c0_16 = arith.constant 0 : index
      %c0_17 = arith.constant 0 : index
      %22 = vector.load %arg7[%c0_16, %c0_17] : memref<16x256xbf16, #tpu.memory_space<vmem>>, vector<16x256xbf16>
      tpu.vector_store %arg7[%c0_16, %c0_17], %21 {strides = array<i32>} : memref<16x256xbf16, #tpu.memory_space<vmem>>, vector<16x256xbf16>,
    } else {
    }
    return
  }
  func.func @transform_0(%arg0: i32, %arg1: i32, %arg2: i32) -> (i32, i32) {
    %c0_i32 = arith.constant 0 : i32
    return %arg0, %arg2 : i32, i32
  }
  func.func @transform_1(%arg0: i32, %arg1: i32, %arg2: i32) -> (i32, i32) {
    %c0_i32 = arith.constant 0 : i32
    return %arg2, %arg1 : i32, i32
  }
  func.func @transform_2(%arg0: i32, %arg1: i32, %arg2: i32) -> (i32, i32) {
    %c0_i32 = arith.constant 0 : i32
    %c0_i32_0 = arith.constant 0 : i32
    return %c0_i32, %arg1 : i32, i32
  }
  func.func @transform_3(%arg0: i32, %arg1: i32, %arg2: i32) -> (i32, i32) {
    %c0_i32 = arith.constant 0 : i32
    %c0_i32_0 = arith.constant 0 : i32
    return %c0_i32, %arg1 : i32, i32
  }
  func.func @transform_4(%arg0: i32, %arg1: i32, %arg2: i32) -> (i32, i32) {
    %c0_i32 = arith.constant 0 : i32
    return %arg0, %arg1 : i32, i32
  }
}

module attributes {stable_mosaic.version = 11 : i64} {
  func.func @_mm_single_k_kernel(%arg0: i32, %arg1: i32, %arg2: i32, %arg3: memref<16x256xbf16, #tpu.memory_space<vmem>>, %arg4: memref<256x128xbf16, #tpu.memory_space<vmem>>, %arg5: memref<1x128xf32, #tpu.memory_space<vmem>>, %arg6: memref<1x128xf32, #tpu.memory_space<vmem>>, %arg7: memref<16x128xf32, #tpu.memory_space<vmem>>) attributes {dimension_semantics = [#tpu.dimension_semantics<parallel>, #tpu.dimension_semantics<parallel>, #tpu.dimension_semantics<arbitrary>], iteration_bounds = array<i64: 1, 1, 1>, scalar_prefetch = 0 : i64, scratch_operands = 0 : i64, tpu.core_type = #tpu.core_type<tc>, window_params = [{transform_indices = @transform_0, window_bounds = array<i64: 16, 256>}, {transform_indices = @transform_1, window_bounds = array<i64: 256, 128>}, {transform_indices = @transform_2, window_bounds = array<i64: 1, 128>}, {transform_indices = @transform_3, window_bounds = array<i64: 1, 128>}, {transform_indices = @transform_4, window_bounds = array<i64: 16, 128>}]} {
    %c0 = arith.constant 0 : index
    %c0_0 = arith.constant 0 : index
    %0 = vector.load %arg3[%c0, %c0_0] : memref<16x256xbf16, #tpu.memory_space<vmem>>, vector<16x256xbf16>
    %c0_1 = arith.constant 0 : index
    %c0_2 = arith.constant 0 : index
    %1 = vector.load %arg4[%c0_1, %c0_2] : memref<256x128xbf16, #tpu.memory_space<vmem>>, vector<256x128xbf16>
    %cst = arith.constant dense<0.000000e+00> : vector<16x128xf32>
    %2 = tpu.matmul %0, %1, %cst {dimension_numbers = #tpu.dot_dimension_numbers<[1], [0], [0], [1], [0, 0, 1, 1], [], []>} : vector<16x256xbf16>, vector<256x128xbf16>, vector<16x128xf32> -> vector<16x128xf32>
    %c0_3 = arith.constant 0 : index
    %c0_4 = arith.constant 0 : index
    %3 = vector.load %arg5[%c0_3, %c0_4] : memref<1x128xf32, #tpu.memory_space<vmem>>, vector<1x128xf32>
    %4 = vector.broadcast %3 : vector<1x128xf32> to vector<16x128xf32>
    %5 = arith.mulf %2, %4 : vector<16x128xf32>
    %c0_5 = arith.constant 0 : index
    %c0_6 = arith.constant 0 : index
    %6 = vector.load %arg6[%c0_5, %c0_6] : memref<1x128xf32, #tpu.memory_space<vmem>>, vector<1x128xf32>
    %7 = vector.broadcast %6 : vector<1x128xf32> to vector<16x128xf32>
    %8 = arith.addf %5, %7 : vector<16x128xf32>
    %c0_7 = arith.constant 0 : index
    %c0_8 = arith.constant 0 : index
    %9 = vector.load %arg7[%c0_7, %c0_8] : memref<16x128xf32, #tpu.memory_space<vmem>>, vector<16x128xf32>
    tpu.vector_store %arg7[%c0_7, %c0_8], %8 {strides = array<i32>} : memref<16x128xf32, #tpu.memory_space<vmem>>, vector<16x128xf32>,
    return
  }
  func.func @transform_0(%arg0: i32, %arg1: i32, %arg2: i32) -> (i32, i32) {
    %c0_i32 = arith.constant 0 : i32
    return %arg0, %arg2 : i32, i32
  }
  func.func @transform_1(%arg0: i32, %arg1: i32, %arg2: i32) -> (i32, i32) {
    %c0_i32 = arith.constant 0 : i32
    return %arg2, %arg1 : i32, i32
  }
  func.func @transform_2(%arg0: i32, %arg1: i32, %arg2: i32) -> (i32, i32) {
    %c0_i32 = arith.constant 0 : i32
    %c0_i32_0 = arith.constant 0 : i32
    return %c0_i32, %arg1 : i32, i32
  }
  func.func @transform_3(%arg0: i32, %arg1: i32, %arg2: i32) -> (i32, i32) {
    %c0_i32 = arith.constant 0 : i32
    %c0_i32_0 = arith.constant 0 : i32
    return %c0_i32, %arg1 : i32, i32
  }
  func.func @transform_4(%arg0: i32, %arg1: i32, %arg2: i32) -> (i32, i32) {
    %c0_i32 = arith.constant 0 : i32
    return %arg0, %arg1 : i32, i32
  }
}

</mosaic_0001>

<bundles_post_ra>
// kernel: embed_forward.5
= control target key start
LH: loop header
LB: loop body
LE: loop exit
PB: predicated region body
PF: predicated region fallthrough
CT: control target
= control target key end

     0   :  { %s474_s6 = smov 0   ;;  %s559_s0 = inlined_call_operand.vmem [shape: bf16[2,9,2,9,256], index: 0, kind: input, shape index: {}]   ;;  %s560_s1 = inlined_call_operand.vmem [shape: bf16[2,8,8,128], index: 1, kind: output, shape index: {}]  }
   0x1 LB: > { %s409_s7 = sadd.s32 4294967295, %s462_s6   ;;  %p413_p0 = scmp.ge.s32.totalorder %s462_s6, 1  ;;  %s462_s6 = sphi %s474_s6, %s11_s6  }
   0x2   : > { %p87_p1 = scmp.lt.s32.totalorder %s462_s6, 3 }
   0x4   : > { %p88_p2 = pnand %p413_p0, %p87_p1 }
   0x5   : > { %p107_p3 = scmp.lt.s32.totalorder (!%p88_p2), %s409_s7, 1 }
   0x6   : > { %91 = sbr.rel (%p88_p2) target bundleno = 60 (0x3c), region = 24 }
   0xb   : > { %s564_s7 = smov (!%p107_p3, %s409_s7), 1  ;;  %vm215_vm0 = vsmask.f32 3328  ;;  %vm216_vm1 = vsmask.f32 7440 }
   0xc   : > { %s447_s8 = smul.u32 288, %s564_s7  ;;  %vm509_vm2 = vmor %vm215_vm0, %vm216_vm1  ;;  %s419_s12 = sshll.u32 %s564_s7, 5 }
   0xd   : > { %s528_s15 = scalar_lea.vmem %s560_s1, %s419_s12 }
   0xe   : > { %s488_s11 = scalar_lea.vmem %s559_s0, %s447_s8 }
   0xf   : > { %v117_v0 = vld [vmem:[%s488_s11] sm:$0xff]  ;;  %v118_v1 = vld [vmem:[%s488_s11 + $0x8] sm:$0x11]  ;;  %v119_v2 = vld [vmem:[%s488_s11 + $0x10] sm:$0xff] }
  0x10   : > { %v120_v3 = vld [vmem:[%s488_s11 + $0x18] sm:$0x11]  ;;  %v121_v4 = vld [vmem:[%s488_s11 + $0x20] sm:$0xff]  ;;  %v122_v5 = vld [vmem:[%s488_s11 + $0x28] sm:$0x11]  ;;  %v151_v6 = vmax.bf16 %v119_v2, %v117_v0 }
  0x11   : > { %v123_v7 = vld [vmem:[%s488_s11 + $0x30] sm:$0xff]  ;;  %v124_v8 = vld [vmem:[%s488_s11 + $0x38] sm:$0x11]  ;;  %v125_v9 = vld [vmem:[%s488_s11 + $0x40] sm:$0xff]  ;;  %v152_v10 = vmax.bf16 %v120_v3, %v118_v1 }
  0x12   : > { %v126_v11 = vld [vmem:[%s488_s11 + $0x48] sm:$0x11]  ;;  %v153_v12 = vmax.bf16 %v123_v7, %v121_v4  ;;  %v154_v13 = vmax.bf16 %v124_v8, %v122_v5  ;;  %v167_v14 = vmax.bf16 %v151_v6, %v121_v4  ;;  %v127_v15 = vld [vmem:[%s488_s11 + $0x50] sm:$0xff]  ;;  %v128_v16 = vld [vmem:[%s488_s11 + $0x58] sm:$0x11] }
  0x13   : > { %v168_v17 = vmax.bf16 %v152_v10, %v122_v5  ;;  %v129_v18 = vld [vmem:[%s488_s11 + $0x60] sm:$0xff]  ;;  %v130_v19 = vld [vmem:[%s488_s11 + $0x68] sm:$0x11]  ;;  %v131_v20 = vld [vmem:[%s488_s11 + $0x70] sm:$0xff]  ;;  %v155_v21 = vmax.bf16 %v127_v15, %v125_v9  ;;  %v156_v22 = vmax.bf16 %v128_v16, %v126_v11 }
  0x14   : > { %v169_v23 = vmax.bf16 %v153_v12, %v125_v9  ;;  %v170_v24 = vmax.bf16 %v154_v13, %v126_v11  ;;  %v191_v25 = vrot.slane %v167_v14, 4  ;;  %v219_v26 = vshrl.u32 %v167_v14, 16  ;;  %v132_v27 = vld [vmem:[%s488_s11 + $0x78] sm:$0x11]  ;;  %v133_v41 = vld [vmem:[%s488_s11 + $0x80] sm:$0xff]  ;;  %v135_v58 = vld [vmem:[%s488_s11 + $0x90] sm:$0xff] }
  0x15   : > { %v222_v28 = vshll.u32 %v167_v14, 16  ;;  %v228_v29 = vshll.u32 %v168_v17, 16  ;;  %v157_v30 = vmax.bf16 %v131_v20, %v129_v18  ;;  %v158_v34 = vmax.bf16 %v132_v27, %v130_v19  ;;  %v134_v50 = vld [vmem:[%s488_s11 + $0x88] sm:$0x11]  ;;  %v136_v63 = vld [vmem:[%s488_s11 + $0x98] sm:$0x11] }
  0x16   : > { %v192_v31 = vrot.slane %v169_v23, 4  ;;  %v221_v32 = vrot.slane %v219_v26, 4  ;;  %v233_v33 = vshrl.u32 %v169_v23, 16  ;;  %v207_v35 = vmax.bf16 %v191_v25, %v167_v14  ;;  %v137_v4 = vld [vmem:[%s488_s11 + $0xa0] sm:$0xff]  ;;  %v139_v5 = vld [vmem:[%s488_s11 + $0xb0] sm:$0xff] }
  0x17   : > { %v224_v36 = vrot.slane %v222_v28, 5  ;;  %v236_v37 = vshll.u32 %v169_v23, 16  ;;  %v242_v38 = vshll.u32 %v170_v24, 16  ;;  %v230_v39 = vrot.slane %v228_v29, 5  ;;  %v138_v10 = vld [vmem:[%s488_s11 + $0xa8] sm:$0x11] }
  0x18   : > { %v235_v40 = vrot.slane %v233_v33, 4  ;;  %v171_v42 = vmax.bf16 %v155_v21, %v129_v18  ;;  %v172_v43 = vmax.bf16 %v156_v22, %v130_v19  ;;  %v208_v44 = vmax.bf16 %v192_v31, %v169_v23  ;;  %v140_v11 = vld [vmem:[%s488_s11 + $0xb8] sm:$0x11]  ;;  %v141_v21 = vld [vmem:[%s488_s11 + $0xc0] sm:$0xff]  ;;  %v142_v28 = vld [vmem:[%s488_s11 + $0xc8] sm:$0x11] }
  0x19   : > { %v225_v45 = vor.u32 %v224_v36, %v221_v32  ;;  %v238_v46 = vrot.slane %v236_v37, 5  ;;  %v173_v47 = vmax.bf16 %v157_v30, %v133_v41  ;;  %v244_v49 = vrot.slane %v242_v38, 5  ;;  %v143_v38 = vld [vmem:[%s488_s11 + $0xd0] sm:$0xff] }
  0x1a   : > { %v193_v51 = vrot.slane %v171_v42, 4  ;;  %v247_v52 = vshrl.u32 %v171_v42, 16  ;;  %v250_v53 = vshll.u32 %v171_v42, 16  ;;  %v174_v56 = vmax.bf16 %v158_v34, %v134_v50 }
  0x1b   : > { %v226_v54 = vrot.slane %v225_v45, 4  ;;  %v239_v55 = vor.u32 %v238_v46, %v235_v40  ;;  %v256_v57 = vshll.u32 %v172_v43, 16  ;;  %v194_v59 = vrot.slane %v173_v47, 4  ;;  %v147_v45 = vld [vmem:[%s488_s11 + $0xf0] sm:$0xff] }
  0x1c   : > { %v249_v60 = vrot.slane %v247_v52, 4  ;;  %v252_v61 = vrot.slane %v250_v53, 5  ;;  %v261_v62 = vshrl.u32 %v173_v47, 16  ;;  %v209_v2 = vmax.bf16 %v193_v51, %v171_v42  ;;  %v146_v51 = vld [vmem:[%s488_s11 + $0xe8] sm:$0x11] }
  0x1d   : > { %v231_v0 = vsel %vm509_vm2, %v226_v54, %v230_v39  ;;  %v240_v1 = vrot.slane %v239_v55, 4  ;;  %v258_v3 = vrot.slane %v256_v57, 5  ;;  %v264_v9 = vshll.u32 %v173_v47, 16  ;;  %v144_v39 = vld [vmem:[%s488_s11 + $0xd8] sm:$0x11] }
  0x1e   : > { %v338_v6 = vmax.bf16 %v231_v0, %v207_v35  ;;  %v253_v7 = vor.u32 %v252_v61, %v249_v60  ;;  %v263_v8 = vrot.slane %v261_v62, 4  ;;  %v270_v13 = vshll.u32 %v174_v56, 16  ;;  %v148_v52 = vld [vmem:[%s488_s11 + $0xf8] sm:$0x11] }
  0x1f   : > { %v245_v12 = vsel %vm509_vm2, %v240_v1, %v244_v49  ;;  %v159_v14 = vmax.bf16 %v135_v58, %v133_v41  ;;  %v160_v15 = vmax.bf16 %v136_v63, %v134_v50  ;;  %v266_v18 = vrot.slane %v264_v9, 5  ;;  %v149_v58 = vld [vmem:[%s488_s11 + $0x100] sm:$0xff]  ;;  %v150_v1 = vld [vmem:[%s488_s11 + $0x108] sm:$0x11] }
  0x20   : > { %v339_v16 = vmax.bf16 %v245_v12, %v208_v44  ;;  %v254_v17 = vrot.slane %v253_v7, 4  ;;  %v161_v19 = vmax.bf16 %v139_v5, %v137_v4  ;;  %v272_v20 = vrot.slane %v270_v13, 5  ;;  %v145_v44 = vld [vmem:[%s488_s11 + $0xe0] sm:$0xff] }
  0x21   : > { %v162_v22 = vmax.bf16 %v140_v11, %v138_v10  ;;  %v175_v23 = vmax.bf16 %v159_v14, %v137_v4  ;;  %v176_v24 = vmax.bf16 %v160_v15, %v138_v10  ;;  %v267_v27 = vor.u32 %v266_v18, %v263_v8 }
  0x22   : > { %v440_v25 = vcombine.low %v338_v6, %v339_v16  ;;  %v259_v26 = vsel %vm509_vm2, %v254_v17, %v258_v3  ;;  %v177_v29 = vmax.bf16 %v161_v19, %v141_v21  ;;  %v210_v30 = vmax.bf16 %v194_v59, %v173_v47 }
  0x23   : > { %v178_v31 = vmax.bf16 %v162_v22, %v142_v28  ;;  %v195_v32 = vrot.slane %v175_v23, 4  ;;  %v275_v33 = vshrl.u32 %v175_v23, 16  ;;  %v268_v34 = vrot.slane %v267_v27, 4 }
  0x24   : > { %424 = vst [vmem:[%s528_s15] sm:$0xff] %v440_v25   ;;  %v340_v35 = vmax.bf16 %v259_v26, %v209_v2  ;;  %v278_v36 = vshll.u32 %v175_v23, 16  ;;  %v284_v37 = vshll.u32 %v176_v24, 16  ;;  %v196_v40 = vrot.slane %v177_v29, 4 }
  0x25   : > { %v277_v41 = vrot.slane %v275_v33, 4  ;;  %v289_v42 = vshrl.u32 %v177_v29, 16  ;;  %v292_v43 = vshll.u32 %v177_v29, 16  ;;  %v273_v46 = vsel %vm509_vm2, %v268_v34, %v272_v20 }
  0x26   : > { %v211_v47 = vmax.bf16 %v195_v32, %v175_v23  ;;  %v280_v49 = vrot.slane %v278_v36, 5  ;;  %v286_v50 = vrot.slane %v284_v37, 5  ;;  %v341_v53 = vmax.bf16 %v273_v46, %v210_v30 }
  0x27   : > { %v291_v54 = vrot.slane %v289_v42, 4  ;;  %v294_v55 = vrot.slane %v292_v43, 5  ;;  %v298_v56 = vshll.u32 %v178_v31, 16  ;;  %v163_v59 = vmax.bf16 %v143_v38, %v141_v21 }
  0x28   : > { %v281_v57 = vor.u32 %v280_v49, %v277_v41  ;;  %v164_v60 = vmax.bf16 %v144_v39, %v142_v28  ;;  %v165_v61 = vmax.bf16 %v147_v45, %v145_v44  ;;  %v441_v62 = vcombine.low %v340_v35, %v341_v53 }
  0x29   : > { %v295_v63 = vor.u32 %v294_v55, %v291_v54  ;;  %v300_v0 = vrot.slane %v298_v56, 5  ;;  %v166_v2 = vmax.bf16 %v148_v52, %v146_v51  ;;  %v212_v3 = vmax.bf16 %v196_v40, %v177_v29 }
  0x2a   : > { %v282_v4 = vrot.slane %v281_v57, 4  ;;  %v179_v5 = vmax.bf16 %v163_v59, %v145_v44  ;;  %v180_v6 = vmax.bf16 %v164_v60, %v146_v51  ;;  %442 = vst [vmem:[%s528_s15 + $0x8] sm:$0xff] %v441_v62   ;;  %v181_v8 = vmax.bf16 %v165_v61, %v149_v58 }
  0x2b   : > { %v296_v7 = vrot.slane %v295_v63, 4  ;;  %v182_v10 = vmax.bf16 %v166_v2, %v150_v1 }
  0x2c   : > { %v287_v9 = vsel %vm509_vm2, %v282_v4, %v286_v50  ;;  %v303_v11 = vshrl.u32 %v179_v5, 16  ;;  %v306_v14 = vshll.u32 %v179_v5, 16  ;;  %v312_v15 = vshll.u32 %v180_v6, 16 }
  0x2d   : > { %v301_v12 = vsel %vm509_vm2, %v296_v7, %v300_v0  ;;  %v342_v13 = vmax.bf16 %v287_v9, %v211_v47  ;;  %v197_v17 = vrot.slane %v179_v5, 4  ;;  %v317_v20 = vshrl.u32 %v181_v8, 16 }
  0x2e   : > { %v343_v16 = vmax.bf16 %v301_v12, %v212_v3  ;;  %v305_v18 = vrot.slane %v303_v11, 4  ;;  %v308_v19 = vrot.slane %v306_v14, 5  ;;  %v320_v21 = vshll.u32 %v181_v8, 16 }
  0x2f   : > { %v198_v23 = vrot.slane %v181_v8, 4  ;;  %v326_v24 = vshll.u32 %v182_v10, 16  ;;  %v314_v26 = vrot.slane %v312_v15, 5  ;;  %v319_v27 = vrot.slane %v317_v20, 4 }
  0x30   : > { %v443_v22 = vcombine.low %v342_v13, %v343_v16  ;;  %v309_v25 = vor.u32 %v308_v19, %v305_v18  ;;  %v322_v28 = vrot.slane %v320_v21, 5  ;;  %v213_v29 = vmax.bf16 %v197_v17, %v179_v5 }
  0x31   : > { %v328_v32 = vrot.slane %v326_v24, 5  ;;  %v214_v33 = vmax.bf16 %v198_v23, %v181_v8 }
  0x32   : > { %444 = vst [vmem:[%s528_s15 + $0x10] sm:$0xff] %v443_v22   ;;  %v310_v30 = vrot.slane %v309_v25, 4  ;;  %v323_v31 = vor.u32 %v322_v28, %v319_v27 }
  0x34   : > { %v315_v34 = vsel %vm509_vm2, %v310_v30, %v314_v26  ;;  %v324_v35 = vrot.slane %v323_v31, 4 }
  0x35   : > { %v344_v36 = vmax.bf16 %v315_v34, %v213_v29 }
  0x36   : > { %v329_v37 = vsel %vm509_vm2, %v324_v35, %v328_v32 }
  0x37   : > { %v345_v38 = vmax.bf16 %v329_v37, %v214_v33 }
  0x39   : > { %v445_v39 = vcombine.low %v344_v36, %v345_v38 }
  0x3b   : > { %446 = vst [vmem:[%s528_s15 + $0x18] sm:$0xff] %v445_v39  }
  0x3c PF: > { %s11_s6 = sadd.s32 1, %s462_s6  }
  0x3d   : > { %p8_p4 = scmp.ge.s32.totalorder %s11_s6, 4  }
  0x3f   :  { %10 = sbr.rel (!%p8_p4) target bundleno = 1 (0x1), region = 54 }

// kernel: embed_forward.4
= control target key start
LH: loop header
LB: loop body
LE: loop exit
PB: predicated region body
PF: predicated region fallthrough
CT: control target
= control target key end

     0   :  { %v1924_v0 = vmov 0   ;;  %vm446_vm0 = vcmask 154624   ;;  %vm543_vm1 = vcmask 1040384   ;;  %vm544_vm2 = vcmask 1041408   ;;  %s2439_s1 = inlined_call_operand.vmem [shape: bf16[147,128], index: 1, kind: input, shape index: {}]   ;;  %s2440_s0 = inlined_call_operand.vmem [shape: bf16[512,147], index: 0, kind: input, shape index: {}]   ;;  %s2441_s2 = inlined_call_operand.vmem [shape: f32[1,128], index: 2, kind: input, shape index: {}]   ;;  %s2442_s3 = inlined_call_operand.vmem [shape: f32[1,128], index: 3, kind: input, shape index: {}]   ;;  %s2443_s4 = inlined_call_operand.vmem [shape: bf16[512,128], index: 4, kind: output, shape index: {}]  }
   0x1   :  { %550 = vmatprep.subr.bf16.mxu0 %v1924_v0  ;;  %1796 = vmatprep.subr.bf16.mxu1 %v1924_v0  ;;  %v1818_v1 = vld [vmem:[%s2439_s1 + $0x38] sm:$0xff]   ;;  %v1819_v2 = vld [vmem:[%s2439_s1 + $0x30] sm:$0xff]   ;;  %v1820_v3 = vld [vmem:[%s2439_s1 + $0x28] sm:$0xff]   ;;  %v1925_v10 = vmov 65535  }
   0x2   :  { %551 = vmatpush1.bf16.msra.mxu0 %v1818_v1  ;;  %1806 = vmatpush1.bf16.msra.mxu1 %v1818_v1  ;;  %v1821_v4 = vld [vmem:[%s2439_s1 + $0x20] sm:$0xff]   ;;  %v1822_v7 = vld [vmem:[%s2439_s1 + $0x18] sm:$0xff]   ;;  %v1823_v8 = vld [vmem:[%s2439_s1 + $0x10] sm:$0xff]   ;;  %v545_v11 = vsel %vm543_vm1, 4294967295, %v1925_v10 }
   0x3   :  { %552 = vmatprep.subr.bf16.mxu0 %v1924_v0  ;;  %1797 = vmatprep.subr.bf16.mxu1 %v1924_v0  ;;  %v1830_v5 = vld [vmem:[%s2440_s0 + $0x4] ss:$8 sps:$4 sm:$0xff]   ;;  %v1826_v13 = vld [vmem:[%s2439_s1 + $0x48] ss:$0 sps:$4 sm:$0x33]   ;;  %v546_v14 = vsel %vm544_vm2, %v545_v11, 0 }
   0x4   :  { %1443 = vmatprep.mubr.msk.bf16.mxu0 %vm446_vm0, %v1830_v5  ;;  %v1833_v6 = vld [vmem:[%s2440_s0 + $0x104] ss:$8 sps:$4 sm:$0xff]   ;;  %v548_v15 = vand.u32 %v1826_v13, %v546_v14  ;;  %v1828_v17 = vld [vmem:[%s2440_s0] ss:$8 sps:$4 sm:$0xff]   ;;  %v1834_v19 = vld [vmem:[%s2440_s0 + $0x14] ss:$8 sps:$4 sm:$0xff]  }
   0x5   :  { %1459 = vmatprep.mubr.msk.bf16.mxu1 %vm446_vm0, %v1833_v6  ;;  %v1824_v9 = vld [vmem:[%s2439_s1 + $0x8] sm:$0xff]   ;;  %v1825_v12 = vld [vmem:[%s2439_s1] sm:$0xff]   ;;  %v1836_v20 = vld [vmem:[%s2440_s0 + $0x114] ss:$8 sps:$4 sm:$0xff]  }
   0x6   :  { %553 = vmatpush1.bf16.msra.mxu0 %v1819_v2  ;;  %1807 = vmatpush1.bf16.msra.mxu1 %v1819_v2  ;;  %v1827_v16 = vld [vmem:[%s2439_s1 + $0x40] sm:$0xff]   ;;  %v1838_v21 = vld [vmem:[%s2440_s0 + $0x10] ss:$8 sps:$4 sm:$0xff]   ;;  %v1846_v27 = vld [vmem:[%s2440_s0 + $0x34] ss:$8 sps:$4 sm:$0xff]  }
   0x7   :  { %554 = vmatprep.subr.bf16.mxu0 %v1924_v0  ;;  %1798 = vmatprep.subr.bf16.mxu1 %v1924_v0  ;;  %v1831_v18 = vld [vmem:[%s2440_s0 + $0x100] ss:$8 sps:$4 sm:$0xff]   ;;  %v1839_v22 = vld [vmem:[%s2440_s0 + $0x110] ss:$8 sps:$4 sm:$0xff]   ;;  %v1840_v23 = vld [vmem:[%s2440_s0 + $0x24] ss:$8 sps:$4 sm:$0xff]  }
   0x8   :  { %v1842_v24 = vld [vmem:[%s2440_s0 + $0x124] ss:$8 sps:$4 sm:$0xff]   ;;  %v1844_v25 = vld [vmem:[%s2440_s0 + $0x20] ss:$8 sps:$4 sm:$0xff]   ;;  %v1848_v28 = vld [vmem:[%s2440_s0 + $0x134] ss:$8 sps:$4 sm:$0xff]  }
   0x9   :  { %v1845_v26 = vld [vmem:[%s2440_s0 + $0x120] ss:$8 sps:$4 sm:$0xff]   ;;  %v1850_v29 = vld [vmem:[%s2440_s0 + $0x30] ss:$8 sps:$4 sm:$0xff]   ;;  %v1852_v31 = vld [vmem:[%s2440_s0 + $0x44] ss:$8 sps:$4 sm:$0xff]  }
   0xa   :  { %555 = vmatpush1.bf16.msra.mxu0 %v1820_v3  ;;  %1808 = vmatpush1.bf16.msra.mxu1 %v1820_v3  ;;  %v1851_v30 = vld [vmem:[%s2440_s0 + $0x130] ss:$8 sps:$4 sm:$0xff]   ;;  %v1854_v32 = vld [vmem:[%s2440_s0 + $0x144] ss:$8 sps:$4 sm:$0xff]   ;;  %v1856_v33 = vld [vmem:[%s2440_s0 + $0x40] ss:$8 sps:$4 sm:$0xff]  }
   0xb   :  { %556 = vmatprep.subr.bf16.mxu0 %v1924_v0  ;;  %1799 = vmatprep.subr.bf16.mxu1 %v1924_v0  ;;  %v1857_v34 = vld [vmem:[%s2440_s0 + $0x140] ss:$8 sps:$4 sm:$0xff]   ;;  %v1858_v35 = vld [vmem:[%s2440_s0 + $0x54] ss:$8 sps:$4 sm:$0xff]   ;;  %v1862_v37 = vld [vmem:[%s2440_s0 + $0x50] ss:$8 sps:$4 sm:$0xff]  }
   0xc   :  { %v1860_v36 = vld [vmem:[%s2440_s0 + $0x154] ss:$8 sps:$4 sm:$0xff]   ;;  %v1863_v38 = vld [vmem:[%s2440_s0 + $0x150] ss:$8 sps:$4 sm:$0xff]   ;;  %v1864_v39 = vld [vmem:[%s2440_s0 + $0x64] ss:$8 sps:$4 sm:$0xff]  }
   0xd   :  { %v1866_v40 = vld [vmem:[%s2440_s0 + $0x164] ss:$8 sps:$4 sm:$0xff]   ;;  %v1868_v41 = vld [vmem:[%s2440_s0 + $0x60] ss:$8 sps:$4 sm:$0xff]   ;;  %v1870_v43 = vld [vmem:[%s2440_s0 + $0x74] ss:$8 sps:$4 sm:$0xff]  }
   0xe   :  { %557 = vmatpush1.bf16.msra.mxu0 %v1821_v4  ;;  %1809 = vmatpush1.bf16.msra.mxu1 %v1821_v4  ;;  %v1869_v42 = vld [vmem:[%s2440_s0 + $0x160] ss:$8 sps:$4 sm:$0xff]   ;;  %v1872_v44 = vld [vmem:[%s2440_s0 + $0x174] ss:$8 sps:$4 sm:$0xff]   ;;  %v1874_v45 = vld [vmem:[%s2440_s0 + $0x70] ss:$8 sps:$4 sm:$0xff]  }
   0xf   :  { %558 = vmatprep.subr.bf16.mxu0 %v1924_v0  ;;  %1800 = vmatprep.subr.bf16.mxu1 %v1924_v0  ;;  %v1875_v46 = vld [vmem:[%s2440_s0 + $0x170] ss:$8 sps:$4 sm:$0xff]   ;;  %v1876_v47 = vld [vmem:[%s2440_s0 + $0x84] ss:$8 sps:$4 sm:$0xff]   ;;  %v1880_v49 = vld [vmem:[%s2440_s0 + $0x80] ss:$8 sps:$4 sm:$0xff]  }
  0x10   :  { %v1878_v48 = vld [vmem:[%s2440_s0 + $0x184] ss:$8 sps:$4 sm:$0xff]   ;;  %v1881_v50 = vld [vmem:[%s2440_s0 + $0x180] ss:$8 sps:$4 sm:$0xff]   ;;  %v1882_v51 = vld [vmem:[%s2440_s0 + $0x94] ss:$8 sps:$4 sm:$0xff]  }
  0x11   :  { %v1884_v52 = vld [vmem:[%s2440_s0 + $0x194] ss:$8 sps:$4 sm:$0xff]   ;;  %v1886_v53 = vld [vmem:[%s2440_s0 + $0x90] ss:$8 sps:$4 sm:$0xff]   ;;  %v1888_v55 = vld [vmem:[%s2440_s0 + $0xa4] ss:$8 sps:$4 sm:$0xff]  }
  0x12   :  { %559 = vmatpush1.bf16.msra.mxu0 %v1822_v7  ;;  %1810 = vmatpush1.bf16.msra.mxu1 %v1822_v7  ;;  %v1887_v54 = vld [vmem:[%s2440_s0 + $0x190] ss:$8 sps:$4 sm:$0xff]   ;;  %v1890_v56 = vld [vmem:[%s2440_s0 + $0x1a4] ss:$8 sps:$4 sm:$0xff]   ;;  %v1892_v57 = vld [vmem:[%s2440_s0 + $0xa0] ss:$8 sps:$4 sm:$0xff]  }
  0x13   :  { %560 = vmatprep.subr.bf16.mxu0 %v1924_v0  ;;  %1801 = vmatprep.subr.bf16.mxu1 %v1924_v0  ;;  %v1893_v58 = vld [vmem:[%s2440_s0 + $0x1a0] ss:$8 sps:$4 sm:$0xff]   ;;  %v1894_v59 = vld [vmem:[%s2440_s0 + $0xb4] ss:$8 sps:$4 sm:$0xff]   ;;  %v1898_v61 = vld [vmem:[%s2440_s0 + $0xb0] ss:$8 sps:$4 sm:$0xff]  }
  0x14   :  { %v1896_v60 = vld [vmem:[%s2440_s0 + $0x1b4] ss:$8 sps:$4 sm:$0xff]   ;;  %v1899_v62 = vld [vmem:[%s2440_s0 + $0x1b0] ss:$8 sps:$4 sm:$0xff]   ;;  %v1900_v63 = vld [vmem:[%s2440_s0 + $0xc4] ss:$8 sps:$4 sm:$0xff]  }
  0x15   :  { %v1904_v1 = vld [vmem:[%s2440_s0 + $0xc0] ss:$8 sps:$4 sm:$0xff]   ;;  %v1906_v3 = vld [vmem:[%s2440_s0 + $0xd4] ss:$8 sps:$4 sm:$0xff]   ;;  %v1910_v5 = vld [vmem:[%s2440_s0 + $0xd0] ss:$8 sps:$4 sm:$0xff]  }
  0x16   :  { %561 = vmatpush1.bf16.msra.mxu0 %v1823_v8  ;;  %1811 = vmatpush1.bf16.msra.mxu1 %v1823_v8  ;;  %v1905_v2 = vld [vmem:[%s2440_s0 + $0x1c0] ss:$8 sps:$4 sm:$0xff]   ;;  %v1908_v4 = vld [vmem:[%s2440_s0 + $0x1d4] ss:$8 sps:$4 sm:$0xff]   ;;  %v1911_v6 = vld [vmem:[%s2440_s0 + $0x1d0] ss:$8 sps:$4 sm:$0xff]  }
  0x17   :  { %562 = vmatprep.subr.bf16.mxu0 %v1924_v0  ;;  %1802 = vmatprep.subr.bf16.mxu1 %v1924_v0  ;;  %v1912_v7 = vld [vmem:[%s2440_s0 + $0xe4] ss:$8 sps:$4 sm:$0xff]   ;;  %v1917_v10 = vld [vmem:[%s2440_s0 + $0x1e0] ss:$8 sps:$4 sm:$0xff]   ;;  %v1918_v11 = vld [vmem:[%s2440_s0 + $0xf4] ss:$8 sps:$4 sm:$0xff]  }
  0x18   :  { %v1914_v8 = vld [vmem:[%s2440_s0 + $0x1e4] ss:$8 sps:$4 sm:$0xff]   ;;  %v1922_v13 = vld [vmem:[%s2440_s0 + $0xf0] ss:$8 sps:$4 sm:$0xff]  }
  0x19   :  { %v1923_v14 = vld [vmem:[%s2440_s0 + $0x1f0] ss:$8 sps:$4 sm:$0xff]  }
  0x1a   :  { %563 = vmatpush1.bf16.msra.mxu0 %v1824_v9  ;;  %1812 = vmatpush1.bf16.msra.mxu1 %v1824_v9  ;;  %v1916_v9 = vld [vmem:[%s2440_s0 + $0xe0] ss:$8 sps:$4 sm:$0xff]  }
  0x1b   :  { %564 = vmatprep.subr.bf16.mxu0 %v1924_v0  ;;  %1803 = vmatprep.subr.bf16.mxu1 %v1924_v0 }
  0x1e   :  { %565 = vmatpush1.bf16.msra.mxu0 %v1825_v12  ;;  %1813 = vmatpush1.bf16.msra.mxu1 %v1825_v12  ;;  %v1920_v12 = vld [vmem:[%s2440_s0 + $0x1f4] ss:$8 sps:$4 sm:$0xff]  }
  0x1f   :  { %578 = vmatprep.subr.bf16.mxu0 %v1924_v0  ;;  %1804 = vmatprep.subr.bf16.mxu1 %v1924_v0 }
  0x22   :  { %579 = vmatpush2.bf16.msra.mxu0 %v548_v15  ;;  %1814 = vmatpush2.bf16.msra.mxu1 %v548_v15  ;;  %v2208_v15 = vld [vmem:[%s2441_s2] ss:$0 sm:$0xff] }
  0x23   :  { %580 = vmatprep.subr.bf16.mxu0 %v1924_v0  ;;  %1805 = vmatprep.subr.bf16.mxu1 %v1924_v0  ;;  %v1902_v0 = vld [vmem:[%s2440_s0 + $0x1c4] ss:$8 sps:$4 sm:$0xff]  }
  0x26   :  { %581 = vmatpush2.bf16.msra.mxu0 %v1827_v16  ;;  %1815 = vmatpush2.bf16.msra.mxu1 %v1827_v16 }
  0x29   :  { %583 = vmatmul.mubr.bf16.vlgmr.msra.gmra.mxu0 %v1828_v17  ;;  %711 = vmatmul.mubr.bf16.vlgmr.msra.gmra.mxu1 %v1831_v18 }
  0x2a   :  { %1444 = vmatprep.mubr.msk.bf16.mxu0 %vm446_vm0, %v1834_v19  ;;  %1460 = vmatprep.mubr.msk.bf16.mxu1 %vm446_vm0, %v1836_v20  ;;  %v2214_v19 = vld [vmem:[%s2442_s3] ss:$0 sm:$0xff] }
  0x31   :  { %591 = vmatmul.mubr.bf16.gmra.mxu0 %v1838_v21  ;;  %719 = vmatmul.mubr.bf16.gmra.mxu1 %v1839_v22 }
  0x32   :  { %1445 = vmatprep.mubr.msk.bf16.mxu0 %vm446_vm0, %v1840_v23  ;;  %1461 = vmatprep.mubr.msk.bf16.mxu1 %vm446_vm0, %v1842_v24 }
  0x39   :  { %599 = vmatmul.mubr.bf16.gmra.mxu0 %v1844_v25  ;;  %727 = vmatmul.mubr.bf16.gmra.mxu1 %v1845_v26 }
  0x3a   :  { %1446 = vmatprep.mubr.msk.bf16.mxu0 %vm446_vm0, %v1846_v27  ;;  %1462 = vmatprep.mubr.msk.bf16.mxu1 %vm446_vm0, %v1848_v28 }
  0x41   :  { %607 = vmatmul.mubr.bf16.gmra.mxu0 %v1850_v29  ;;  %735 = vmatmul.mubr.bf16.gmra.mxu1 %v1851_v30 }
  0x42   :  { %1447 = vmatprep.mubr.msk.bf16.mxu0 %vm446_vm0, %v1852_v31  ;;  %1463 = vmatprep.mubr.msk.bf16.mxu1 %vm446_vm0, %v1854_v32 }
  0x49   :  { %615 = vmatmul.mubr.bf16.gmra.mxu0 %v1856_v33  ;;  %743 = vmatmul.mubr.bf16.gmra.mxu1 %v1857_v34 }
  0x4a   :  { %1448 = vmatprep.mubr.msk.bf16.mxu0 %vm446_vm0, %v1858_v35  ;;  %1464 = vmatprep.mubr.msk.bf16.mxu1 %vm446_vm0, %v1860_v36 }
  0x51   :  { %623 = vmatmul.mubr.bf16.gmra.mxu0 %v1862_v37  ;;  %751 = vmatmul.mubr.bf16.gmra.mxu1 %v1863_v38 }
  0x52   :  { %1449 = vmatprep.mubr.msk.bf16.mxu0 %vm446_vm0, %v1864_v39  ;;  %1465 = vmatprep.mubr.msk.bf16.mxu1 %vm446_vm0, %v1866_v40 }
  0x59   :  { %631 = vmatmul.mubr.bf16.gmra.mxu0 %v1868_v41  ;;  %759 = vmatmul.mubr.bf16.gmra.mxu1 %v1869_v42 }
  0x5a   :  { %1450 = vmatprep.mubr.msk.bf16.mxu0 %vm446_vm0, %v1870_v43  ;;  %1466 = vmatprep.mubr.msk.bf16.mxu1 %vm446_vm0, %v1872_v44 }
  0x61   :  { %639 = vmatmul.mubr.bf16.gmra.mxu0 %v1874_v45  ;;  %767 = vmatmul.mubr.bf16.gmra.mxu1 %v1875_v46 }
  0x62   :  { %1451 = vmatprep.mubr.msk.bf16.mxu0 %vm446_vm0, %v1876_v47  ;;  %1467 = vmatprep.mubr.msk.bf16.mxu1 %vm446_vm0, %v1878_v48 }
  0x69   :  { %647 = vmatmul.mubr.bf16.gmra.mxu0 %v1880_v49  ;;  %775 = vmatmul.mubr.bf16.gmra.mxu1 %v1881_v50 }
  0x6a   :  { %1452 = vmatprep.mubr.msk.bf16.mxu0 %vm446_vm0, %v1882_v51  ;;  %1468 = vmatprep.mubr.msk.bf16.mxu1 %vm446_vm0, %v1884_v52 }
  0x71   :  { %655 = vmatmul.mubr.bf16.gmra.mxu0 %v1886_v53  ;;  %783 = vmatmul.mubr.bf16.gmra.mxu1 %v1887_v54 }
  0x72   :  { %1453 = vmatprep.mubr.msk.bf16.mxu0 %vm446_vm0, %v1888_v55  ;;  %1469 = vmatprep.mubr.msk.bf16.mxu1 %vm446_vm0, %v1890_v56 }
  0x79   :  { %663 = vmatmul.mubr.bf16.gmra.mxu0 %v1892_v57  ;;  %791 = vmatmul.mubr.bf16.gmra.mxu1 %v1893_v58 }
  0x7a   :  { %1454 = vmatprep.mubr.msk.bf16.mxu0 %vm446_vm0, %v1894_v59  ;;  %1470 = vmatprep.mubr.msk.bf16.mxu1 %vm446_vm0, %v1896_v60 }
  0x81   :  { %671 = vmatmul.mubr.bf16.gmra.mxu0 %v1898_v61  ;;  %799 = vmatmul.mubr.bf16.gmra.mxu1 %v1899_v62 }
  0x82   :  { %1455 = vmatprep.mubr.msk.bf16.mxu0 %vm446_vm0, %v1900_v63  ;;  %1471 = vmatprep.mubr.msk.bf16.mxu1 %vm446_vm0, %v1902_v0 }
  0x89   :  { %679 = vmatmul.mubr.bf16.gmra.mxu0 %v1904_v1  ;;  %807 = vmatmul.mubr.bf16.gmra.mxu1 %v1905_v2 }
  0x8a   :  { %1456 = vmatprep.mubr.msk.bf16.mxu0 %vm446_vm0, %v1906_v3  ;;  %1472 = vmatprep.mubr.msk.bf16.mxu1 %vm446_vm0, %v1908_v4 }
  0x91   :  { %687 = vmatmul.mubr.bf16.gmra.mxu0 %v1910_v5  ;;  %815 = vmatmul.mubr.bf16.gmra.mxu1 %v1911_v6 }
  0x92   :  { %1457 = vmatprep.mubr.msk.bf16.mxu0 %vm446_vm0, %v1912_v7  ;;  %1473 = vmatprep.mubr.msk.bf16.mxu1 %vm446_vm0, %v1914_v8 }
  0x99   :  { %695 = vmatmul.mubr.bf16.gmra.mxu0 %v1916_v9  ;;  %823 = vmatmul.mubr.bf16.gmra.mxu1 %v1917_v10 }
  0x9a   :  { %1458 = vmatprep.mubr.msk.bf16.mxu0 %vm446_vm0, %v1918_v11  ;;  %1474 = vmatprep.mubr.msk.bf16.mxu1 %vm446_vm0, %v1920_v12 }
  0xa1   :  { %703 = vmatmul.mubr.bf16.gmra.mxu0 %v1922_v13  ;;  %831 = vmatmul.mubr.bf16.gmra.mxu1 %v1923_v14 }
  0xe9   :  { %v584_v16 = vpop.f32.mrf.mxu0  ;;  %v712_v17 = vpop.f32.mrf.mxu1 }
  0xea   :  { %v846_v18 = vmul.f32 %v2208_v15, %v584_v16  ;;  %v878_v20 = vmul.f32 %v2208_v15, %v712_v17 }
  0xeb   :  { %v586_v21 = vpop.f32.mrf.mxu0  ;;  %v714_v22 = vpop.f32.mrf.mxu1 }
  0xec   :  { %v917_v23 = vadd.f32 %v2214_v19, %v846_v18  ;;  %v949_v24 = vadd.f32 %v2214_v19, %v878_v20 }
  0xed   :  { %v587_v25 = vpop.f32.mrf.mxu0  ;;  %v715_v26 = vpop.f32.mrf.mxu1 }
  0xee   :  { %v847_v27 = vmul.f32 %v2208_v15, %v587_v25  ;;  %v879_v28 = vmul.f32 %v2208_v15, %v715_v26  ;;  %v981_v33 = vmax.f32 %v917_v23, 0.0  ;;  %v1013_v34 = vmax.f32 %v949_v24, 0.0 }
  0xef   :  { %v589_v29 = vpop.f32.mrf.mxu0  ;;  %v717_v30 = vpop.f32.mrf.mxu1 }
  0xf0   :  { %v918_v31 = vadd.f32 %v2214_v19, %v847_v27  ;;  %v950_v32 = vadd.f32 %v2214_v19, %v879_v28 }
  0xf1   :  { %v592_v35 = vpop.f32.mrf.mxu0  ;;  %v720_v36 = vpop.f32.mrf.mxu1 }
  0xf2   :  { %v982_v37 = vmax.f32 %v918_v31, 0.0  ;;  %v1014_v38 = vmax.f32 %v950_v32, 0.0  ;;  %v848_v39 = vmul.f32 %v2208_v15, %v592_v35  ;;  %v880_v40 = vmul.f32 %v2208_v15, %v720_v36 }
  0xf3   :  { %v594_v41 = vpop.f32.mrf.mxu0  ;;  %v722_v42 = vpop.f32.mrf.mxu1 }
  0xf4   :  { %v1608_v43 = vpack.c.bf16 %v982_v37, %v981_v33  ;;  %v1688_v44 = vpack.c.bf16 %v1014_v38, %v1013_v34  ;;  %v919_v45 = vadd.f32 %v2214_v19, %v848_v39  ;;  %v951_v46 = vadd.f32 %v2214_v19, %v880_v40 }
  0xf5   :  { %v595_v47 = vpop.f32.mrf.mxu0  ;;  %v723_v48 = vpop.f32.mrf.mxu1 }
  0xf6   :  { %1609 = vst [vmem:[%s2443_s4] sm:$0xff] %v1608_v43   ;;  %1780 = vst [vmem:[%s2443_s4 + $0x80] sm:$0xff] %v1688_v44   ;;  %v849_v49 = vmul.f32 %v2208_v15, %v595_v47  ;;  %v881_v50 = vmul.f32 %v2208_v15, %v723_v48  ;;  %v983_v55 = vmax.f32 %v919_v45, 0.0  ;;  %v1015_v56 = vmax.f32 %v951_v46, 0.0 }
  0xf7   :  { %v597_v51 = vpop.f32.mrf.mxu0  ;;  %v725_v52 = vpop.f32.mrf.mxu1 }
  0xf8   :  { %v920_v53 = vadd.f32 %v2214_v19, %v849_v49  ;;  %v952_v54 = vadd.f32 %v2214_v19, %v881_v50 }
  0xf9   :  { %v600_v57 = vpop.f32.mrf.mxu0  ;;  %v728_v58 = vpop.f32.mrf.mxu1 }
  0xfa   :  { %v984_v59 = vmax.f32 %v920_v53, 0.0  ;;  %v1016_v60 = vmax.f32 %v952_v54, 0.0  ;;  %v850_v61 = vmul.f32 %v2208_v15, %v600_v57  ;;  %v882_v62 = vmul.f32 %v2208_v15, %v728_v58 }
  0xfb   :  { %v602_v63 = vpop.f32.mrf.mxu0  ;;  %v730_v0 = vpop.f32.mrf.mxu1 }
  0xfc   :  { %v1613_v1 = vpack.c.bf16 %v984_v59, %v983_v55  ;;  %v1693_v2 = vpack.c.bf16 %v1016_v60, %v1015_v56  ;;  %v921_v3 = vadd.f32 %v2214_v19, %v850_v61  ;;  %v953_v4 = vadd.f32 %v2214_v19, %v882_v62 }
  0xfd   :  { %v603_v5 = vpop.f32.mrf.mxu0  ;;  %v731_v6 = vpop.f32.mrf.mxu1 }
  0xfe   :  { %1765 = vst [vmem:[%s2443_s4 + $0x8] sm:$0xff] %v1613_v1   ;;  %1781 = vst [vmem:[%s2443_s4 + $0x88] sm:$0xff] %v1693_v2   ;;  %v851_v7 = vmul.f32 %v2208_v15, %v603_v5  ;;  %v883_v8 = vmul.f32 %v2208_v15, %v731_v6  ;;  %v985_v13 = vmax.f32 %v921_v3, 0.0  ;;  %v1017_v14 = vmax.f32 %v953_v4, 0.0 }
  0xff   :  { %v605_v9 = vpop.f32.mrf.mxu0  ;;  %v733_v10 = vpop.f32.mrf.mxu1 }
 0x100   :  { %v922_v11 = vadd.f32 %v2214_v19, %v851_v7  ;;  %v954_v12 = vadd.f32 %v2214_v19, %v883_v8 }
 0x101   :  { %v608_v16 = vpop.f32.mrf.mxu0  ;;  %v736_v17 = vpop.f32.mrf.mxu1 }
 0x102   :  { %v986_v18 = vmax.f32 %v922_v11, 0.0  ;;  %v1018_v20 = vmax.f32 %v954_v12, 0.0  ;;  %v852_v21 = vmul.f32 %v2208_v15, %v608_v16  ;;  %v884_v22 = vmul.f32 %v2208_v15, %v736_v17 }
 0x103   :  { %v610_v23 = vpop.f32.mrf.mxu0  ;;  %v738_v24 = vpop.f32.mrf.mxu1 }
 0x104   :  { %v1618_v25 = vpack.c.bf16 %v986_v18, %v985_v13  ;;  %v1698_v26 = vpack.c.bf16 %v1018_v20, %v1017_v14  ;;  %v923_v27 = vadd.f32 %v2214_v19, %v852_v21  ;;  %v955_v28 = vadd.f32 %v2214_v19, %v884_v22 }
 0x105   :  { %v611_v29 = vpop.f32.mrf.mxu0  ;;  %v739_v30 = vpop.f32.mrf.mxu1 }
 0x106   :  { %1766 = vst [vmem:[%s2443_s4 + $0x10] sm:$0xff] %v1618_v25   ;;  %1782 = vst [vmem:[%s2443_s4 + $0x90] sm:$0xff] %v1698_v26   ;;  %v853_v31 = vmul.f32 %v2208_v15, %v611_v29  ;;  %v885_v32 = vmul.f32 %v2208_v15, %v739_v30  ;;  %v987_v37 = vmax.f32 %v923_v27, 0.0  ;;  %v1019_v38 = vmax.f32 %v955_v28, 0.0 }
 0x107   :  { %v613_v33 = vpop.f32.mrf.mxu0  ;;  %v741_v34 = vpop.f32.mrf.mxu1 }
 0x108   :  { %v924_v35 = vadd.f32 %v2214_v19, %v853_v31  ;;  %v956_v36 = vadd.f32 %v2214_v19, %v885_v32 }
 0x109   :  { %v616_v39 = vpop.f32.mrf.mxu0  ;;  %v744_v40 = vpop.f32.mrf.mxu1 }
 0x10a   :  { %v988_v41 = vmax.f32 %v924_v35, 0.0  ;;  %v1020_v42 = vmax.f32 %v956_v36, 0.0  ;;  %v854_v43 = vmul.f32 %v2208_v15, %v616_v39  ;;  %v886_v44 = vmul.f32 %v2208_v15, %v744_v40 }
 0x10b   :  { %v618_v45 = vpop.f32.mrf.mxu0  ;;  %v746_v46 = vpop.f32.mrf.mxu1 }
 0x10c   :  { %v1623_v47 = vpack.c.bf16 %v988_v41, %v987_v37  ;;  %v1703_v48 = vpack.c.bf16 %v1020_v42, %v1019_v38  ;;  %v925_v49 = vadd.f32 %v2214_v19, %v854_v43  ;;  %v957_v50 = vadd.f32 %v2214_v19, %v886_v44 }
 0x10d   :  { %v619_v51 = vpop.f32.mrf.mxu0  ;;  %v747_v52 = vpop.f32.mrf.mxu1 }
 0x10e   :  { %1767 = vst [vmem:[%s2443_s4 + $0x18] sm:$0xff] %v1623_v47   ;;  %1783 = vst [vmem:[%s2443_s4 + $0x98] sm:$0xff] %v1703_v48   ;;  %v855_v53 = vmul.f32 %v2208_v15, %v619_v51  ;;  %v887_v54 = vmul.f32 %v2208_v15, %v747_v52  ;;  %v989_v59 = vmax.f32 %v925_v49, 0.0  ;;  %v1021_v60 = vmax.f32 %v957_v50, 0.0 }
 0x10f   :  { %v621_v55 = vpop.f32.mrf.mxu0  ;;  %v749_v56 = vpop.f32.mrf.mxu1 }
 0x110   :  { %v926_v57 = vadd.f32 %v2214_v19, %v855_v53  ;;  %v958_v58 = vadd.f32 %v2214_v19, %v887_v54 }
 0x111   :  { %v624_v61 = vpop.f32.mrf.mxu0  ;;  %v752_v62 = vpop.f32.mrf.mxu1 }
 0x112   :  { %v990_v63 = vmax.f32 %v926_v57, 0.0  ;;  %v1022_v0 = vmax.f32 %v958_v58, 0.0  ;;  %v856_v1 = vmul.f32 %v2208_v15, %v624_v61  ;;  %v888_v2 = vmul.f32 %v2208_v15, %v752_v62 }
 0x113   :  { %v626_v3 = vpop.f32.mrf.mxu0  ;;  %v754_v4 = vpop.f32.mrf.mxu1 }
 0x114   :  { %v1628_v5 = vpack.c.bf16 %v990_v63, %v989_v59  ;;  %v1708_v6 = vpack.c.bf16 %v1022_v0, %v1021_v60  ;;  %v927_v7 = vadd.f32 %v2214_v19, %v856_v1  ;;  %v959_v8 = vadd.f32 %v2214_v19, %v888_v2 }
 0x115   :  { %v627_v9 = vpop.f32.mrf.mxu0  ;;  %v755_v10 = vpop.f32.mrf.mxu1 }
 0x116   :  { %1768 = vst [vmem:[%s2443_s4 + $0x20] sm:$0xff] %v1628_v5   ;;  %1784 = vst [vmem:[%s2443_s4 + $0xa0] sm:$0xff] %v1708_v6   ;;  %v857_v11 = vmul.f32 %v2208_v15, %v627_v9  ;;  %v889_v12 = vmul.f32 %v2208_v15, %v755_v10  ;;  %v991_v18 = vmax.f32 %v927_v7, 0.0  ;;  %v1023_v20 = vmax.f32 %v959_v8, 0.0 }
 0x117   :  { %v629_v13 = vpop.f32.mrf.mxu0  ;;  %v757_v14 = vpop.f32.mrf.mxu1 }
 0x118   :  { %v928_v16 = vadd.f32 %v2214_v19, %v857_v11  ;;  %v960_v17 = vadd.f32 %v2214_v19, %v889_v12 }
 0x119   :  { %v632_v21 = vpop.f32.mrf.mxu0  ;;  %v760_v22 = vpop.f32.mrf.mxu1 }
 0x11a   :  { %v992_v23 = vmax.f32 %v928_v16, 0.0  ;;  %v1024_v24 = vmax.f32 %v960_v17, 0.0  ;;  %v858_v25 = vmul.f32 %v2208_v15, %v632_v21  ;;  %v890_v26 = vmul.f32 %v2208_v15, %v760_v22 }
 0x11b   :  { %v634_v27 = vpop.f32.mrf.mxu0  ;;  %v762_v28 = vpop.f32.mrf.mxu1 }
 0x11c   :  { %v1633_v29 = vpack.c.bf16 %v992_v23, %v991_v18  ;;  %v1713_v30 = vpack.c.bf16 %v1024_v24, %v1023_v20  ;;  %v929_v31 = vadd.f32 %v2214_v19, %v858_v25  ;;  %v961_v32 = vadd.f32 %v2214_v19, %v890_v26 }
 0x11d   :  { %v635_v33 = vpop.f32.mrf.mxu0  ;;  %v763_v34 = vpop.f32.mrf.mxu1 }
 0x11e   :  { %1769 = vst [vmem:[%s2443_s4 + $0x28] sm:$0xff] %v1633_v29   ;;  %1785 = vst [vmem:[%s2443_s4 + $0xa8] sm:$0xff] %v1713_v30   ;;  %v859_v35 = vmul.f32 %v2208_v15, %v635_v33  ;;  %v891_v36 = vmul.f32 %v2208_v15, %v763_v34  ;;  %v993_v41 = vmax.f32 %v929_v31, 0.0  ;;  %v1025_v42 = vmax.f32 %v961_v32, 0.0 }
 0x11f   :  { %v637_v37 = vpop.f32.mrf.mxu0  ;;  %v765_v38 = vpop.f32.mrf.mxu1 }
 0x120   :  { %v930_v39 = vadd.f32 %v2214_v19, %v859_v35  ;;  %v962_v40 = vadd.f32 %v2214_v19, %v891_v36 }
 0x121   :  { %v640_v43 = vpop.f32.mrf.mxu0  ;;  %v768_v44 = vpop.f32.mrf.mxu1 }
 0x122   :  { %v994_v45 = vmax.f32 %v930_v39, 0.0  ;;  %v1026_v46 = vmax.f32 %v962_v40, 0.0  ;;  %v860_v47 = vmul.f32 %v2208_v15, %v640_v43  ;;  %v892_v48 = vmul.f32 %v2208_v15, %v768_v44 }
 0x123   :  { %v642_v49 = vpop.f32.mrf.mxu0  ;;  %v770_v50 = vpop.f32.mrf.mxu1 }
 0x124   :  { %v1638_v51 = vpack.c.bf16 %v994_v45, %v993_v41  ;;  %v1718_v52 = vpack.c.bf16 %v1026_v46, %v1025_v42  ;;  %v931_v53 = vadd.f32 %v2214_v19, %v860_v47  ;;  %v963_v54 = vadd.f32 %v2214_v19, %v892_v48 }
 0x125   :  { %v643_v55 = vpop.f32.mrf.mxu0  ;;  %v771_v56 = vpop.f32.mrf.mxu1 }
 0x126   :  { %1770 = vst [vmem:[%s2443_s4 + $0x30] sm:$0xff] %v1638_v51   ;;  %1786 = vst [vmem:[%s2443_s4 + $0xb0] sm:$0xff] %v1718_v52   ;;  %v861_v57 = vmul.f32 %v2208_v15, %v643_v55  ;;  %v893_v58 = vmul.f32 %v2208_v15, %v771_v56  ;;  %v995_v63 = vmax.f32 %v931_v53, 0.0  ;;  %v1027_v0 = vmax.f32 %v963_v54, 0.0 }
 0x127   :  { %v645_v59 = vpop.f32.mrf.mxu0  ;;  %v773_v60 = vpop.f32.mrf.mxu1 }
 0x128   :  { %v932_v61 = vadd.f32 %v2214_v19, %v861_v57  ;;  %v964_v62 = vadd.f32 %v2214_v19, %v893_v58 }
 0x129   :  { %v648_v1 = vpop.f32.mrf.mxu0  ;;  %v776_v2 = vpop.f32.mrf.mxu1 }
 0x12a   :  { %v996_v3 = vmax.f32 %v932_v61, 0.0  ;;  %v1028_v4 = vmax.f32 %v964_v62, 0.0  ;;  %v862_v5 = vmul.f32 %v2208_v15, %v648_v1  ;;  %v894_v6 = vmul.f32 %v2208_v15, %v776_v2 }
 0x12b   :  { %v650_v7 = vpop.f32.mrf.mxu0  ;;  %v778_v8 = vpop.f32.mrf.mxu1 }
 0x12c   :  { %v1643_v9 = vpack.c.bf16 %v996_v3, %v995_v63  ;;  %v1723_v10 = vpack.c.bf16 %v1028_v4, %v1027_v0  ;;  %v933_v11 = vadd.f32 %v2214_v19, %v862_v5  ;;  %v965_v12 = vadd.f32 %v2214_v19, %v894_v6 }
 0x12d   :  { %v651_v13 = vpop.f32.mrf.mxu0  ;;  %v779_v14 = vpop.f32.mrf.mxu1 }
 0x12e   :  { %1771 = vst [vmem:[%s2443_s4 + $0x38] sm:$0xff] %v1643_v9   ;;  %1787 = vst [vmem:[%s2443_s4 + $0xb8] sm:$0xff] %v1723_v10   ;;  %v863_v16 = vmul.f32 %v2208_v15, %v651_v13  ;;  %v895_v17 = vmul.f32 %v2208_v15, %v779_v14  ;;  %v997_v23 = vmax.f32 %v933_v11, 0.0  ;;  %v1029_v24 = vmax.f32 %v965_v12, 0.0 }
 0x12f   :  { %v653_v18 = vpop.f32.mrf.mxu0  ;;  %v781_v20 = vpop.f32.mrf.mxu1 }
 0x130   :  { %v934_v21 = vadd.f32 %v2214_v19, %v863_v16  ;;  %v966_v22 = vadd.f32 %v2214_v19, %v895_v17 }
 0x131   :  { %v656_v25 = vpop.f32.mrf.mxu0  ;;  %v784_v26 = vpop.f32.mrf.mxu1 }
 0x132   :  { %v998_v27 = vmax.f32 %v934_v21, 0.0  ;;  %v1030_v28 = vmax.f32 %v966_v22, 0.0  ;;  %v864_v29 = vmul.f32 %v2208_v15, %v656_v25  ;;  %v896_v30 = vmul.f32 %v2208_v15, %v784_v26 }
 0x133   :  { %v658_v31 = vpop.f32.mrf.mxu0  ;;  %v786_v32 = vpop.f32.mrf.mxu1 }
 0x134   :  { %v1648_v33 = vpack.c.bf16 %v998_v27, %v997_v23  ;;  %v1728_v34 = vpack.c.bf16 %v1030_v28, %v1029_v24  ;;  %v935_v35 = vadd.f32 %v2214_v19, %v864_v29  ;;  %v967_v36 = vadd.f32 %v2214_v19, %v896_v30 }
 0x135   :  { %v659_v37 = vpop.f32.mrf.mxu0  ;;  %v787_v38 = vpop.f32.mrf.mxu1 }
 0x136   :  { %1772 = vst [vmem:[%s2443_s4 + $0x40] sm:$0xff] %v1648_v33   ;;  %1788 = vst [vmem:[%s2443_s4 + $0xc0] sm:$0xff] %v1728_v34   ;;  %v865_v39 = vmul.f32 %v2208_v15, %v659_v37  ;;  %v897_v40 = vmul.f32 %v2208_v15, %v787_v38  ;;  %v999_v45 = vmax.f32 %v935_v35, 0.0  ;;  %v1031_v46 = vmax.f32 %v967_v36, 0.0 }
 0x137   :  { %v661_v41 = vpop.f32.mrf.mxu0  ;;  %v789_v42 = vpop.f32.mrf.mxu1 }
 0x138   :  { %v936_v43 = vadd.f32 %v2214_v19, %v865_v39  ;;  %v968_v44 = vadd.f32 %v2214_v19, %v897_v40 }
 0x139   :  { %v664_v47 = vpop.f32.mrf.mxu0  ;;  %v792_v48 = vpop.f32.mrf.mxu1 }
 0x13a   :  { %v1000_v49 = vmax.f32 %v936_v43, 0.0  ;;  %v1032_v50 = vmax.f32 %v968_v44, 0.0  ;;  %v866_v51 = vmul.f32 %v2208_v15, %v664_v47  ;;  %v898_v52 = vmul.f32 %v2208_v15, %v792_v48 }
 0x13b   :  { %v666_v53 = vpop.f32.mrf.mxu0  ;;  %v794_v54 = vpop.f32.mrf.mxu1 }
 0x13c   :  { %v1653_v55 = vpack.c.bf16 %v1000_v49, %v999_v45  ;;  %v1733_v56 = vpack.c.bf16 %v1032_v50, %v1031_v46  ;;  %v937_v57 = vadd.f32 %v2214_v19, %v866_v51  ;;  %v969_v58 = vadd.f32 %v2214_v19, %v898_v52 }
 0x13d   :  { %v667_v59 = vpop.f32.mrf.mxu0  ;;  %v795_v60 = vpop.f32.mrf.mxu1 }
 0x13e   :  { %1773 = vst [vmem:[%s2443_s4 + $0x48] sm:$0xff] %v1653_v55   ;;  %1789 = vst [vmem:[%s2443_s4 + $0xc8] sm:$0xff] %v1733_v56   ;;  %v867_v61 = vmul.f32 %v2208_v15, %v667_v59  ;;  %v899_v62 = vmul.f32 %v2208_v15, %v795_v60  ;;  %v1001_v3 = vmax.f32 %v937_v57, 0.0  ;;  %v1033_v4 = vmax.f32 %v969_v58, 0.0 }
 0x13f   :  { %v669_v63 = vpop.f32.mrf.mxu0  ;;  %v797_v0 = vpop.f32.mrf.mxu1 }
 0x140   :  { %v938_v1 = vadd.f32 %v2214_v19, %v867_v61  ;;  %v970_v2 = vadd.f32 %v2214_v19, %v899_v62 }
 0x141   :  { %v672_v5 = vpop.f32.mrf.mxu0  ;;  %v800_v6 = vpop.f32.mrf.mxu1 }
 0x142   :  { %v1002_v7 = vmax.f32 %v938_v1, 0.0  ;;  %v1034_v8 = vmax.f32 %v970_v2, 0.0  ;;  %v868_v9 = vmul.f32 %v2208_v15, %v672_v5  ;;  %v900_v10 = vmul.f32 %v2208_v15, %v800_v6 }
 0x143   :  { %v674_v11 = vpop.f32.mrf.mxu0  ;;  %v802_v12 = vpop.f32.mrf.mxu1 }
 0x144   :  { %v1658_v13 = vpack.c.bf16 %v1002_v7, %v1001_v3  ;;  %v1738_v14 = vpack.c.bf16 %v1034_v8, %v1033_v4  ;;  %v939_v16 = vadd.f32 %v2214_v19, %v868_v9  ;;  %v971_v17 = vadd.f32 %v2214_v19, %v900_v10 }
 0x145   :  { %v675_v18 = vpop.f32.mrf.mxu0  ;;  %v803_v20 = vpop.f32.mrf.mxu1 }
 0x146   :  { %1774 = vst [vmem:[%s2443_s4 + $0x50] sm:$0xff] %v1658_v13   ;;  %1790 = vst [vmem:[%s2443_s4 + $0xd0] sm:$0xff] %v1738_v14   ;;  %v869_v21 = vmul.f32 %v2208_v15, %v675_v18  ;;  %v901_v22 = vmul.f32 %v2208_v15, %v803_v20  ;;  %v1003_v27 = vmax.f32 %v939_v16, 0.0  ;;  %v1035_v28 = vmax.f32 %v971_v17, 0.0 }
 0x147   :  { %v677_v23 = vpop.f32.mrf.mxu0  ;;  %v805_v24 = vpop.f32.mrf.mxu1 }
 0x148   :  { %v940_v25 = vadd.f32 %v2214_v19, %v869_v21  ;;  %v972_v26 = vadd.f32 %v2214_v19, %v901_v22 }
 0x149   :  { %v680_v29 = vpop.f32.mrf.mxu0  ;;  %v808_v30 = vpop.f32.mrf.mxu1 }
 0x14a   :  { %v1004_v31 = vmax.f32 %v940_v25, 0.0  ;;  %v1036_v32 = vmax.f32 %v972_v26, 0.0  ;;  %v870_v33 = vmul.f32 %v2208_v15, %v680_v29  ;;  %v902_v34 = vmul.f32 %v2208_v15, %v808_v30 }
 0x14b   :  { %v682_v35 = vpop.f32.mrf.mxu0  ;;  %v810_v36 = vpop.f32.mrf.mxu1 }
 0x14c   :  { %v1663_v37 = vpack.c.bf16 %v1004_v31, %v1003_v27  ;;  %v1743_v38 = vpack.c.bf16 %v1036_v32, %v1035_v28  ;;  %v941_v39 = vadd.f32 %v2214_v19, %v870_v33  ;;  %v973_v40 = vadd.f32 %v2214_v19, %v902_v34 }
 0x14d   :  { %v683_v41 = vpop.f32.mrf.mxu0  ;;  %v811_v42 = vpop.f32.mrf.mxu1 }
 0x14e   :  { %1775 = vst [vmem:[%s2443_s4 + $0x58] sm:$0xff] %v1663_v37   ;;  %1791 = vst [vmem:[%s2443_s4 + $0xd8] sm:$0xff] %v1743_v38   ;;  %v871_v43 = vmul.f32 %v2208_v15, %v683_v41  ;;  %v903_v44 = vmul.f32 %v2208_v15, %v811_v42  ;;  %v1005_v49 = vmax.f32 %v941_v39, 0.0  ;;  %v1037_v50 = vmax.f32 %v973_v40, 0.0 }
 0x14f   :  { %v685_v45 = vpop.f32.mrf.mxu0  ;;  %v813_v46 = vpop.f32.mrf.mxu1 }
 0x150   :  { %v942_v47 = vadd.f32 %v2214_v19, %v871_v43  ;;  %v974_v48 = vadd.f32 %v2214_v19, %v903_v44 }
 0x151   :  { %v688_v51 = vpop.f32.mrf.mxu0  ;;  %v816_v52 = vpop.f32.mrf.mxu1 }
 0x152   :  { %v1006_v53 = vmax.f32 %v942_v47, 0.0  ;;  %v1038_v54 = vmax.f32 %v974_v48, 0.0  ;;  %v872_v55 = vmul.f32 %v2208_v15, %v688_v51  ;;  %v904_v56 = vmul.f32 %v2208_v15, %v816_v52 }
 0x153   :  { %v690_v57 = vpop.f32.mrf.mxu0  ;;  %v818_v58 = vpop.f32.mrf.mxu1 }
 0x154   :  { %v1668_v59 = vpack.c.bf16 %v1006_v53, %v1005_v49  ;;  %v1748_v60 = vpack.c.bf16 %v1038_v54, %v1037_v50  ;;  %v943_v61 = vadd.f32 %v2214_v19, %v872_v55  ;;  %v975_v62 = vadd.f32 %v2214_v19, %v904_v56 }
 0x155   :  { %v691_v63 = vpop.f32.mrf.mxu0  ;;  %v819_v0 = vpop.f32.mrf.mxu1 }
 0x156   :  { %1776 = vst [vmem:[%s2443_s4 + $0x60] sm:$0xff] %v1668_v59   ;;  %1792 = vst [vmem:[%s2443_s4 + $0xe0] sm:$0xff] %v1748_v60   ;;  %v873_v1 = vmul.f32 %v2208_v15, %v691_v63  ;;  %v905_v2 = vmul.f32 %v2208_v15, %v819_v0  ;;  %v1007_v7 = vmax.f32 %v943_v61, 0.0  ;;  %v1039_v8 = vmax.f32 %v975_v62, 0.0 }
 0x157   :  { %v693_v3 = vpop.f32.mrf.mxu0  ;;  %v821_v4 = vpop.f32.mrf.mxu1 }
 0x158   :  { %v944_v5 = vadd.f32 %v2214_v19, %v873_v1  ;;  %v976_v6 = vadd.f32 %v2214_v19, %v905_v2 }
 0x159   :  { %v696_v9 = vpop.f32.mrf.mxu0  ;;  %v824_v10 = vpop.f32.mrf.mxu1 }
 0x15a   :  { %v1008_v11 = vmax.f32 %v944_v5, 0.0  ;;  %v1040_v12 = vmax.f32 %v976_v6, 0.0  ;;  %v874_v13 = vmul.f32 %v2208_v15, %v696_v9  ;;  %v906_v14 = vmul.f32 %v2208_v15, %v824_v10 }
 0x15b   :  { %v698_v16 = vpop.f32.mrf.mxu0  ;;  %v826_v17 = vpop.f32.mrf.mxu1 }
 0x15c   :  { %v1673_v18 = vpack.c.bf16 %v1008_v11, %v1007_v7  ;;  %v1753_v20 = vpack.c.bf16 %v1040_v12, %v1039_v8  ;;  %v945_v21 = vadd.f32 %v2214_v19, %v874_v13  ;;  %v977_v22 = vadd.f32 %v2214_v19, %v906_v14 }
 0x15d   :  { %v699_v23 = vpop.f32.mrf.mxu0  ;;  %v827_v24 = vpop.f32.mrf.mxu1 }
 0x15e   :  { %1777 = vst [vmem:[%s2443_s4 + $0x68] sm:$0xff] %v1673_v18   ;;  %1793 = vst [vmem:[%s2443_s4 + $0xe8] sm:$0xff] %v1753_v20   ;;  %v875_v25 = vmul.f32 %v2208_v15, %v699_v23  ;;  %v907_v26 = vmul.f32 %v2208_v15, %v827_v24  ;;  %v1009_v31 = vmax.f32 %v945_v21, 0.0  ;;  %v1041_v32 = vmax.f32 %v977_v22, 0.0 }
 0x15f   :  { %v701_v27 = vpop.f32.mrf.mxu0  ;;  %v829_v28 = vpop.f32.mrf.mxu1 }
 0x160   :  { %v946_v29 = vadd.f32 %v2214_v19, %v875_v25  ;;  %v978_v30 = vadd.f32 %v2214_v19, %v907_v26 }
 0x161   :  { %v704_v33 = vpop.f32.mrf.mxu0  ;;  %v832_v34 = vpop.f32.mrf.mxu1 }
 0x162   :  { %v1010_v35 = vmax.f32 %v946_v29, 0.0  ;;  %v1042_v36 = vmax.f32 %v978_v30, 0.0  ;;  %v876_v37 = vmul.f32 %v2208_v15, %v704_v33  ;;  %v908_v38 = vmul.f32 %v2208_v15, %v832_v34 }
 0x163   :  { %v706_v39 = vpop.f32.mrf.mxu0  ;;  %v834_v40 = vpop.f32.mrf.mxu1 }
 0x164   :  { %v1678_v41 = vpack.c.bf16 %v1010_v35, %v1009_v31  ;;  %v1758_v42 = vpack.c.bf16 %v1042_v36, %v1041_v32  ;;  %v947_v45 = vadd.f32 %v2214_v19, %v876_v37  ;;  %v979_v46 = vadd.f32 %v2214_v19, %v908_v38 }
 0x165   :  { %v707_v43 = vpop.f32.mrf.mxu0  ;;  %v835_v44 = vpop.f32.mrf.mxu1 }
 0x166   :  { %1778 = vst [vmem:[%s2443_s4 + $0x70] sm:$0xff] %v1678_v41   ;;  %1794 = vst [vmem:[%s2443_s4 + $0xf0] sm:$0xff] %v1758_v42   ;;  %v877_v47 = vmul.f32 %v2208_v15, %v707_v43  ;;  %v909_v48 = vmul.f32 %v2208_v15, %v835_v44  ;;  %v1011_v53 = vmax.f32 %v947_v45, 0.0  ;;  %v1043_v54 = vmax.f32 %v979_v46, 0.0 }
 0x167   :  { %v709_v49 = vpop.f32.mrf.mxu0  ;;  %v837_v50 = vpop.f32.mrf.mxu1 }
 0x168   :  { %v948_v51 = vadd.f32 %v2214_v19, %v877_v47  ;;  %v980_v52 = vadd.f32 %v2214_v19, %v909_v48 }
 0x16a   :  { %v1012_v55 = vmax.f32 %v948_v51, 0.0  ;;  %v1044_v56 = vmax.f32 %v980_v52, 0.0 }
 0x16c   :  { %v1683_v57 = vpack.c.bf16 %v1012_v55, %v1011_v53  ;;  %v1763_v58 = vpack.c.bf16 %v1044_v56, %v1043_v54 }
 0x16e   :  { %1779 = vst [vmem:[%s2443_s4 + $0x78] sm:$0xff] %v1683_v57   ;;  %1795 = vst [vmem:[%s2443_s4 + $0xf8] sm:$0xff] %v1763_v58  }

// kernel: embed_forward.7
= control target key start
LH: loop header
LB: loop body
LE: loop exit
PB: predicated region body
PF: predicated region fallthrough
CT: control target
= control target key end

     0   :  { %s375_s1 = inlined_call_operand.vmem [shape: bf16[256,128], index: 1, kind: input, shape index: {}]   ;;  %s376_s0 = inlined_call_operand.vmem [shape: bf16[16,256], index: 0, kind: input, shape index: {}]   ;;  %s377_s2 = inlined_call_operand.vmem [shape: f32[1,128], index: 2, kind: input, shape index: {}]   ;;  %s378_s3 = inlined_call_operand.vmem [shape: f32[1,128], index: 3, kind: input, shape index: {}]   ;;  %s379_s4 = inlined_call_operand.vmem [shape: f32[16,128], index: 4, kind: output, shape index: {}]  }
   0x1   :  { %v265_v0 = vld [vmem:[%s375_s1 + $0x78] sm:$0xff]   ;;  %v267_v2 = vld [vmem:[%s375_s1 + $0x70] sm:$0xff]   ;;  %v269_v4 = vld [vmem:[%s375_s1 + $0x68] sm:$0xff]  }
   0x2   :  { %v266_v1 = vld [vmem:[%s375_s1 + $0x38] sm:$0xff]   ;;  %243 = vmatprep.subr.bf16.mxu0 %v265_v0  ;;  %v268_v3 = vld [vmem:[%s375_s1 + $0x30] sm:$0xff]   ;;  %v270_v5 = vld [vmem:[%s375_s1 + $0x28] sm:$0xff]  }
   0x3   :  { %244 = vmatpush3.bf16.msra.mxu0 %v266_v1  ;;  %v271_v6 = vld [vmem:[%s375_s1 + $0x60] sm:$0xff]   ;;  %v273_v8 = vld [vmem:[%s375_s1 + $0x58] sm:$0xff]   ;;  %v275_v10 = vld [vmem:[%s375_s1 + $0x50] sm:$0xff]  }
   0x4   :  { %245 = vmatprep.subr.bf16.mxu0 %v267_v2  ;;  %v272_v7 = vld [vmem:[%s375_s1 + $0x20] sm:$0xff]   ;;  %v274_v9 = vld [vmem:[%s375_s1 + $0x18] sm:$0xff]   ;;  %v276_v12 = vld [vmem:[%s375_s1 + $0x10] sm:$0xff]  }
   0x5   :  { %v283_v11 = vld [vmem:[%s376_s0 + $0x4] ss:$8 sps:$4 sm:$0xff]   ;;  %v281_v17 = vld [vmem:[%s376_s0] ss:$8 sps:$4 sm:$0xff]  }
   0x6   :  { %190 = vmatprep.mubr.bf16.mxu0 %v283_v11  ;;  %v277_v13 = vld [vmem:[%s375_s1 + $0x48] sm:$0xff]   ;;  %v279_v15 = vld [vmem:[%s375_s1 + $0x40] sm:$0xff]  }
   0x7   :  { %246 = vmatpush3.bf16.msra.mxu0 %v268_v3  ;;  %v278_v14 = vld [vmem:[%s375_s1 + $0x8] sm:$0xff]   ;;  %v280_v16 = vld [vmem:[%s375_s1] sm:$0xff]  }
   0x8   :  { %247 = vmatprep.subr.bf16.mxu0 %v269_v4  ;;  %v241_v20 = vld [vmem:[%s377_s2] ss:$0 sm:$0xff] }
   0x9   :  { %v242_v22 = vld [vmem:[%s378_s3] ss:$0 sm:$0xff] }
   0xb   :  { %248 = vmatpush3.bf16.msra.mxu0 %v270_v5 }
   0xc   :  { %249 = vmatprep.subr.bf16.mxu0 %v271_v6 }
   0xf   :  { %250 = vmatpush3.bf16.msra.mxu0 %v272_v7 }
  0x10   :  { %251 = vmatprep.subr.bf16.mxu0 %v273_v8 }
  0x13   :  { %252 = vmatpush3.bf16.msra.mxu0 %v274_v9 }
  0x14   :  { %253 = vmatprep.subr.bf16.mxu0 %v275_v10 }
  0x17   :  { %254 = vmatpush3.bf16.msra.mxu0 %v276_v12 }
  0x18   :  { %255 = vmatprep.subr.bf16.mxu0 %v277_v13 }
  0x1b   :  { %256 = vmatpush3.bf16.msra.mxu0 %v278_v14 }
  0x1c   :  { %257 = vmatprep.subr.bf16.mxu0 %v279_v15 }
  0x1f   :  { %258 = vmatpush3.bf16.msra.mxu0 %v280_v16 }
  0x22   :  { %191 = vmatmul.mubr.bf16.vlgmr.msra.gmra.mxu0 %v281_v17 }
  0xe2   :  { %v259_v18 = vpop.f32.mrf.mxu0 }
  0xe4   :  { %v260_v19 = vpop.f32.mrf.mxu0 }
  0xe5   :  { %v261_v21 = vadd.f32 %v260_v19, %v259_v18 }
  0xe6   :  { %v262_v23 = vpop.f32.mrf.mxu0 }
  0xe7   :  { %v206_v24 = vmul.f32 %v261_v21, %v241_v20 }
  0xe8   :  { %v263_v25 = vpop.f32.mrf.mxu0 }
  0xe9   :  { %v215_v26 = vadd.f32 %v242_v22, %v206_v24  ;;  %v264_v27 = vadd.f32 %v263_v25, %v262_v23 }
  0xeb   :  { %217 = vst [vmem:[%s379_s4] sm:$0xff] %v215_v26  ;;  %v207_v28 = vmul.f32 %v264_v27, %v241_v20 }
  0xed   :  { %v216_v29 = vadd.f32 %v242_v22, %v207_v28 }
  0xef   :  { %218 = vst [vmem:[%s379_s4 + $0x8] sm:$0xff] %v216_v29 }

// kernel: embed_forward.6
= control target key start
LH: loop header
LB: loop body
LE: loop exit
PB: predicated region body
PF: predicated region fallthrough
CT: control target
= control target key end

     0   :  { %s6008_s15 = smov 0   ;;  %s6010_s16 = smov 0   ;;  %s6815_s0 = inlined_call_operand.vmem [shape: bf16[16,8192], index: 0, kind: input, shape index: {}]   ;;  %s6816_s1 = inlined_call_operand.vmem [shape: bf16[8192,256], index: 1, kind: input, shape index: {}]   ;;  %s6817_s2 = inlined_call_operand.vmem [shape: f32[1,256], index: 2, kind: input, shape index: {}]   ;;  %s6818_s3 = inlined_call_operand.vmem [shape: f32[1,256], index: 3, kind: input, shape index: {}]   ;;  %s6819_s4 = inlined_call_operand.vmem [shape: bf16[16,256], index: 4, kind: output, shape index: {}]  }
   0x1   :  { %s6012_s17 = smov 0   ;;  %s6014_s18 = smov 0  }
   0x2   :  { %s6016_s19 = smov 0  }
   0x3 LB: > { %s26_s20 = sadd.s32 1, %s5976_s18  ;;  %p49_p1 = scmp.ne.s32.totalorder %s5968_s16, %s5964_s15  ;;  %s5980_s19 = sphi %s6016_s19, %s14_s19   ;;  %s5976_s18 = sphi %s6014_s18, %s6823_s18   ;;  %s5972_s17 = sphi %s6012_s17, %s6822_s17   ;;  %s5968_s16 = sphi %s6010_s16, %s6821_s16   ;;  %s5964_s15 = sphi %s6008_s15, %s6820_s15  }
   0x4   : > { %p27_p0 = scmp.ge.s32.totalorder %s26_s20, 2  ;;  %p50_p2 = scmp.eq.s32.totalorder %s5980_s19, 0 }
   0x5   : > { %s42_s22 = sadd.s32 1, %s5968_s16  ;;  %p4568_p5 = scmp.ge.s32.totalorder %s5980_s19, 2 }
   0x6   : > { %s6825_s20 = smov (%p27_p0, %s26_s20), 0  ;;  %p51_p3 = por %p50_p2, %p49_p1 }
   0x7   : > { %s38_s21 = ssub.s32 %s5976_s18, %s6825_s20  ;;  %199 = sbr.rel (%p4568_p5) target bundleno = 32 (0x20), region = 24 }
   0x8   : > { %p40_p4 = scmp.eq.s32.totalorder %s38_s21, 0 }
   0xa   : > { %s6043_s23 = scalar_select %p40_p4, %s5968_s16, %s42_s22  }
   0xc   : > { %202 = sbr.rel (!%p51_p3) target bundleno = 32 (0x20), region = 28  ;;  %s204_s24 = sand.u32 (%p51_p3), 1, %s5968_s16  }
   0xd   : > { %s5129_s25 = sshll.u32 (%p51_p3), %s5976_s18, 7  ;;  %s4569_s26 = sshll.u32 (%p51_p3), %s204_s24, 8 }
   0xe   : > { %s6051_s29 = scalar_lea.vmem (%p51_p3), %s6815_s0, %s5129_s25  ;;  %s6056_s30 = scalar_lea.vmem (%p51_p3), [#allocation3], %s4569_s26 }
   0xf   : > { %v225_v0 = vld [vmem:[%s6051_s29] sm:$0xff] (%p51_p3)  ;;  %v227_v1 = vld [vmem:[%s6051_s29 + $0x8] sm:$0xff] (%p51_p3)  ;;  %v229_v2 = vld [vmem:[%s6051_s29 + $0x10] sm:$0xff] (%p51_p3) }
  0x10   : > { %226 = vst [vmem:[%s6056_s30] sm:$0xff] (%p51_p3), %v225_v0  ;;  %228 = vst [vmem:[%s6056_s30 + $0x8] sm:$0xff] (%p51_p3), %v227_v1  ;;  %v231_v3 = vld [vmem:[%s6051_s29 + $0x18] sm:$0xff] (%p51_p3)  ;;  %v233_v4 = vld [vmem:[%s6051_s29 + $0x20] sm:$0xff] (%p51_p3) }
  0x11   : > { %230 = vst [vmem:[%s6056_s30 + $0x10] sm:$0xff] %v229_v2  ;;  %v235_v5 = vld [vmem:[%s6051_s29 + $0x28] sm:$0xff]  ;;  %232 = vst [vmem:[%s6056_s30 + $0x18] sm:$0xff] %v231_v3  ;;  %v237_v6 = vld [vmem:[%s6051_s29 + $0x30] sm:$0xff] }
  0x12   : > { %234 = vst [vmem:[%s6056_s30 + $0x20] sm:$0xff] %v233_v4  ;;  %236 = vst [vmem:[%s6056_s30 + $0x28] sm:$0xff] %v235_v5  ;;  %v239_v7 = vld [vmem:[%s6051_s29 + $0x38] sm:$0xff]  ;;  %v241_v8 = vld [vmem:[%s6051_s29 + $0x40] sm:$0xff] }
  0x13   : > { %238 = vst [vmem:[%s6056_s30 + $0x30] sm:$0xff] %v237_v6  ;;  %240 = vst [vmem:[%s6056_s30 + $0x38] sm:$0xff] %v239_v7  ;;  %v243_v9 = vld [vmem:[%s6051_s29 + $0x48] sm:$0xff]  ;;  %v245_v10 = vld [vmem:[%s6051_s29 + $0x50] sm:$0xff] }
  0x14   : > { %242 = vst [vmem:[%s6056_s30 + $0x40] sm:$0xff] %v241_v8  ;;  %v247_v11 = vld [vmem:[%s6051_s29 + $0x58] sm:$0xff]  ;;  %244 = vst [vmem:[%s6056_s30 + $0x48] sm:$0xff] %v243_v9  ;;  %v249_v12 = vld [vmem:[%s6051_s29 + $0x60] sm:$0xff] }
  0x15   : > { %246 = vst [vmem:[%s6056_s30 + $0x50] sm:$0xff] %v245_v10  ;;  %248 = vst [vmem:[%s6056_s30 + $0x58] sm:$0xff] %v247_v11  ;;  %v251_v13 = vld [vmem:[%s6051_s29 + $0x68] sm:$0xff]  ;;  %v253_v14 = vld [vmem:[%s6051_s29 + $0x70] sm:$0xff] }
  0x16   : > { %250 = vst [vmem:[%s6056_s30 + $0x60] sm:$0xff] %v249_v12  ;;  %252 = vst [vmem:[%s6056_s30 + $0x68] sm:$0xff] %v251_v13  ;;  %v255_v15 = vld [vmem:[%s6051_s29 + $0x78] sm:$0xff]  ;;  %v257_v16 = vld [vmem:[%s6051_s29 + $0x100] sm:$0xff] }
  0x17   : > { %254 = vst [vmem:[%s6056_s30 + $0x70] sm:$0xff] %v253_v14  ;;  %v259_v17 = vld [vmem:[%s6051_s29 + $0x108] sm:$0xff]  ;;  %256 = vst [vmem:[%s6056_s30 + $0x78] sm:$0xff] %v255_v15  ;;  %v261_v18 = vld [vmem:[%s6051_s29 + $0x110] sm:$0xff] }
  0x18   : > { %258 = vst [vmem:[%s6056_s30 + $0x80] sm:$0xff] %v257_v16  ;;  %260 = vst [vmem:[%s6056_s30 + $0x88] sm:$0xff] %v259_v17  ;;  %v263_v19 = vld [vmem:[%s6051_s29 + $0x118] sm:$0xff]  ;;  %v265_v20 = vld [vmem:[%s6051_s29 + $0x120] sm:$0xff] }
  0x19   : > { %262 = vst [vmem:[%s6056_s30 + $0x90] sm:$0xff] %v261_v18  ;;  %264 = vst [vmem:[%s6056_s30 + $0x98] sm:$0xff] %v263_v19  ;;  %v267_v21 = vld [vmem:[%s6051_s29 + $0x128] sm:$0xff]  ;;  %v269_v22 = vld [vmem:[%s6051_s29 + $0x130] sm:$0xff] }
  0x1a   : > { %266 = vst [vmem:[%s6056_s30 + $0xa0] sm:$0xff] %v265_v20  ;;  %v271_v23 = vld [vmem:[%s6051_s29 + $0x138] sm:$0xff]  ;;  %268 = vst [vmem:[%s6056_s30 + $0xa8] sm:$0xff] %v267_v21  ;;  %v273_v24 = vld [vmem:[%s6051_s29 + $0x140] sm:$0xff] }
  0x1b   : > { %270 = vst [vmem:[%s6056_s30 + $0xb0] sm:$0xff] %v269_v22  ;;  %272 = vst [vmem:[%s6056_s30 + $0xb8] sm:$0xff] %v271_v23  ;;  %v275_v25 = vld [vmem:[%s6051_s29 + $0x148] sm:$0xff]  ;;  %v277_v26 = vld [vmem:[%s6051_s29 + $0x150] sm:$0xff] }
  0x1c   : > { %274 = vst [vmem:[%s6056_s30 + $0xc0] sm:$0xff] %v273_v24  ;;  %276 = vst [vmem:[%s6056_s30 + $0xc8] sm:$0xff] %v275_v25  ;;  %v279_v27 = vld [vmem:[%s6051_s29 + $0x158] sm:$0xff]  ;;  %v281_v28 = vld [vmem:[%s6051_s29 + $0x160] sm:$0xff] }
  0x1d   : > { %278 = vst [vmem:[%s6056_s30 + $0xd0] sm:$0xff] %v277_v26  ;;  %v283_v29 = vld [vmem:[%s6051_s29 + $0x168] sm:$0xff]  ;;  %280 = vst [vmem:[%s6056_s30 + $0xd8] sm:$0xff] %v279_v27  ;;  %v285_v30 = vld [vmem:[%s6051_s29 + $0x170] sm:$0xff] }
  0x1e   : > { %282 = vst [vmem:[%s6056_s30 + $0xe0] sm:$0xff] %v281_v28  ;;  %284 = vst [vmem:[%s6056_s30 + $0xe8] sm:$0xff] %v283_v29  ;;  %v287_v31 = vld [vmem:[%s6051_s29 + $0x178] sm:$0xff] }
  0x1f   : > { %286 = vst [vmem:[%s6056_s30 + $0xf0] sm:$0xff] %v285_v30  ;;  %288 = vst [vmem:[%s6056_s30 + $0xf8] sm:$0xff] %v287_v31 }
  0x20 PF: > { %p4572_p6 = scmp.ge.s32.totalorder %s5980_s19, 1  ;;  %p308_p7 = scmp.lt.s32.totalorder %s5980_s19, 3 }
  0x22   : > { %p309_p8 = pnand %p4572_p6, %p308_p7 }
  0x23   : > { %s315_s5 = sand.u32 (!%p309_p8), 1, %s5964_s15   ;;  %s4574_s6 = sshll.u32 (!%p309_p8), %s5972_s17, 9 }
  0x24   : > { %312 = sbr.rel (%p309_p8) target bundleno = 785 (0x311), region = 55  ;;  %s4573_s7 = sshll.u32 (!%p309_p8), %s315_s5, 8 }
  0x25   : > { %p367_p9 = scmp.lt.s32.totalorder (!%p309_p8), %s4574_s6, 1023  ;;  %s6128_s12 = scalar_lea.vmem (!%p309_p8), [#allocation3], %s4573_s7 }
  0x26   : > { %p4577_p10 = scmp.ne.s32.totalorder (!%p309_p8), %s5972_s17, 0 }
  0x29   : > { %s6827_s6 = smov (!%p367_p9, %s4574_s6), 1023  ;;  %402 = sbr.rel (%p4577_p10) target bundleno = 49 (0x31), region = 63 }
  0x2a   : > { %s5130_s8 = sshll.u32 %s6827_s6, 3 }
  0x2b   : > { %s6126_s11 = scalar_lea.vmem %s6816_s1, %s5130_s8 }
  0x2e   : > { %v5982_v32 = vmov 0.0  }
  0x2f   : > { %403 = vst [vmem:[#allocation2 + $0x10] sm:$0xff] %v5982_v32  ;;  %404 = vst [vmem:[#allocation2] sm:$0xff] %v5982_v32 }
  0x30   : > { %405 = vst [vmem:[#allocation2 + $0x18] sm:$0xff] %v5982_v32  ;;  %406 = vst [vmem:[#allocation2 + $0x8] sm:$0xff] %v5982_v32 }
  0x31 PF: > { %v5174_v33 = vld [vmem:[%s6126_s11 + $0x74] ss:$8 sps:$4 sm:$0xff]   ;;  %v5178_v35 = vld [vmem:[%s6126_s11 + $0x70] ss:$8 sps:$4 sm:$0xff]   ;;  %v5180_v37 = vld [vmem:[%s6126_s11 + $0x64] ss:$8 sps:$4 sm:$0xff]  }
  0x32   : > { %v5176_v34 = vld [vmem:[%s6126_s11 + $0x174] ss:$8 sps:$4 sm:$0xff]   ;;  %3675 = vmatprep.subr.bf16.mxu0 %v5174_v33  ;;  %v5179_v36 = vld [vmem:[%s6126_s11 + $0x170] ss:$8 sps:$4 sm:$0xff]   ;;  %v5182_v38 = vld [vmem:[%s6126_s11 + $0x164] ss:$8 sps:$4 sm:$0xff]  }
  0x33   : > { %3718 = vmatprep.subr.bf16.mxu1 %v5176_v34  ;;  %3676 = vmatpush1.bf16.msra.mxu0 %v5178_v35  ;;  %v5184_v39 = vld [vmem:[%s6126_s11 + $0x60] ss:$8 sps:$4 sm:$0xff]   ;;  %v5186_v41 = vld [vmem:[%s6126_s11 + $0x54] ss:$8 sps:$4 sm:$0xff]   ;;  %v5190_v43 = vld [vmem:[%s6126_s11 + $0x50] ss:$8 sps:$4 sm:$0xff]  }
  0x34   : > { %3719 = vmatpush1.bf16.msra.mxu1 %v5179_v36  ;;  %3677 = vmatprep.subr.bf16.mxu0 %v5180_v37  ;;  %v5185_v40 = vld [vmem:[%s6126_s11 + $0x160] ss:$8 sps:$4 sm:$0xff]   ;;  %v5188_v42 = vld [vmem:[%s6126_s11 + $0x154] ss:$8 sps:$4 sm:$0xff]   ;;  %v5191_v44 = vld [vmem:[%s6126_s11 + $0x150] ss:$8 sps:$4 sm:$0xff]  }
  0x35   : > { %3720 = vmatprep.subr.bf16.mxu1 %v5182_v38  ;;  %v5192_v45 = vld [vmem:[%s6126_s11 + $0x44] ss:$8 sps:$4 sm:$0xff]   ;;  %v5196_v47 = vld [vmem:[%s6126_s11 + $0x40] ss:$8 sps:$4 sm:$0xff]   ;;  %v5198_v49 = vld [vmem:[%s6126_s11 + $0x34] ss:$8 sps:$4 sm:$0xff]  }
  0x36   : > { %v5194_v46 = vld [vmem:[%s6126_s11 + $0x144] ss:$8 sps:$4 sm:$0xff]   ;;  %v5197_v48 = vld [vmem:[%s6126_s11 + $0x140] ss:$8 sps:$4 sm:$0xff]   ;;  %v5200_v50 = vld [vmem:[%s6126_s11 + $0x134] ss:$8 sps:$4 sm:$0xff]  }
  0x37   : > { %3678 = vmatpush1.bf16.msra.mxu0 %v5184_v39  ;;  %v5202_v51 = vld [vmem:[%s6126_s11 + $0x30] ss:$8 sps:$4 sm:$0xff]   ;;  %v5204_v53 = vld [vmem:[%s6126_s11 + $0x24] ss:$8 sps:$4 sm:$0xff]   ;;  %v5208_v55 = vld [vmem:[%s6126_s11 + $0x20] ss:$8 sps:$4 sm:$0xff]  }
  0x38   : > { %3721 = vmatpush1.bf16.msra.mxu1 %v5185_v40  ;;  %3679 = vmatprep.subr.bf16.mxu0 %v5186_v41  ;;  %v5203_v52 = vld [vmem:[%s6126_s11 + $0x130] ss:$8 sps:$4 sm:$0xff]   ;;  %v5206_v54 = vld [vmem:[%s6126_s11 + $0x124] ss:$8 sps:$4 sm:$0xff]   ;;  %v5209_v56 = vld [vmem:[%s6126_s11 + $0x120] ss:$8 sps:$4 sm:$0xff]  }
  0x39   : > { %3722 = vmatprep.subr.bf16.mxu1 %v5188_v42  ;;  %v5210_v57 = vld [vmem:[%s6126_s11 + $0x14] ss:$8 sps:$4 sm:$0xff]   ;;  %v5214_v59 = vld [vmem:[%s6126_s11 + $0x10] ss:$8 sps:$4 sm:$0xff]   ;;  %v5216_v61 = vld [vmem:[%s6126_s11 + $0x4] ss:$8 sps:$4 sm:$0xff]  }
  0x3a   : > { %v5212_v58 = vld [vmem:[%s6126_s11 + $0x114] ss:$8 sps:$4 sm:$0xff]   ;;  %v5215_v60 = vld [vmem:[%s6126_s11 + $0x110] ss:$8 sps:$4 sm:$0xff]   ;;  %v5218_v62 = vld [vmem:[%s6126_s11 + $0x104] ss:$8 sps:$4 sm:$0xff]  }
  0x3b   : > { %3680 = vmatpush1.bf16.msra.mxu0 %v5190_v43  ;;  %v5220_v63 = vld [vmem:[%s6126_s11] ss:$8 sps:$4 sm:$0xff]   ;;  %v5222_v1 = vld [vmem:[%s6126_s11 + $0xf4] ss:$8 sps:$4 sm:$0xff]   ;;  %v5226_v3 = vld [vmem:[%s6126_s11 + $0xf0] ss:$8 sps:$4 sm:$0xff]  }
  0x3c   : > { %3723 = vmatpush1.bf16.msra.mxu1 %v5191_v44  ;;  %3681 = vmatprep.subr.bf16.mxu0 %v5192_v45  ;;  %v5221_v0 = vld [vmem:[%s6126_s11 + $0x100] ss:$8 sps:$4 sm:$0xff]   ;;  %v5224_v2 = vld [vmem:[%s6126_s11 + $0x1f4] ss:$8 sps:$4 sm:$0xff]   ;;  %v5227_v4 = vld [vmem:[%s6126_s11 + $0x1f0] ss:$8 sps:$4 sm:$0xff]  }
  0x3d   : > { %3724 = vmatprep.subr.bf16.mxu1 %v5194_v46  ;;  %v5228_v5 = vld [vmem:[%s6126_s11 + $0xe4] ss:$8 sps:$4 sm:$0xff]   ;;  %v5232_v7 = vld [vmem:[%s6126_s11 + $0xe0] ss:$8 sps:$4 sm:$0xff]   ;;  %v5234_v9 = vld [vmem:[%s6126_s11 + $0xd4] ss:$8 sps:$4 sm:$0xff]  }
  0x3e   : > { %v5230_v6 = vld [vmem:[%s6126_s11 + $0x1e4] ss:$8 sps:$4 sm:$0xff]   ;;  %v5233_v8 = vld [vmem:[%s6126_s11 + $0x1e0] ss:$8 sps:$4 sm:$0xff]   ;;  %v5236_v10 = vld [vmem:[%s6126_s11 + $0x1d4] ss:$8 sps:$4 sm:$0xff]  }
  0x3f   : > { %3682 = vmatpush1.bf16.msra.mxu0 %v5196_v47  ;;  %v5238_v11 = vld [vmem:[%s6126_s11 + $0xd0] ss:$8 sps:$4 sm:$0xff]   ;;  %v5240_v13 = vld [vmem:[%s6126_s11 + $0xc4] ss:$8 sps:$4 sm:$0xff]   ;;  %v5244_v15 = vld [vmem:[%s6126_s11 + $0xc0] ss:$8 sps:$4 sm:$0xff]  }
  0x40   : > { %3725 = vmatpush1.bf16.msra.mxu1 %v5197_v48  ;;  %3683 = vmatprep.subr.bf16.mxu0 %v5198_v49  ;;  %v5239_v12 = vld [vmem:[%s6126_s11 + $0x1d0] ss:$8 sps:$4 sm:$0xff]   ;;  %v5242_v14 = vld [vmem:[%s6126_s11 + $0x1c4] ss:$8 sps:$4 sm:$0xff]   ;;  %v5245_v16 = vld [vmem:[%s6126_s11 + $0x1c0] ss:$8 sps:$4 sm:$0xff]  }
  0x41   : > { %3726 = vmatprep.subr.bf16.mxu1 %v5200_v50  ;;  %v411_v17 = vld [vmem:[%s6128_s12] sm:$0xff]  ;;  %v412_v19 = vld [vmem:[%s6128_s12 + $0x8] sm:$0xff]  ;;  %v5252_v27 = vld [vmem:[%s6126_s11 + $0xa4] ss:$8 sps:$4 sm:$0xff]   ;;  %p5122_p11 = scmp.ne.s32.totalorder %s5972_s17, 1 }
  0x42   : > { %v427_v18 = vld [vmem:[%s6128_s12 + $0x80] sm:$0xff]  ;;  %v428_v20 = vld [vmem:[%s6128_s12 + $0x88] sm:$0xff]  ;;  %v5254_v28 = vld [vmem:[%s6126_s11 + $0x1a4] ss:$8 sps:$4 sm:$0xff]  }
  0x43   : > { %3684 = vmatpush1.bf16.msra.mxu0 %v5202_v51  ;;  %v5246_v21 = vld [vmem:[%s6126_s11 + $0xb4] ss:$8 sps:$4 sm:$0xff]   ;;  %v4579_v22 = vcombine.high %v411_v17, %v427_v18  ;;  %v4581_v24 = vcombine.high %v412_v19, %v428_v20  ;;  %v5250_v25 = vld [vmem:[%s6126_s11 + $0xb0] ss:$8 sps:$4 sm:$0xff]   ;;  %v5256_v29 = vld [vmem:[%s6126_s11 + $0xa0] ss:$8 sps:$4 sm:$0xff]   ;;  %v4578_v41 = vcombine.low %v411_v17, %v427_v18  ;;  %v4580_v42 = vcombine.low %v412_v19, %v428_v20 }
  0x44   : > { %3727 = vmatpush1.bf16.msra.mxu1 %v5203_v52  ;;  %3685 = vmatprep.subr.bf16.mxu0 %v5204_v53  ;;  %v5248_v23 = vld [vmem:[%s6126_s11 + $0x1b4] ss:$8 sps:$4 sm:$0xff]   ;;  %v5251_v26 = vld [vmem:[%s6126_s11 + $0x1b0] ss:$8 sps:$4 sm:$0xff]   ;;  %v5257_v30 = vld [vmem:[%s6126_s11 + $0x1a0] ss:$8 sps:$4 sm:$0xff]  }
  0x45   : > { %3728 = vmatprep.subr.bf16.mxu1 %v5206_v54  ;;  %3707 = vmatprep.mubr.bf16.mxu0 %v4579_v22  ;;  %v5258_v31 = vld [vmem:[%s6126_s11 + $0x94] ss:$8 sps:$4 sm:$0xff]   ;;  %v5262_v33 = vld [vmem:[%s6126_s11 + $0x90] ss:$8 sps:$4 sm:$0xff]   ;;  %v5264_v35 = vld [vmem:[%s6126_s11 + $0x84] ss:$8 sps:$4 sm:$0xff]  }
  0x46   : > { %3750 = vmatprep.mubr.bf16.mxu1 %v4581_v24  ;;  %v5260_v32 = vld [vmem:[%s6126_s11 + $0x194] ss:$8 sps:$4 sm:$0xff]   ;;  %v5263_v34 = vld [vmem:[%s6126_s11 + $0x190] ss:$8 sps:$4 sm:$0xff]   ;;  %v5266_v36 = vld [vmem:[%s6126_s11 + $0x184] ss:$8 sps:$4 sm:$0xff]  }
  0x47   : > { %3686 = vmatpush1.bf16.msra.mxu0 %v5208_v55  ;;  %v5268_v37 = vld [vmem:[%s6126_s11 + $0x80] ss:$8 sps:$4 sm:$0xff]   ;;  %v5272_v39 = vld [vmem:[%s6126_s11 + $0x274] ss:$8 sps:$4 sm:$0xff]   ;;  %v5270_v43 = vld [vmem:[%s6126_s11 + $0x270] ss:$8 sps:$4 sm:$0xff]  }
  0x48   : > { %3729 = vmatpush1.bf16.msra.mxu1 %v5209_v56  ;;  %3687 = vmatprep.subr.bf16.mxu0 %v5210_v57  ;;  %v5269_v38 = vld [vmem:[%s6126_s11 + $0x180] ss:$8 sps:$4 sm:$0xff]   ;;  %v5275_v40 = vld [vmem:[%s6126_s11 + $0x374] ss:$8 sps:$4 sm:$0xff]   ;;  %v5273_v44 = vld [vmem:[%s6126_s11 + $0x370] ss:$8 sps:$4 sm:$0xff]  }
  0x49   : > { %3730 = vmatprep.subr.bf16.mxu1 %v5212_v58  ;;  %v5278_v45 = vld [vmem:[%s6126_s11 + $0x264] ss:$8 sps:$4 sm:$0xff]   ;;  %v5276_v47 = vld [vmem:[%s6126_s11 + $0x260] ss:$8 sps:$4 sm:$0xff]   ;;  %v5284_v49 = vld [vmem:[%s6126_s11 + $0x254] ss:$8 sps:$4 sm:$0xff]  }
  0x4a   : > { %v5281_v46 = vld [vmem:[%s6126_s11 + $0x364] ss:$8 sps:$4 sm:$0xff]   ;;  %v5279_v48 = vld [vmem:[%s6126_s11 + $0x360] ss:$8 sps:$4 sm:$0xff]   ;;  %v5287_v50 = vld [vmem:[%s6126_s11 + $0x354] ss:$8 sps:$4 sm:$0xff]  }
  0x4b   : > { %3688 = vmatpush1.bf16.msra.mxu0 %v5214_v59  ;;  %v5282_v51 = vld [vmem:[%s6126_s11 + $0x250] ss:$8 sps:$4 sm:$0xff]   ;;  %v5290_v53 = vld [vmem:[%s6126_s11 + $0x244] ss:$8 sps:$4 sm:$0xff]   ;;  %v5288_v55 = vld [vmem:[%s6126_s11 + $0x240] ss:$8 sps:$4 sm:$0xff]  }
  0x4c   : > { %3731 = vmatpush1.bf16.msra.mxu1 %v5215_v60  ;;  %3689 = vmatprep.subr.bf16.mxu0 %v5216_v61  ;;  %v5285_v52 = vld [vmem:[%s6126_s11 + $0x350] ss:$8 sps:$4 sm:$0xff]   ;;  %v5293_v54 = vld [vmem:[%s6126_s11 + $0x344] ss:$8 sps:$4 sm:$0xff]   ;;  %v5291_v56 = vld [vmem:[%s6126_s11 + $0x340] ss:$8 sps:$4 sm:$0xff]  }
  0x4d   : > { %3732 = vmatprep.subr.bf16.mxu1 %v5218_v62  ;;  %v5296_v57 = vld [vmem:[%s6126_s11 + $0x234] ss:$8 sps:$4 sm:$0xff]   ;;  %v5294_v59 = vld [vmem:[%s6126_s11 + $0x230] ss:$8 sps:$4 sm:$0xff]   ;;  %v5302_v61 = vld [vmem:[%s6126_s11 + $0x224] ss:$8 sps:$4 sm:$0xff]  }
  0x4e   : > { %v5299_v58 = vld [vmem:[%s6126_s11 + $0x334] ss:$8 sps:$4 sm:$0xff]   ;;  %v5297_v60 = vld [vmem:[%s6126_s11 + $0x330] ss:$8 sps:$4 sm:$0xff]   ;;  %v5305_v62 = vld [vmem:[%s6126_s11 + $0x324] ss:$8 sps:$4 sm:$0xff]  }
  0x4f   : > { %3690 = vmatpush1.bf16.msra.mxu0 %v5220_v63  ;;  %v5300_v63 = vld [vmem:[%s6126_s11 + $0x220] ss:$8 sps:$4 sm:$0xff]   ;;  %v5318_v17 = vld [vmem:[%s6126_s11 + $0x2f0] ss:$8 sps:$4 sm:$0xff]   ;;  %v5326_v19 = vld [vmem:[%s6126_s11 + $0x2e4] ss:$8 sps:$4 sm:$0xff]  }
  0x50   : > { %3733 = vmatpush1.bf16.msra.mxu1 %v5221_v0  ;;  %3691 = vmatprep.subr.bf16.mxu0 %v5222_v1  ;;  %v5303_v0 = vld [vmem:[%s6126_s11 + $0x320] ss:$8 sps:$4 sm:$0xff]   ;;  %v5308_v1 = vld [vmem:[%s6126_s11 + $0x214] ss:$8 sps:$4 sm:$0xff]   ;;  %v5321_v18 = vld [vmem:[%s6126_s11 + $0x3f0] ss:$8 sps:$4 sm:$0xff]  }
  0x51   : > { %3734 = vmatprep.subr.bf16.mxu1 %v5224_v2  ;;  %v5311_v2 = vld [vmem:[%s6126_s11 + $0x314] ss:$8 sps:$4 sm:$0xff]   ;;  %v5329_v20 = vld [vmem:[%s6126_s11 + $0x3e4] ss:$8 sps:$4 sm:$0xff]   ;;  %v5327_v22 = vld [vmem:[%s6126_s11 + $0x3e0] ss:$8 sps:$4 sm:$0xff]  }
  0x52   : > { %v5335_v24 = vld [vmem:[%s6126_s11 + $0x3d4] ss:$8 sps:$4 sm:$0xff]  }
  0x53   : > { %3692 = vmatpush2.bf16.msra.mxu0 %v5226_v3  ;;  %v5306_v3 = vld [vmem:[%s6126_s11 + $0x210] ss:$8 sps:$4 sm:$0xff]  }
  0x54   : > { %3735 = vmatpush2.bf16.msra.mxu1 %v5227_v4  ;;  %3693 = vmatprep.subr.bf16.mxu0 %v5228_v5  ;;  %v5309_v4 = vld [vmem:[%s6126_s11 + $0x310] ss:$8 sps:$4 sm:$0xff]   ;;  %v6228_v5 = vld [vmem:[%s6128_s12 + $0x10] sm:$0xff] }
  0x55   : > { %3736 = vmatprep.subr.bf16.mxu1 %v5230_v6  ;;  %v6231_v6 = vld [vmem:[%s6128_s12 + $0x90] sm:$0xff] }
  0x57   : > { %3694 = vmatpush2.bf16.msra.mxu0 %v5232_v7  ;;  %v6234_v7 = vld [vmem:[%s6128_s12 + $0x18] sm:$0xff] }
  0x58   : > { %3737 = vmatpush2.bf16.msra.mxu1 %v5233_v8  ;;  %3695 = vmatprep.subr.bf16.mxu0 %v5234_v9  ;;  %v6237_v8 = vld [vmem:[%s6128_s12 + $0x98] sm:$0xff] }
  0x59   : > { %3738 = vmatprep.subr.bf16.mxu1 %v5236_v10  ;;  %v5314_v9 = vld [vmem:[%s6126_s11 + $0x204] ss:$8 sps:$4 sm:$0xff]   ;;  %v4583_v10 = vcombine.high %v6228_v5, %v6231_v6 }
  0x5b   : > { %3696 = vmatpush2.bf16.msra.mxu0 %v5238_v11  ;;  %v5317_v11 = vld [vmem:[%s6126_s11 + $0x304] ss:$8 sps:$4 sm:$0xff]  }
  0x5c   : > { %3739 = vmatpush2.bf16.msra.mxu1 %v5239_v12  ;;  %3697 = vmatprep.subr.bf16.mxu0 %v5240_v13  ;;  %v4585_v12 = vcombine.high %v6234_v7, %v6237_v8  ;;  %v5312_v13 = vld [vmem:[%s6126_s11 + $0x200] ss:$8 sps:$4 sm:$0xff]  }
  0x5d   : > { %3740 = vmatprep.subr.bf16.mxu1 %v5242_v14  ;;  %v5315_v14 = vld [vmem:[%s6126_s11 + $0x300] ss:$8 sps:$4 sm:$0xff]  }
  0x5f   : > { %3698 = vmatpush2.bf16.msra.mxu0 %v5244_v15  ;;  %v5320_v15 = vld [vmem:[%s6126_s11 + $0x2f4] ss:$8 sps:$4 sm:$0xff]  }
  0x60   : > { %3741 = vmatpush2.bf16.msra.mxu1 %v5245_v16  ;;  %3699 = vmatprep.subr.bf16.mxu0 %v5246_v21  ;;  %v5323_v16 = vld [vmem:[%s6126_s11 + $0x3f4] ss:$8 sps:$4 sm:$0xff]   ;;  %v5324_v21 = vld [vmem:[%s6126_s11 + $0x2e0] ss:$8 sps:$4 sm:$0xff]  }
  0x61   : > { %3742 = vmatprep.subr.bf16.mxu1 %v5248_v23  ;;  %v5332_v23 = vld [vmem:[%s6126_s11 + $0x2d4] ss:$8 sps:$4 sm:$0xff]  }
  0x63   : > { %3700 = vmatpush2.bf16.msra.mxu0 %v5250_v25  ;;  %v5330_v25 = vld [vmem:[%s6126_s11 + $0x2d0] ss:$8 sps:$4 sm:$0xff]  }
  0x64   : > { %3743 = vmatpush2.bf16.msra.mxu1 %v5251_v26  ;;  %3701 = vmatprep.subr.bf16.mxu0 %v5252_v27  ;;  %v5333_v26 = vld [vmem:[%s6126_s11 + $0x3d0] ss:$8 sps:$4 sm:$0xff]   ;;  %v5338_v27 = vld [vmem:[%s6126_s11 + $0x2c4] ss:$8 sps:$4 sm:$0xff]  }
  0x65   : > { %3744 = vmatprep.subr.bf16.mxu1 %v5254_v28  ;;  %v5341_v28 = vld [vmem:[%s6126_s11 + $0x3c4] ss:$8 sps:$4 sm:$0xff]  }
  0x67   : > { %3702 = vmatpush2.bf16.msra.mxu0 %v5256_v29  ;;  %v5336_v29 = vld [vmem:[%s6126_s11 + $0x2c0] ss:$8 sps:$4 sm:$0xff]  }
  0x68   : > { %3745 = vmatpush2.bf16.msra.mxu1 %v5257_v30  ;;  %3703 = vmatprep.subr.bf16.mxu0 %v5258_v31  ;;  %v5339_v30 = vld [vmem:[%s6126_s11 + $0x3c0] ss:$8 sps:$4 sm:$0xff]   ;;  %v5344_v31 = vld [vmem:[%s6126_s11 + $0x2b4] ss:$8 sps:$4 sm:$0xff]  }
  0x69   : > { %3746 = vmatprep.subr.bf16.mxu1 %v5260_v32  ;;  %v5347_v32 = vld [vmem:[%s6126_s11 + $0x3b4] ss:$8 sps:$4 sm:$0xff]  }
  0x6b   : > { %3704 = vmatpush2.bf16.msra.mxu0 %v5262_v33  ;;  %v5342_v33 = vld [vmem:[%s6126_s11 + $0x2b0] ss:$8 sps:$4 sm:$0xff]  }
  0x6c   : > { %3747 = vmatpush2.bf16.msra.mxu1 %v5263_v34  ;;  %3705 = vmatprep.subr.bf16.mxu0 %v5264_v35  ;;  %v5345_v34 = vld [vmem:[%s6126_s11 + $0x3b0] ss:$8 sps:$4 sm:$0xff]   ;;  %v5350_v35 = vld [vmem:[%s6126_s11 + $0x2a4] ss:$8 sps:$4 sm:$0xff]  }
  0x6d   : > { %3748 = vmatprep.subr.bf16.mxu1 %v5266_v36  ;;  %v5353_v36 = vld [vmem:[%s6126_s11 + $0x3a4] ss:$8 sps:$4 sm:$0xff]  }
  0x6f   : > { %3706 = vmatpush2.bf16.msra.mxu0 %v5268_v37  ;;  %v5348_v37 = vld [vmem:[%s6126_s11 + $0x2a0] ss:$8 sps:$4 sm:$0xff]  }
  0x70   : > { %3749 = vmatpush2.bf16.msra.mxu1 %v5269_v38  ;;  %3761 = vmatprep.subr.bf16.mxu0 %v5272_v39  ;;  %v5351_v38 = vld [vmem:[%s6126_s11 + $0x3a0] ss:$8 sps:$4 sm:$0xff]   ;;  %v5356_v39 = vld [vmem:[%s6126_s11 + $0x294] ss:$8 sps:$4 sm:$0xff]  }
  0x71   : > { %3804 = vmatprep.subr.bf16.mxu1 %v5275_v40  ;;  %v5359_v40 = vld [vmem:[%s6126_s11 + $0x394] ss:$8 sps:$4 sm:$0xff]  }
  0x72   : > { %3708 = vmatmul.mubr.bf16.vlgmr.msra.gmra.mxu0 %v4578_v41  ;;  %v5354_v41 = vld [vmem:[%s6126_s11 + $0x290] ss:$8 sps:$4 sm:$0xff]  }
  0x73   : > { %3751 = vmatmul.mubr.bf16.vlgmr.msra.gmra.mxu1 %v4580_v42  ;;  %3762 = vmatpush1.bf16.msra.mxu0 %v5270_v43  ;;  %v5357_v42 = vld [vmem:[%s6126_s11 + $0x390] ss:$8 sps:$4 sm:$0xff]   ;;  %v5362_v43 = vld [vmem:[%s6126_s11 + $0x284] ss:$8 sps:$4 sm:$0xff]  }
  0x74   : > { %3805 = vmatpush1.bf16.msra.mxu1 %v5273_v44  ;;  %3763 = vmatprep.subr.bf16.mxu0 %v5278_v45  ;;  %v5365_v44 = vld [vmem:[%s6126_s11 + $0x384] ss:$8 sps:$4 sm:$0xff]   ;;  %v5360_v45 = vld [vmem:[%s6126_s11 + $0x280] ss:$8 sps:$4 sm:$0xff]  }
  0x75   : > { %3806 = vmatprep.subr.bf16.mxu1 %v5281_v46  ;;  %3793 = vmatprep.mubr.bf16.mxu0 %v4583_v10  ;;  %v5363_v46 = vld [vmem:[%s6126_s11 + $0x380] ss:$8 sps:$4 sm:$0xff]   ;;  %v5393_v10 = vld [vmem:[%s6126_s11 + $0x530] ss:$8 sps:$4 sm:$0xff]  }
  0x76   : > { %3836 = vmatprep.mubr.bf16.mxu1 %v4585_v12  ;;  %v5401_v12 = vld [vmem:[%s6126_s11 + $0x524] ss:$8 sps:$4 sm:$0xff]  }
  0x77   : > { %3764 = vmatpush1.bf16.msra.mxu0 %v5276_v47  ;;  %v5368_v47 = vld [vmem:[%s6126_s11 + $0x474] ss:$8 sps:$4 sm:$0xff]  }
  0x78   : > { %3807 = vmatpush1.bf16.msra.mxu1 %v5279_v48  ;;  %3765 = vmatprep.subr.bf16.mxu0 %v5284_v49  ;;  %v5371_v48 = vld [vmem:[%s6126_s11 + $0x574] ss:$8 sps:$4 sm:$0xff]   ;;  %v4582_v49 = vcombine.low %v6228_v5, %v6231_v6  ;;  %v5384_v5 = vld [vmem:[%s6126_s11 + $0x440] ss:$8 sps:$4 sm:$0xff]  }
  0x79   : > { %3808 = vmatprep.subr.bf16.mxu1 %v5287_v50  ;;  %v4584_v50 = vcombine.low %v6234_v7, %v6237_v8  ;;  %v5387_v6 = vld [vmem:[%s6126_s11 + $0x540] ss:$8 sps:$4 sm:$0xff]   ;;  %v5392_v7 = vld [vmem:[%s6126_s11 + $0x434] ss:$8 sps:$4 sm:$0xff]  }
  0x7a   : > { %v5395_v8 = vld [vmem:[%s6126_s11 + $0x534] ss:$8 sps:$4 sm:$0xff]  }
  0x7b   : > { %3766 = vmatpush1.bf16.msra.mxu0 %v5282_v51  ;;  %v5366_v51 = vld [vmem:[%s6126_s11 + $0x470] ss:$8 sps:$4 sm:$0xff]  }
  0x7c   : > { %3809 = vmatpush1.bf16.msra.mxu1 %v5285_v52  ;;  %3767 = vmatprep.subr.bf16.mxu0 %v5290_v53  ;;  %v5369_v52 = vld [vmem:[%s6126_s11 + $0x570] ss:$8 sps:$4 sm:$0xff]   ;;  %v5374_v53 = vld [vmem:[%s6126_s11 + $0x464] ss:$8 sps:$4 sm:$0xff]  }
  0x7d   : > { %3810 = vmatprep.subr.bf16.mxu1 %v5293_v54  ;;  %v5377_v54 = vld [vmem:[%s6126_s11 + $0x564] ss:$8 sps:$4 sm:$0xff]  }
  0x7f   : > { %3768 = vmatpush1.bf16.msra.mxu0 %v5288_v55  ;;  %v5372_v55 = vld [vmem:[%s6126_s11 + $0x460] ss:$8 sps:$4 sm:$0xff]  }
  0x80   : > { %3811 = vmatpush1.bf16.msra.mxu1 %v5291_v56  ;;  %3769 = vmatprep.subr.bf16.mxu0 %v5296_v57  ;;  %v5375_v56 = vld [vmem:[%s6126_s11 + $0x560] ss:$8 sps:$4 sm:$0xff]   ;;  %v6292_v57 = vld [vmem:[%s6128_s12 + $0x20] sm:$0xff] }
  0x81   : > { %3812 = vmatprep.subr.bf16.mxu1 %v5299_v58  ;;  %v6295_v58 = vld [vmem:[%s6128_s12 + $0xa0] sm:$0xff] }
  0x83   : > { %3770 = vmatpush1.bf16.msra.mxu0 %v5294_v59  ;;  %v6298_v59 = vld [vmem:[%s6128_s12 + $0x28] sm:$0xff] }
  0x84   : > { %3813 = vmatpush1.bf16.msra.mxu1 %v5297_v60  ;;  %3771 = vmatprep.subr.bf16.mxu0 %v5302_v61  ;;  %v6301_v60 = vld [vmem:[%s6128_s12 + $0xa8] sm:$0xff] }
  0x85   : > { %3814 = vmatprep.subr.bf16.mxu1 %v5305_v62  ;;  %v5380_v61 = vld [vmem:[%s6126_s11 + $0x454] ss:$8 sps:$4 sm:$0xff]   ;;  %v4587_v62 = vcombine.high %v6292_v57, %v6295_v58 }
  0x87   : > { %3772 = vmatpush1.bf16.msra.mxu0 %v5300_v63  ;;  %v5383_v63 = vld [vmem:[%s6126_s11 + $0x554] ss:$8 sps:$4 sm:$0xff]  }
  0x88   : > { %3815 = vmatpush1.bf16.msra.mxu1 %v5303_v0  ;;  %3773 = vmatprep.subr.bf16.mxu0 %v5308_v1  ;;  %v4589_v0 = vcombine.high %v6298_v59, %v6301_v60  ;;  %v5378_v1 = vld [vmem:[%s6126_s11 + $0x450] ss:$8 sps:$4 sm:$0xff]  }
  0x89   : > { %3816 = vmatprep.subr.bf16.mxu1 %v5311_v2  ;;  %v5381_v2 = vld [vmem:[%s6126_s11 + $0x550] ss:$8 sps:$4 sm:$0xff]  }
  0x8b   : > { %3774 = vmatpush1.bf16.msra.mxu0 %v5306_v3  ;;  %v5386_v3 = vld [vmem:[%s6126_s11 + $0x444] ss:$8 sps:$4 sm:$0xff]  }
  0x8c   : > { %3817 = vmatpush1.bf16.msra.mxu1 %v5309_v4  ;;  %3775 = vmatprep.subr.bf16.mxu0 %v5314_v9  ;;  %v5389_v4 = vld [vmem:[%s6126_s11 + $0x544] ss:$8 sps:$4 sm:$0xff]   ;;  %v5390_v9 = vld [vmem:[%s6126_s11 + $0x430] ss:$8 sps:$4 sm:$0xff]  }
  0x8d   : > { %3818 = vmatprep.subr.bf16.mxu1 %v5317_v11  ;;  %v5398_v11 = vld [vmem:[%s6126_s11 + $0x424] ss:$8 sps:$4 sm:$0xff]  }
  0x8f   : > { %3776 = vmatpush1.bf16.msra.mxu0 %v5312_v13  ;;  %v5396_v13 = vld [vmem:[%s6126_s11 + $0x420] ss:$8 sps:$4 sm:$0xff]  }
  0x90   : > { %3819 = vmatpush1.bf16.msra.mxu1 %v5315_v14  ;;  %3777 = vmatprep.subr.bf16.mxu0 %v5320_v15  ;;  %v5399_v14 = vld [vmem:[%s6126_s11 + $0x520] ss:$8 sps:$4 sm:$0xff]   ;;  %v5404_v15 = vld [vmem:[%s6126_s11 + $0x414] ss:$8 sps:$4 sm:$0xff]  }
  0x91   : > { %3820 = vmatprep.subr.bf16.mxu1 %v5323_v16  ;;  %v5407_v16 = vld [vmem:[%s6126_s11 + $0x514] ss:$8 sps:$4 sm:$0xff]  }
  0x93   : > { %3778 = vmatpush2.bf16.msra.mxu0 %v5318_v17  ;;  %v5402_v17 = vld [vmem:[%s6126_s11 + $0x410] ss:$8 sps:$4 sm:$0xff]  }
  0x94   : > { %3821 = vmatpush2.bf16.msra.mxu1 %v5321_v18  ;;  %3779 = vmatprep.subr.bf16.mxu0 %v5326_v19  ;;  %v5405_v18 = vld [vmem:[%s6126_s11 + $0x510] ss:$8 sps:$4 sm:$0xff]   ;;  %v5410_v19 = vld [vmem:[%s6126_s11 + $0x404] ss:$8 sps:$4 sm:$0xff]  }
  0x95   : > { %3822 = vmatprep.subr.bf16.mxu1 %v5329_v20  ;;  %v5413_v20 = vld [vmem:[%s6126_s11 + $0x504] ss:$8 sps:$4 sm:$0xff]  }
  0x97   : > { %3780 = vmatpush2.bf16.msra.mxu0 %v5324_v21  ;;  %v5408_v21 = vld [vmem:[%s6126_s11 + $0x400] ss:$8 sps:$4 sm:$0xff]  }
  0x98   : > { %3823 = vmatpush2.bf16.msra.mxu1 %v5327_v22  ;;  %3781 = vmatprep.subr.bf16.mxu0 %v5332_v23  ;;  %v5411_v22 = vld [vmem:[%s6126_s11 + $0x500] ss:$8 sps:$4 sm:$0xff]   ;;  %v5416_v23 = vld [vmem:[%s6126_s11 + $0x4f4] ss:$8 sps:$4 sm:$0xff]  }
  0x99   : > { %3824 = vmatprep.subr.bf16.mxu1 %v5335_v24  ;;  %v5419_v24 = vld [vmem:[%s6126_s11 + $0x5f4] ss:$8 sps:$4 sm:$0xff]  }
  0x9b   : > { %3782 = vmatpush2.bf16.msra.mxu0 %v5330_v25  ;;  %v5414_v25 = vld [vmem:[%s6126_s11 + $0x4f0] ss:$8 sps:$4 sm:$0xff]  }
  0x9c   : > { %3825 = vmatpush2.bf16.msra.mxu1 %v5333_v26  ;;  %3783 = vmatprep.subr.bf16.mxu0 %v5338_v27  ;;  %v5417_v26 = vld [vmem:[%s6126_s11 + $0x5f0] ss:$8 sps:$4 sm:$0xff]   ;;  %v5422_v27 = vld [vmem:[%s6126_s11 + $0x4e4] ss:$8 sps:$4 sm:$0xff]  }
  0x9d   : > { %3826 = vmatprep.subr.bf16.mxu1 %v5341_v28  ;;  %v5425_v28 = vld [vmem:[%s6126_s11 + $0x5e4] ss:$8 sps:$4 sm:$0xff]  }
  0x9f   : > { %3784 = vmatpush2.bf16.msra.mxu0 %v5336_v29  ;;  %v5420_v29 = vld [vmem:[%s6126_s11 + $0x4e0] ss:$8 sps:$4 sm:$0xff]  }
  0xa0   : > { %3827 = vmatpush2.bf16.msra.mxu1 %v5339_v30  ;;  %3785 = vmatprep.subr.bf16.mxu0 %v5344_v31  ;;  %v5423_v30 = vld [vmem:[%s6126_s11 + $0x5e0] ss:$8 sps:$4 sm:$0xff]   ;;  %v5428_v31 = vld [vmem:[%s6126_s11 + $0x4d4] ss:$8 sps:$4 sm:$0xff]  }
  0xa1   : > { %3828 = vmatprep.subr.bf16.mxu1 %v5347_v32  ;;  %v5431_v32 = vld [vmem:[%s6126_s11 + $0x5d4] ss:$8 sps:$4 sm:$0xff]  }
  0xa3   : > { %3786 = vmatpush2.bf16.msra.mxu0 %v5342_v33  ;;  %v5426_v33 = vld [vmem:[%s6126_s11 + $0x4d0] ss:$8 sps:$4 sm:$0xff]  }
  0xa4   : > { %3829 = vmatpush2.bf16.msra.mxu1 %v5345_v34  ;;  %3787 = vmatprep.subr.bf16.mxu0 %v5350_v35  ;;  %v5429_v34 = vld [vmem:[%s6126_s11 + $0x5d0] ss:$8 sps:$4 sm:$0xff]   ;;  %v5434_v35 = vld [vmem:[%s6126_s11 + $0x4c4] ss:$8 sps:$4 sm:$0xff]  }
  0xa5   : > { %3830 = vmatprep.subr.bf16.mxu1 %v5353_v36  ;;  %v5437_v36 = vld [vmem:[%s6126_s11 + $0x5c4] ss:$8 sps:$4 sm:$0xff]  }
  0xa7   : > { %3788 = vmatpush2.bf16.msra.mxu0 %v5348_v37  ;;  %v5432_v37 = vld [vmem:[%s6126_s11 + $0x4c0] ss:$8 sps:$4 sm:$0xff]  }
  0xa8   : > { %3831 = vmatpush2.bf16.msra.mxu1 %v5351_v38  ;;  %3789 = vmatprep.subr.bf16.mxu0 %v5356_v39  ;;  %v5435_v38 = vld [vmem:[%s6126_s11 + $0x5c0] ss:$8 sps:$4 sm:$0xff]   ;;  %v5440_v39 = vld [vmem:[%s6126_s11 + $0x4b4] ss:$8 sps:$4 sm:$0xff]  }
  0xa9   : > { %3832 = vmatprep.subr.bf16.mxu1 %v5359_v40  ;;  %v5443_v40 = vld [vmem:[%s6126_s11 + $0x5b4] ss:$8 sps:$4 sm:$0xff]  }
  0xab   : > { %3790 = vmatpush2.bf16.msra.mxu0 %v5354_v41  ;;  %v5438_v41 = vld [vmem:[%s6126_s11 + $0x4b0] ss:$8 sps:$4 sm:$0xff]  }
  0xac   : > { %3833 = vmatpush2.bf16.msra.mxu1 %v5357_v42  ;;  %3791 = vmatprep.subr.bf16.mxu0 %v5362_v43  ;;  %v5441_v42 = vld [vmem:[%s6126_s11 + $0x5b0] ss:$8 sps:$4 sm:$0xff]   ;;  %v5446_v43 = vld [vmem:[%s6126_s11 + $0x4a4] ss:$8 sps:$4 sm:$0xff]  }
  0xad   : > { %3834 = vmatprep.subr.bf16.mxu1 %v5365_v44  ;;  %v5449_v44 = vld [vmem:[%s6126_s11 + $0x5a4] ss:$8 sps:$4 sm:$0xff]  }
  0xaf   : > { %3792 = vmatpush2.bf16.msra.mxu0 %v5360_v45  ;;  %v5444_v45 = vld [vmem:[%s6126_s11 + $0x4a0] ss:$8 sps:$4 sm:$0xff]  }
  0xb0   : > { %3835 = vmatpush2.bf16.msra.mxu1 %v5363_v46  ;;  %3847 = vmatprep.subr.bf16.mxu0 %v5368_v47  ;;  %v5447_v46 = vld [vmem:[%s6126_s11 + $0x5a0] ss:$8 sps:$4 sm:$0xff]   ;;  %v5452_v47 = vld [vmem:[%s6126_s11 + $0x494] ss:$8 sps:$4 sm:$0xff]  }
  0xb1   : > { %3890 = vmatprep.subr.bf16.mxu1 %v5371_v48  ;;  %v5455_v48 = vld [vmem:[%s6126_s11 + $0x594] ss:$8 sps:$4 sm:$0xff]  }
  0xb2   : > { %3794 = vmatmul.mubr.bf16.vlgmr.msra.gmra.mxu0 %v4582_v49  ;;  %v5450_v49 = vld [vmem:[%s6126_s11 + $0x490] ss:$8 sps:$4 sm:$0xff]  }
  0xb3   : > { %3837 = vmatmul.mubr.bf16.vlgmr.msra.gmra.mxu1 %v4584_v50  ;;  %3848 = vmatpush1.bf16.msra.mxu0 %v5366_v51  ;;  %v5453_v50 = vld [vmem:[%s6126_s11 + $0x590] ss:$8 sps:$4 sm:$0xff]   ;;  %v5458_v51 = vld [vmem:[%s6126_s11 + $0x484] ss:$8 sps:$4 sm:$0xff]  }
  0xb4   : > { %3891 = vmatpush1.bf16.msra.mxu1 %v5369_v52  ;;  %3849 = vmatprep.subr.bf16.mxu0 %v5374_v53  ;;  %v5461_v52 = vld [vmem:[%s6126_s11 + $0x584] ss:$8 sps:$4 sm:$0xff]   ;;  %v5456_v53 = vld [vmem:[%s6126_s11 + $0x480] ss:$8 sps:$4 sm:$0xff]  }
  0xb5   : > { %3892 = vmatprep.subr.bf16.mxu1 %v5377_v54  ;;  %3879 = vmatprep.mubr.bf16.mxu0 %v4587_v62  ;;  %v5459_v54 = vld [vmem:[%s6126_s11 + $0x580] ss:$8 sps:$4 sm:$0xff]   ;;  %v5465_v62 = vld [vmem:[%s6126_s11 + $0x770] ss:$8 sps:$4 sm:$0xff]  }
  0xb6   : > { %3922 = vmatprep.mubr.bf16.mxu1 %v4589_v0  ;;  %v6371_v0 = vld [vmem:[%s6128_s12 + $0xb0] sm:$0xff] }
  0xb7   : > { %3850 = vmatpush1.bf16.msra.mxu0 %v5372_v55  ;;  %v5464_v55 = vld [vmem:[%s6126_s11 + $0x674] ss:$8 sps:$4 sm:$0xff]  }
  0xb8   : > { %3893 = vmatpush1.bf16.msra.mxu1 %v5375_v56  ;;  %3851 = vmatprep.subr.bf16.mxu0 %v5380_v61  ;;  %v5467_v56 = vld [vmem:[%s6126_s11 + $0x774] ss:$8 sps:$4 sm:$0xff]   ;;  %v5462_v61 = vld [vmem:[%s6126_s11 + $0x670] ss:$8 sps:$4 sm:$0xff]  }
  0xb9   : > { %3894 = vmatprep.subr.bf16.mxu1 %v5383_v63  ;;  %v6368_v63 = vld [vmem:[%s6128_s12 + $0x30] sm:$0xff] }
  0xbb   : > { %3852 = vmatpush1.bf16.msra.mxu0 %v5378_v1  ;;  %v4586_v1 = vcombine.low %v6292_v57, %v6295_v58  ;;  %v4591_v57 = vcombine.high %v6368_v63, %v6371_v0 }
  0xbc   : > { %3895 = vmatpush1.bf16.msra.mxu1 %v5381_v2  ;;  %3853 = vmatprep.subr.bf16.mxu0 %v5386_v3  ;;  %v4588_v2 = vcombine.low %v6298_v59, %v6301_v60  ;;  %v6378_v3 = vld [vmem:[%s6128_s12 + $0x38] sm:$0xff] }
  0xbd   : > { %3896 = vmatprep.subr.bf16.mxu1 %v5389_v4  ;;  %v6381_v4 = vld [vmem:[%s6128_s12 + $0xb8] sm:$0xff] }
  0xbe   : > { %v4593_v58 = vcombine.high %v6378_v3, %v6381_v4  ;;  %v5468_v59 = vld [vmem:[%s6126_s11 + $0x660] ss:$8 sps:$4 sm:$0xff]  }
  0xbf   : > { %3854 = vmatpush1.bf16.msra.mxu0 %v5384_v5  ;;  %v5470_v5 = vld [vmem:[%s6126_s11 + $0x664] ss:$8 sps:$4 sm:$0xff]   ;;  %v5471_v60 = vld [vmem:[%s6126_s11 + $0x760] ss:$8 sps:$4 sm:$0xff]  }
  0xc0   : > { %3897 = vmatpush1.bf16.msra.mxu1 %v5387_v6  ;;  %3855 = vmatprep.subr.bf16.mxu0 %v5392_v7  ;;  %v5473_v6 = vld [vmem:[%s6126_s11 + $0x764] ss:$8 sps:$4 sm:$0xff]   ;;  %v5476_v7 = vld [vmem:[%s6126_s11 + $0x654] ss:$8 sps:$4 sm:$0xff]  }
  0xc1   : > { %3898 = vmatprep.subr.bf16.mxu1 %v5395_v8  ;;  %v5479_v8 = vld [vmem:[%s6126_s11 + $0x754] ss:$8 sps:$4 sm:$0xff]  }
  0xc3   : > { %3856 = vmatpush1.bf16.msra.mxu0 %v5390_v9  ;;  %v5474_v9 = vld [vmem:[%s6126_s11 + $0x650] ss:$8 sps:$4 sm:$0xff]  }
  0xc4   : > { %3899 = vmatpush1.bf16.msra.mxu1 %v5393_v10  ;;  %3857 = vmatprep.subr.bf16.mxu0 %v5398_v11  ;;  %v5477_v10 = vld [vmem:[%s6126_s11 + $0x750] ss:$8 sps:$4 sm:$0xff]   ;;  %v5482_v11 = vld [vmem:[%s6126_s11 + $0x644] ss:$8 sps:$4 sm:$0xff]  }
  0xc5   : > { %3900 = vmatprep.subr.bf16.mxu1 %v5401_v12  ;;  %v5485_v12 = vld [vmem:[%s6126_s11 + $0x744] ss:$8 sps:$4 sm:$0xff]  }
  0xc7   : > { %3858 = vmatpush1.bf16.msra.mxu0 %v5396_v13  ;;  %v5480_v13 = vld [vmem:[%s6126_s11 + $0x640] ss:$8 sps:$4 sm:$0xff]  }
  0xc8   : > { %3901 = vmatpush1.bf16.msra.mxu1 %v5399_v14  ;;  %3859 = vmatprep.subr.bf16.mxu0 %v5404_v15  ;;  %v5483_v14 = vld [vmem:[%s6126_s11 + $0x740] ss:$8 sps:$4 sm:$0xff]   ;;  %v5488_v15 = vld [vmem:[%s6126_s11 + $0x634] ss:$8 sps:$4 sm:$0xff]  }
  0xc9   : > { %3902 = vmatprep.subr.bf16.mxu1 %v5407_v16  ;;  %v5491_v16 = vld [vmem:[%s6126_s11 + $0x734] ss:$8 sps:$4 sm:$0xff]  }
  0xcb   : > { %3860 = vmatpush1.bf16.msra.mxu0 %v5402_v17  ;;  %v5486_v17 = vld [vmem:[%s6126_s11 + $0x630] ss:$8 sps:$4 sm:$0xff]  }
  0xcc   : > { %3903 = vmatpush1.bf16.msra.mxu1 %v5405_v18  ;;  %3861 = vmatprep.subr.bf16.mxu0 %v5410_v19  ;;  %v5489_v18 = vld [vmem:[%s6126_s11 + $0x730] ss:$8 sps:$4 sm:$0xff]   ;;  %v5494_v19 = vld [vmem:[%s6126_s11 + $0x624] ss:$8 sps:$4 sm:$0xff]  }
  0xcd   : > { %3904 = vmatprep.subr.bf16.mxu1 %v5413_v20  ;;  %v5497_v20 = vld [vmem:[%s6126_s11 + $0x724] ss:$8 sps:$4 sm:$0xff]  }
  0xcf   : > { %3862 = vmatpush1.bf16.msra.mxu0 %v5408_v21  ;;  %v5492_v21 = vld [vmem:[%s6126_s11 + $0x620] ss:$8 sps:$4 sm:$0xff]  }
  0xd0   : > { %3905 = vmatpush1.bf16.msra.mxu1 %v5411_v22  ;;  %3863 = vmatprep.subr.bf16.mxu0 %v5416_v23  ;;  %v5495_v22 = vld [vmem:[%s6126_s11 + $0x720] ss:$8 sps:$4 sm:$0xff]   ;;  %v5500_v23 = vld [vmem:[%s6126_s11 + $0x614] ss:$8 sps:$4 sm:$0xff]  }
  0xd1   : > { %3906 = vmatprep.subr.bf16.mxu1 %v5419_v24  ;;  %v5503_v24 = vld [vmem:[%s6126_s11 + $0x714] ss:$8 sps:$4 sm:$0xff]  }
  0xd3   : > { %3864 = vmatpush2.bf16.msra.mxu0 %v5414_v25  ;;  %v5498_v25 = vld [vmem:[%s6126_s11 + $0x610] ss:$8 sps:$4 sm:$0xff]  }
  0xd4   : > { %3907 = vmatpush2.bf16.msra.mxu1 %v5417_v26  ;;  %3865 = vmatprep.subr.bf16.mxu0 %v5422_v27  ;;  %v5501_v26 = vld [vmem:[%s6126_s11 + $0x710] ss:$8 sps:$4 sm:$0xff]   ;;  %v5506_v27 = vld [vmem:[%s6126_s11 + $0x604] ss:$8 sps:$4 sm:$0xff]  }
  0xd5   : > { %3908 = vmatprep.subr.bf16.mxu1 %v5425_v28  ;;  %v5509_v28 = vld [vmem:[%s6126_s11 + $0x704] ss:$8 sps:$4 sm:$0xff]  }
  0xd7   : > { %3866 = vmatpush2.bf16.msra.mxu0 %v5420_v29  ;;  %v5504_v29 = vld [vmem:[%s6126_s11 + $0x600] ss:$8 sps:$4 sm:$0xff]  }
  0xd8   : > { %3909 = vmatpush2.bf16.msra.mxu1 %v5423_v30  ;;  %3867 = vmatprep.subr.bf16.mxu0 %v5428_v31  ;;  %v5507_v30 = vld [vmem:[%s6126_s11 + $0x700] ss:$8 sps:$4 sm:$0xff]   ;;  %v5512_v31 = vld [vmem:[%s6126_s11 + $0x6f4] ss:$8 sps:$4 sm:$0xff]  }
  0xd9   : > { %3910 = vmatprep.subr.bf16.mxu1 %v5431_v32  ;;  %v5515_v32 = vld [vmem:[%s6126_s11 + $0x7f4] ss:$8 sps:$4 sm:$0xff]  }
  0xdb   : > { %3868 = vmatpush2.bf16.msra.mxu0 %v5426_v33  ;;  %v5510_v33 = vld [vmem:[%s6126_s11 + $0x6f0] ss:$8 sps:$4 sm:$0xff]  }
  0xdc   : > { %3911 = vmatpush2.bf16.msra.mxu1 %v5429_v34  ;;  %3869 = vmatprep.subr.bf16.mxu0 %v5434_v35  ;;  %v5513_v34 = vld [vmem:[%s6126_s11 + $0x7f0] ss:$8 sps:$4 sm:$0xff]   ;;  %v5518_v35 = vld [vmem:[%s6126_s11 + $0x6e4] ss:$8 sps:$4 sm:$0xff]  }
  0xdd   : > { %3912 = vmatprep.subr.bf16.mxu1 %v5437_v36  ;;  %v5521_v36 = vld [vmem:[%s6126_s11 + $0x7e4] ss:$8 sps:$4 sm:$0xff]  }
  0xdf   : > { %3870 = vmatpush2.bf16.msra.mxu0 %v5432_v37  ;;  %v5516_v37 = vld [vmem:[%s6126_s11 + $0x6e0] ss:$8 sps:$4 sm:$0xff]  }
  0xe0   : > { %3913 = vmatpush2.bf16.msra.mxu1 %v5435_v38  ;;  %3871 = vmatprep.subr.bf16.mxu0 %v5440_v39  ;;  %v5519_v38 = vld [vmem:[%s6126_s11 + $0x7e0] ss:$8 sps:$4 sm:$0xff]   ;;  %v5524_v39 = vld [vmem:[%s6126_s11 + $0x6d4] ss:$8 sps:$4 sm:$0xff]  }
  0xe1   : > { %3914 = vmatprep.subr.bf16.mxu1 %v5443_v40  ;;  %v5527_v40 = vld [vmem:[%s6126_s11 + $0x7d4] ss:$8 sps:$4 sm:$0xff]  }
  0xe3   : > { %3872 = vmatpush2.bf16.msra.mxu0 %v5438_v41  ;;  %v5522_v41 = vld [vmem:[%s6126_s11 + $0x6d0] ss:$8 sps:$4 sm:$0xff]  }
  0xe4   : > { %3915 = vmatpush2.bf16.msra.mxu1 %v5441_v42  ;;  %3873 = vmatprep.subr.bf16.mxu0 %v5446_v43  ;;  %v5525_v42 = vld [vmem:[%s6126_s11 + $0x7d0] ss:$8 sps:$4 sm:$0xff]   ;;  %v5530_v43 = vld [vmem:[%s6126_s11 + $0x6c4] ss:$8 sps:$4 sm:$0xff]  }
  0xe5   : > { %3916 = vmatprep.subr.bf16.mxu1 %v5449_v44  ;;  %v5533_v44 = vld [vmem:[%s6126_s11 + $0x7c4] ss:$8 sps:$4 sm:$0xff]  }
  0xe7   : > { %3874 = vmatpush2.bf16.msra.mxu0 %v5444_v45  ;;  %v5528_v45 = vld [vmem:[%s6126_s11 + $0x6c0] ss:$8 sps:$4 sm:$0xff]  }
  0xe8   : > { %3917 = vmatpush2.bf16.msra.mxu1 %v5447_v46  ;;  %3875 = vmatprep.subr.bf16.mxu0 %v5452_v47  ;;  %v5531_v46 = vld [vmem:[%s6126_s11 + $0x7c0] ss:$8 sps:$4 sm:$0xff]   ;;  %v5536_v47 = vld [vmem:[%s6126_s11 + $0x6b4] ss:$8 sps:$4 sm:$0xff]  }
  0xe9   : > { %3918 = vmatprep.subr.bf16.mxu1 %v5455_v48  ;;  %v5539_v48 = vld [vmem:[%s6126_s11 + $0x7b4] ss:$8 sps:$4 sm:$0xff]  }
  0xeb   : > { %3876 = vmatpush2.bf16.msra.mxu0 %v5450_v49  ;;  %v5534_v49 = vld [vmem:[%s6126_s11 + $0x6b0] ss:$8 sps:$4 sm:$0xff]  }
  0xec   : > { %3919 = vmatpush2.bf16.msra.mxu1 %v5453_v50  ;;  %3877 = vmatprep.subr.bf16.mxu0 %v5458_v51  ;;  %v5537_v50 = vld [vmem:[%s6126_s11 + $0x7b0] ss:$8 sps:$4 sm:$0xff]   ;;  %v5542_v51 = vld [vmem:[%s6126_s11 + $0x6a4] ss:$8 sps:$4 sm:$0xff]  }
  0xed   : > { %3920 = vmatprep.subr.bf16.mxu1 %v5461_v52  ;;  %v5545_v52 = vld [vmem:[%s6126_s11 + $0x7a4] ss:$8 sps:$4 sm:$0xff]  }
  0xef   : > { %3878 = vmatpush2.bf16.msra.mxu0 %v5456_v53  ;;  %v5540_v53 = vld [vmem:[%s6126_s11 + $0x6a0] ss:$8 sps:$4 sm:$0xff]  }
  0xf0   : > { %3921 = vmatpush2.bf16.msra.mxu1 %v5459_v54  ;;  %3933 = vmatprep.subr.bf16.mxu0 %v5464_v55  ;;  %v5543_v54 = vld [vmem:[%s6126_s11 + $0x7a0] ss:$8 sps:$4 sm:$0xff]   ;;  %v5548_v55 = vld [vmem:[%s6126_s11 + $0x694] ss:$8 sps:$4 sm:$0xff]  }
  0xf1   : > { %3976 = vmatprep.subr.bf16.mxu1 %v5467_v56  ;;  %v5551_v56 = vld [vmem:[%s6126_s11 + $0x794] ss:$8 sps:$4 sm:$0xff]  }
  0xf2   : > { %3880 = vmatmul.mubr.bf16.vlgmr.msra.gmra.mxu0 %v4586_v1  ;;  %v5554_v1 = vld [vmem:[%s6126_s11 + $0x684] ss:$8 sps:$4 sm:$0xff]  }
  0xf3   : > { %3923 = vmatmul.mubr.bf16.vlgmr.msra.gmra.mxu1 %v4588_v2  ;;  %3934 = vmatpush1.bf16.msra.mxu0 %v5462_v61  ;;  %v5546_v61 = vld [vmem:[%s6126_s11 + $0x690] ss:$8 sps:$4 sm:$0xff]   ;;  %v5557_v2 = vld [vmem:[%s6126_s11 + $0x784] ss:$8 sps:$4 sm:$0xff]  }
  0xf4   : > { %3977 = vmatpush1.bf16.msra.mxu1 %v5465_v62  ;;  %3935 = vmatprep.subr.bf16.mxu0 %v5470_v5  ;;  %v5549_v62 = vld [vmem:[%s6126_s11 + $0x790] ss:$8 sps:$4 sm:$0xff]   ;;  %v5552_v5 = vld [vmem:[%s6126_s11 + $0x680] ss:$8 sps:$4 sm:$0xff]  }
  0xf5   : > { %3978 = vmatprep.subr.bf16.mxu1 %v5473_v6  ;;  %3965 = vmatprep.mubr.bf16.mxu0 %v4591_v57  ;;  %v5555_v6 = vld [vmem:[%s6126_s11 + $0x780] ss:$8 sps:$4 sm:$0xff]   ;;  %v5560_v57 = vld [vmem:[%s6126_s11 + $0x874] ss:$8 sps:$4 sm:$0xff]  }
  0xf6   : > { %4008 = vmatprep.mubr.bf16.mxu1 %v4593_v58  ;;  %v5563_v58 = vld [vmem:[%s6126_s11 + $0x974] ss:$8 sps:$4 sm:$0xff]  }
  0xf7   : > { %3936 = vmatpush1.bf16.msra.mxu0 %v5468_v59  ;;  %v5558_v59 = vld [vmem:[%s6126_s11 + $0x870] ss:$8 sps:$4 sm:$0xff]  }
  0xf8   : > { %3979 = vmatpush1.bf16.msra.mxu1 %v5471_v60  ;;  %3937 = vmatprep.subr.bf16.mxu0 %v5476_v7  ;;  %v5561_v60 = vld [vmem:[%s6126_s11 + $0x970] ss:$8 sps:$4 sm:$0xff]  }
  0xf9   : > { %3980 = vmatprep.subr.bf16.mxu1 %v5479_v8  ;;  %v6452_v7 = vld [vmem:[%s6128_s12 + $0x40] sm:$0xff] }
  0xfa   : > { %v6455_v8 = vld [vmem:[%s6128_s12 + $0xc0] sm:$0xff] }
  0xfb   : > { %3938 = vmatpush1.bf16.msra.mxu0 %v5474_v9  ;;  %v4590_v9 = vcombine.low %v6368_v63, %v6371_v0  ;;  %v4595_v63 = vcombine.high %v6452_v7, %v6455_v8 }
  0xfc   : > { %3981 = vmatpush1.bf16.msra.mxu1 %v5477_v10  ;;  %3939 = vmatprep.subr.bf16.mxu0 %v5482_v11  ;;  %v4592_v10 = vcombine.low %v6378_v3, %v6381_v4  ;;  %v6462_v11 = vld [vmem:[%s6128_s12 + $0x48] sm:$0xff]  ;;  %v5564_v3 = vld [vmem:[%s6126_s11 + $0x860] ss:$8 sps:$4 sm:$0xff]  }
  0xfd   : > { %3982 = vmatprep.subr.bf16.mxu1 %v5485_v12  ;;  %v6465_v12 = vld [vmem:[%s6128_s12 + $0xc8] sm:$0xff]  ;;  %v5567_v4 = vld [vmem:[%s6126_s11 + $0x960] ss:$8 sps:$4 sm:$0xff]  }
  0xfe   : > { %v4597_v0 = vcombine.high %v6462_v11, %v6465_v12 }
  0xff   : > { %3940 = vmatpush1.bf16.msra.mxu0 %v5480_v13  ;;  %v5566_v13 = vld [vmem:[%s6126_s11 + $0x864] ss:$8 sps:$4 sm:$0xff]  }
 0x100   : > { %3983 = vmatpush1.bf16.msra.mxu1 %v5483_v14  ;;  %3941 = vmatprep.subr.bf16.mxu0 %v5488_v15  ;;  %v5569_v14 = vld [vmem:[%s6126_s11 + $0x964] ss:$8 sps:$4 sm:$0xff]   ;;  %v5572_v15 = vld [vmem:[%s6126_s11 + $0x854] ss:$8 sps:$4 sm:$0xff]  }
 0x101   : > { %3984 = vmatprep.subr.bf16.mxu1 %v5491_v16  ;;  %v5575_v16 = vld [vmem:[%s6126_s11 + $0x954] ss:$8 sps:$4 sm:$0xff]  }
 0x103   : > { %3942 = vmatpush1.bf16.msra.mxu0 %v5486_v17  ;;  %v5570_v17 = vld [vmem:[%s6126_s11 + $0x850] ss:$8 sps:$4 sm:$0xff]  }
 0x104   : > { %3985 = vmatpush1.bf16.msra.mxu1 %v5489_v18  ;;  %3943 = vmatprep.subr.bf16.mxu0 %v5494_v19  ;;  %v5573_v18 = vld [vmem:[%s6126_s11 + $0x950] ss:$8 sps:$4 sm:$0xff]   ;;  %v5578_v19 = vld [vmem:[%s6126_s11 + $0x844] ss:$8 sps:$4 sm:$0xff]  }
 0x105   : > { %3986 = vmatprep.subr.bf16.mxu1 %v5497_v20  ;;  %v5581_v20 = vld [vmem:[%s6126_s11 + $0x944] ss:$8 sps:$4 sm:$0xff]  }
 0x107   : > { %3944 = vmatpush1.bf16.msra.mxu0 %v5492_v21  ;;  %v5576_v21 = vld [vmem:[%s6126_s11 + $0x840] ss:$8 sps:$4 sm:$0xff]  }
 0x108   : > { %3987 = vmatpush1.bf16.msra.mxu1 %v5495_v22  ;;  %3945 = vmatprep.subr.bf16.mxu0 %v5500_v23  ;;  %v5579_v22 = vld [vmem:[%s6126_s11 + $0x940] ss:$8 sps:$4 sm:$0xff]   ;;  %v5584_v23 = vld [vmem:[%s6126_s11 + $0x834] ss:$8 sps:$4 sm:$0xff]  }
 0x109   : > { %3988 = vmatprep.subr.bf16.mxu1 %v5503_v24  ;;  %v5587_v24 = vld [vmem:[%s6126_s11 + $0x934] ss:$8 sps:$4 sm:$0xff]  }
 0x10b   : > { %3946 = vmatpush1.bf16.msra.mxu0 %v5498_v25  ;;  %v5582_v25 = vld [vmem:[%s6126_s11 + $0x830] ss:$8 sps:$4 sm:$0xff]  }
 0x10c   : > { %3989 = vmatpush1.bf16.msra.mxu1 %v5501_v26  ;;  %3947 = vmatprep.subr.bf16.mxu0 %v5506_v27  ;;  %v5585_v26 = vld [vmem:[%s6126_s11 + $0x930] ss:$8 sps:$4 sm:$0xff]   ;;  %v5590_v27 = vld [vmem:[%s6126_s11 + $0x824] ss:$8 sps:$4 sm:$0xff]  }
 0x10d   : > { %3990 = vmatprep.subr.bf16.mxu1 %v5509_v28  ;;  %v5593_v28 = vld [vmem:[%s6126_s11 + $0x924] ss:$8 sps:$4 sm:$0xff]  }
 0x10f   : > { %3948 = vmatpush1.bf16.msra.mxu0 %v5504_v29  ;;  %v5588_v29 = vld [vmem:[%s6126_s11 + $0x820] ss:$8 sps:$4 sm:$0xff]  }
 0x110   : > { %3991 = vmatpush1.bf16.msra.mxu1 %v5507_v30  ;;  %3949 = vmatprep.subr.bf16.mxu0 %v5512_v31  ;;  %v5591_v30 = vld [vmem:[%s6126_s11 + $0x920] ss:$8 sps:$4 sm:$0xff]   ;;  %v5596_v31 = vld [vmem:[%s6126_s11 + $0x814] ss:$8 sps:$4 sm:$0xff]  }
 0x111   : > { %3992 = vmatprep.subr.bf16.mxu1 %v5515_v32  ;;  %v5599_v32 = vld [vmem:[%s6126_s11 + $0x914] ss:$8 sps:$4 sm:$0xff]  }
 0x113   : > { %3950 = vmatpush2.bf16.msra.mxu0 %v5510_v33  ;;  %v5594_v33 = vld [vmem:[%s6126_s11 + $0x810] ss:$8 sps:$4 sm:$0xff]  }
 0x114   : > { %3993 = vmatpush2.bf16.msra.mxu1 %v5513_v34  ;;  %3951 = vmatprep.subr.bf16.mxu0 %v5518_v35  ;;  %v5597_v34 = vld [vmem:[%s6126_s11 + $0x910] ss:$8 sps:$4 sm:$0xff]   ;;  %v5602_v35 = vld [vmem:[%s6126_s11 + $0x804] ss:$8 sps:$4 sm:$0xff]  }
 0x115   : > { %3994 = vmatprep.subr.bf16.mxu1 %v5521_v36  ;;  %v5605_v36 = vld [vmem:[%s6126_s11 + $0x904] ss:$8 sps:$4 sm:$0xff]  }
 0x117   : > { %3952 = vmatpush2.bf16.msra.mxu0 %v5516_v37  ;;  %v5600_v37 = vld [vmem:[%s6126_s11 + $0x800] ss:$8 sps:$4 sm:$0xff]  }
 0x118   : > { %3995 = vmatpush2.bf16.msra.mxu1 %v5519_v38  ;;  %3953 = vmatprep.subr.bf16.mxu0 %v5524_v39  ;;  %v5603_v38 = vld [vmem:[%s6126_s11 + $0x900] ss:$8 sps:$4 sm:$0xff]   ;;  %v5608_v39 = vld [vmem:[%s6126_s11 + $0x8f4] ss:$8 sps:$4 sm:$0xff]  }
 0x119   : > { %3996 = vmatprep.subr.bf16.mxu1 %v5527_v40  ;;  %v5611_v40 = vld [vmem:[%s6126_s11 + $0x9f4] ss:$8 sps:$4 sm:$0xff]  }
 0x11b   : > { %3954 = vmatpush2.bf16.msra.mxu0 %v5522_v41  ;;  %v5606_v41 = vld [vmem:[%s6126_s11 + $0x8f0] ss:$8 sps:$4 sm:$0xff]  }
 0x11c   : > { %3997 = vmatpush2.bf16.msra.mxu1 %v5525_v42  ;;  %3955 = vmatprep.subr.bf16.mxu0 %v5530_v43  ;;  %v5609_v42 = vld [vmem:[%s6126_s11 + $0x9f0] ss:$8 sps:$4 sm:$0xff]   ;;  %v5614_v43 = vld [vmem:[%s6126_s11 + $0x8e4] ss:$8 sps:$4 sm:$0xff]  }
 0x11d   : > { %3998 = vmatprep.subr.bf16.mxu1 %v5533_v44  ;;  %v5617_v44 = vld [vmem:[%s6126_s11 + $0x9e4] ss:$8 sps:$4 sm:$0xff]  }
 0x11f   : > { %3956 = vmatpush2.bf16.msra.mxu0 %v5528_v45  ;;  %v5612_v45 = vld [vmem:[%s6126_s11 + $0x8e0] ss:$8 sps:$4 sm:$0xff]  }
 0x120   : > { %3999 = vmatpush2.bf16.msra.mxu1 %v5531_v46  ;;  %3957 = vmatprep.subr.bf16.mxu0 %v5536_v47  ;;  %v5615_v46 = vld [vmem:[%s6126_s11 + $0x9e0] ss:$8 sps:$4 sm:$0xff]   ;;  %v5620_v47 = vld [vmem:[%s6126_s11 + $0x8d4] ss:$8 sps:$4 sm:$0xff]  }
 0x121   : > { %4000 = vmatprep.subr.bf16.mxu1 %v5539_v48  ;;  %v5623_v48 = vld [vmem:[%s6126_s11 + $0x9d4] ss:$8 sps:$4 sm:$0xff]  }
 0x123   : > { %3958 = vmatpush2.bf16.msra.mxu0 %v5534_v49  ;;  %v5618_v49 = vld [vmem:[%s6126_s11 + $0x8d0] ss:$8 sps:$4 sm:$0xff]  }
 0x124   : > { %4001 = vmatpush2.bf16.msra.mxu1 %v5537_v50  ;;  %3959 = vmatprep.subr.bf16.mxu0 %v5542_v51  ;;  %v5621_v50 = vld [vmem:[%s6126_s11 + $0x9d0] ss:$8 sps:$4 sm:$0xff]   ;;  %v5626_v51 = vld [vmem:[%s6126_s11 + $0x8c4] ss:$8 sps:$4 sm:$0xff]  }
 0x125   : > { %4002 = vmatprep.subr.bf16.mxu1 %v5545_v52  ;;  %v5629_v52 = vld [vmem:[%s6126_s11 + $0x9c4] ss:$8 sps:$4 sm:$0xff]  }
 0x127   : > { %3960 = vmatpush2.bf16.msra.mxu0 %v5540_v53  ;;  %v5624_v53 = vld [vmem:[%s6126_s11 + $0x8c0] ss:$8 sps:$4 sm:$0xff]  }
 0x128   : > { %4003 = vmatpush2.bf16.msra.mxu1 %v5543_v54  ;;  %3961 = vmatprep.subr.bf16.mxu0 %v5548_v55  ;;  %v5627_v54 = vld [vmem:[%s6126_s11 + $0x9c0] ss:$8 sps:$4 sm:$0xff]   ;;  %v5632_v55 = vld [vmem:[%s6126_s11 + $0x8b4] ss:$8 sps:$4 sm:$0xff]  }
 0x129   : > { %4004 = vmatprep.subr.bf16.mxu1 %v5551_v56  ;;  %v5635_v56 = vld [vmem:[%s6126_s11 + $0x9b4] ss:$8 sps:$4 sm:$0xff]  }
 0x12b   : > { %3962 = vmatpush2.bf16.msra.mxu0 %v5546_v61  ;;  %v5630_v61 = vld [vmem:[%s6126_s11 + $0x8b0] ss:$8 sps:$4 sm:$0xff]  }
 0x12c   : > { %4005 = vmatpush2.bf16.msra.mxu1 %v5549_v62  ;;  %3963 = vmatprep.subr.bf16.mxu0 %v5554_v1  ;;  %v5633_v62 = vld [vmem:[%s6126_s11 + $0x9b0] ss:$8 sps:$4 sm:$0xff]   ;;  %v5638_v1 = vld [vmem:[%s6126_s11 + $0x8a4] ss:$8 sps:$4 sm:$0xff]  }
 0x12d   : > { %4006 = vmatprep.subr.bf16.mxu1 %v5557_v2  ;;  %v5641_v2 = vld [vmem:[%s6126_s11 + $0x9a4] ss:$8 sps:$4 sm:$0xff]  }
 0x12f   : > { %3964 = vmatpush2.bf16.msra.mxu0 %v5552_v5  ;;  %v5636_v5 = vld [vmem:[%s6126_s11 + $0x8a0] ss:$8 sps:$4 sm:$0xff]  }
 0x130   : > { %4007 = vmatpush2.bf16.msra.mxu1 %v5555_v6  ;;  %4019 = vmatprep.subr.bf16.mxu0 %v5560_v57  ;;  %v5639_v6 = vld [vmem:[%s6126_s11 + $0x9a0] ss:$8 sps:$4 sm:$0xff]   ;;  %v5644_v57 = vld [vmem:[%s6126_s11 + $0x894] ss:$8 sps:$4 sm:$0xff]  }
 0x131   : > { %4062 = vmatprep.subr.bf16.mxu1 %v5563_v58  ;;  %v5647_v58 = vld [vmem:[%s6126_s11 + $0x994] ss:$8 sps:$4 sm:$0xff]  }
 0x132   : > { %3966 = vmatmul.mubr.bf16.vlgmr.msra.gmra.mxu0 %v4590_v9  ;;  %v5650_v9 = vld [vmem:[%s6126_s11 + $0x884] ss:$8 sps:$4 sm:$0xff]  }
 0x133   : > { %4009 = vmatmul.mubr.bf16.vlgmr.msra.gmra.mxu1 %v4592_v10  ;;  %4020 = vmatpush1.bf16.msra.mxu0 %v5558_v59  ;;  %v5642_v59 = vld [vmem:[%s6126_s11 + $0x890] ss:$8 sps:$4 sm:$0xff]   ;;  %v5653_v10 = vld [vmem:[%s6126_s11 + $0x984] ss:$8 sps:$4 sm:$0xff]  }
 0x134   : > { %4063 = vmatpush1.bf16.msra.mxu1 %v5561_v60  ;;  %4021 = vmatprep.subr.bf16.mxu0 %v5566_v13  ;;  %v5645_v60 = vld [vmem:[%s6126_s11 + $0x990] ss:$8 sps:$4 sm:$0xff]   ;;  %v5648_v13 = vld [vmem:[%s6126_s11 + $0x880] ss:$8 sps:$4 sm:$0xff]  }
 0x135   : > { %4064 = vmatprep.subr.bf16.mxu1 %v5569_v14  ;;  %4051 = vmatprep.mubr.bf16.mxu0 %v4595_v63  ;;  %v5651_v14 = vld [vmem:[%s6126_s11 + $0x980] ss:$8 sps:$4 sm:$0xff]   ;;  %v5656_v63 = vld [vmem:[%s6126_s11 + $0xa74] ss:$8 sps:$4 sm:$0xff]  }
 0x136   : > { %4094 = vmatprep.mubr.bf16.mxu1 %v4597_v0  ;;  %v5659_v0 = vld [vmem:[%s6126_s11 + $0xb74] ss:$8 sps:$4 sm:$0xff]  }
 0x137   : > { %4022 = vmatpush1.bf16.msra.mxu0 %v5564_v3  ;;  %v6534_v3 = vld [vmem:[%s6128_s12 + $0x50] sm:$0xff] }
 0x138   : > { %4065 = vmatpush1.bf16.msra.mxu1 %v5567_v4  ;;  %4023 = vmatprep.subr.bf16.mxu0 %v5572_v15  ;;  %v5654_v4 = vld [vmem:[%s6126_s11 + $0xa70] ss:$8 sps:$4 sm:$0xff]   ;;  %v4594_v15 = vcombine.low %v6452_v7, %v6455_v8  ;;  %v5665_v7 = vld [vmem:[%s6126_s11 + $0xb64] ss:$8 sps:$4 sm:$0xff]   ;;  %v5660_v8 = vld [vmem:[%s6126_s11 + $0xa60] ss:$8 sps:$4 sm:$0xff]  }
 0x139   : > { %4066 = vmatprep.subr.bf16.mxu1 %v5575_v16  ;;  %v4596_v16 = vcombine.low %v6462_v11, %v6465_v12 }
 0x13b   : > { %4024 = vmatpush1.bf16.msra.mxu0 %v5570_v17  ;;  %v6542_v17 = vld [vmem:[%s6128_s12 + $0xd0] sm:$0xff] }
 0x13c   : > { %4067 = vmatpush1.bf16.msra.mxu1 %v5573_v18  ;;  %4025 = vmatprep.subr.bf16.mxu0 %v5578_v19  ;;  %v6545_v18 = vld [vmem:[%s6128_s12 + $0x58] sm:$0xff]  ;;  %v4599_v11 = vcombine.high %v6534_v3, %v6542_v17 }
 0x13d   : > { %4068 = vmatprep.subr.bf16.mxu1 %v5581_v20  ;;  %v6548_v19 = vld [vmem:[%s6128_s12 + $0xd8] sm:$0xff]  ;;  %v5657_v20 = vld [vmem:[%s6126_s11 + $0xb70] ss:$8 sps:$4 sm:$0xff]  }
 0x13e   : > { %v4601_v12 = vcombine.high %v6545_v18, %v6548_v19 }
 0x13f   : > { %4026 = vmatpush1.bf16.msra.mxu0 %v5576_v21  ;;  %v5662_v21 = vld [vmem:[%s6126_s11 + $0xa64] ss:$8 sps:$4 sm:$0xff]  }
 0x140   : > { %4069 = vmatpush1.bf16.msra.mxu1 %v5579_v22  ;;  %4027 = vmatprep.subr.bf16.mxu0 %v5584_v23  ;;  %v5663_v22 = vld [vmem:[%s6126_s11 + $0xb60] ss:$8 sps:$4 sm:$0xff]   ;;  %v5668_v23 = vld [vmem:[%s6126_s11 + $0xa54] ss:$8 sps:$4 sm:$0xff]  }
 0x141   : > { %4070 = vmatprep.subr.bf16.mxu1 %v5587_v24  ;;  %v5671_v24 = vld [vmem:[%s6126_s11 + $0xb54] ss:$8 sps:$4 sm:$0xff]  }
 0x143   : > { %4028 = vmatpush1.bf16.msra.mxu0 %v5582_v25  ;;  %v5666_v25 = vld [vmem:[%s6126_s11 + $0xa50] ss:$8 sps:$4 sm:$0xff]  }
 0x144   : > { %4071 = vmatpush1.bf16.msra.mxu1 %v5585_v26  ;;  %4029 = vmatprep.subr.bf16.mxu0 %v5590_v27  ;;  %v5669_v26 = vld [vmem:[%s6126_s11 + $0xb50] ss:$8 sps:$4 sm:$0xff]   ;;  %v5674_v27 = vld [vmem:[%s6126_s11 + $0xa44] ss:$8 sps:$4 sm:$0xff]  }
 0x145   : > { %4072 = vmatprep.subr.bf16.mxu1 %v5593_v28  ;;  %v5677_v28 = vld [vmem:[%s6126_s11 + $0xb44] ss:$8 sps:$4 sm:$0xff]  }
 0x147   : > { %4030 = vmatpush1.bf16.msra.mxu0 %v5588_v29  ;;  %v5672_v29 = vld [vmem:[%s6126_s11 + $0xa40] ss:$8 sps:$4 sm:$0xff]  }
 0x148   : > { %4073 = vmatpush1.bf16.msra.mxu1 %v5591_v30  ;;  %4031 = vmatprep.subr.bf16.mxu0 %v5596_v31  ;;  %v5675_v30 = vld [vmem:[%s6126_s11 + $0xb40] ss:$8 sps:$4 sm:$0xff]   ;;  %v5680_v31 = vld [vmem:[%s6126_s11 + $0xa34] ss:$8 sps:$4 sm:$0xff]  }
 0x149   : > { %4074 = vmatprep.subr.bf16.mxu1 %v5599_v32  ;;  %v5683_v32 = vld [vmem:[%s6126_s11 + $0xb34] ss:$8 sps:$4 sm:$0xff]  }
 0x14b   : > { %4032 = vmatpush1.bf16.msra.mxu0 %v5594_v33  ;;  %v5678_v33 = vld [vmem:[%s6126_s11 + $0xa30] ss:$8 sps:$4 sm:$0xff]  }
 0x14c   : > { %4075 = vmatpush1.bf16.msra.mxu1 %v5597_v34  ;;  %4033 = vmatprep.subr.bf16.mxu0 %v5602_v35  ;;  %v5681_v34 = vld [vmem:[%s6126_s11 + $0xb30] ss:$8 sps:$4 sm:$0xff]   ;;  %v5686_v35 = vld [vmem:[%s6126_s11 + $0xa24] ss:$8 sps:$4 sm:$0xff]  }
 0x14d   : > { %4076 = vmatprep.subr.bf16.mxu1 %v5605_v36  ;;  %v5689_v36 = vld [vmem:[%s6126_s11 + $0xb24] ss:$8 sps:$4 sm:$0xff]  }
 0x14f   : > { %4034 = vmatpush1.bf16.msra.mxu0 %v5600_v37  ;;  %v5684_v37 = vld [vmem:[%s6126_s11 + $0xa20] ss:$8 sps:$4 sm:$0xff]  }
 0x150   : > { %4077 = vmatpush1.bf16.msra.mxu1 %v5603_v38  ;;  %4035 = vmatprep.subr.bf16.mxu0 %v5608_v39  ;;  %v5687_v38 = vld [vmem:[%s6126_s11 + $0xb20] ss:$8 sps:$4 sm:$0xff]   ;;  %v5692_v39 = vld [vmem:[%s6126_s11 + $0xa14] ss:$8 sps:$4 sm:$0xff]  }
 0x151   : > { %4078 = vmatprep.subr.bf16.mxu1 %v5611_v40  ;;  %v5695_v40 = vld [vmem:[%s6126_s11 + $0xb14] ss:$8 sps:$4 sm:$0xff]  }
 0x153   : > { %4036 = vmatpush2.bf16.msra.mxu0 %v5606_v41  ;;  %v5690_v41 = vld [vmem:[%s6126_s11 + $0xa10] ss:$8 sps:$4 sm:$0xff]  }
 0x154   : > { %4079 = vmatpush2.bf16.msra.mxu1 %v5609_v42  ;;  %4037 = vmatprep.subr.bf16.mxu0 %v5614_v43  ;;  %v5693_v42 = vld [vmem:[%s6126_s11 + $0xb10] ss:$8 sps:$4 sm:$0xff]   ;;  %v5698_v43 = vld [vmem:[%s6126_s11 + $0xa04] ss:$8 sps:$4 sm:$0xff]  }
 0x155   : > { %4080 = vmatprep.subr.bf16.mxu1 %v5617_v44  ;;  %v5701_v44 = vld [vmem:[%s6126_s11 + $0xb04] ss:$8 sps:$4 sm:$0xff]  }
 0x157   : > { %4038 = vmatpush2.bf16.msra.mxu0 %v5612_v45  ;;  %v5696_v45 = vld [vmem:[%s6126_s11 + $0xa00] ss:$8 sps:$4 sm:$0xff]  }
 0x158   : > { %4081 = vmatpush2.bf16.msra.mxu1 %v5615_v46  ;;  %4039 = vmatprep.subr.bf16.mxu0 %v5620_v47  ;;  %v5699_v46 = vld [vmem:[%s6126_s11 + $0xb00] ss:$8 sps:$4 sm:$0xff]   ;;  %v5704_v47 = vld [vmem:[%s6126_s11 + $0xaf4] ss:$8 sps:$4 sm:$0xff]  }
 0x159   : > { %4082 = vmatprep.subr.bf16.mxu1 %v5623_v48  ;;  %v5707_v48 = vld [vmem:[%s6126_s11 + $0xbf4] ss:$8 sps:$4 sm:$0xff]  }
 0x15b   : > { %4040 = vmatpush2.bf16.msra.mxu0 %v5618_v49  ;;  %v5702_v49 = vld [vmem:[%s6126_s11 + $0xaf0] ss:$8 sps:$4 sm:$0xff]  }
 0x15c   : > { %4083 = vmatpush2.bf16.msra.mxu1 %v5621_v50  ;;  %4041 = vmatprep.subr.bf16.mxu0 %v5626_v51  ;;  %v5705_v50 = vld [vmem:[%s6126_s11 + $0xbf0] ss:$8 sps:$4 sm:$0xff]   ;;  %v5710_v51 = vld [vmem:[%s6126_s11 + $0xae4] ss:$8 sps:$4 sm:$0xff]  }
 0x15d   : > { %4084 = vmatprep.subr.bf16.mxu1 %v5629_v52  ;;  %v5713_v52 = vld [vmem:[%s6126_s11 + $0xbe4] ss:$8 sps:$4 sm:$0xff]  }
 0x15f   : > { %4042 = vmatpush2.bf16.msra.mxu0 %v5624_v53  ;;  %v5708_v53 = vld [vmem:[%s6126_s11 + $0xae0] ss:$8 sps:$4 sm:$0xff]  }
 0x160   : > { %4085 = vmatpush2.bf16.msra.mxu1 %v5627_v54  ;;  %4043 = vmatprep.subr.bf16.mxu0 %v5632_v55  ;;  %v5711_v54 = vld [vmem:[%s6126_s11 + $0xbe0] ss:$8 sps:$4 sm:$0xff]   ;;  %v5716_v55 = vld [vmem:[%s6126_s11 + $0xad4] ss:$8 sps:$4 sm:$0xff]  }
 0x161   : > { %4086 = vmatprep.subr.bf16.mxu1 %v5635_v56  ;;  %v5719_v56 = vld [vmem:[%s6126_s11 + $0xbd4] ss:$8 sps:$4 sm:$0xff]  }
 0x163   : > { %4044 = vmatpush2.bf16.msra.mxu0 %v5630_v61  ;;  %v5714_v61 = vld [vmem:[%s6126_s11 + $0xad0] ss:$8 sps:$4 sm:$0xff]  }
 0x164   : > { %4087 = vmatpush2.bf16.msra.mxu1 %v5633_v62  ;;  %4045 = vmatprep.subr.bf16.mxu0 %v5638_v1  ;;  %v5717_v62 = vld [vmem:[%s6126_s11 + $0xbd0] ss:$8 sps:$4 sm:$0xff]   ;;  %v5722_v1 = vld [vmem:[%s6126_s11 + $0xac4] ss:$8 sps:$4 sm:$0xff]  }
 0x165   : > { %4088 = vmatprep.subr.bf16.mxu1 %v5641_v2  ;;  %v5725_v2 = vld [vmem:[%s6126_s11 + $0xbc4] ss:$8 sps:$4 sm:$0xff]  }
 0x167   : > { %4046 = vmatpush2.bf16.msra.mxu0 %v5636_v5  ;;  %v5720_v5 = vld [vmem:[%s6126_s11 + $0xac0] ss:$8 sps:$4 sm:$0xff]  }
 0x168   : > { %4089 = vmatpush2.bf16.msra.mxu1 %v5639_v6  ;;  %4047 = vmatprep.subr.bf16.mxu0 %v5644_v57  ;;  %v5723_v6 = vld [vmem:[%s6126_s11 + $0xbc0] ss:$8 sps:$4 sm:$0xff]   ;;  %v5728_v57 = vld [vmem:[%s6126_s11 + $0xab4] ss:$8 sps:$4 sm:$0xff]  }
 0x169   : > { %4090 = vmatprep.subr.bf16.mxu1 %v5647_v58  ;;  %v5731_v58 = vld [vmem:[%s6126_s11 + $0xbb4] ss:$8 sps:$4 sm:$0xff]  }
 0x16b   : > { %4048 = vmatpush2.bf16.msra.mxu0 %v5642_v59  ;;  %v5726_v59 = vld [vmem:[%s6126_s11 + $0xab0] ss:$8 sps:$4 sm:$0xff]  }
 0x16c   : > { %4091 = vmatpush2.bf16.msra.mxu1 %v5645_v60  ;;  %4049 = vmatprep.subr.bf16.mxu0 %v5650_v9  ;;  %v5729_v60 = vld [vmem:[%s6126_s11 + $0xbb0] ss:$8 sps:$4 sm:$0xff]   ;;  %v5734_v9 = vld [vmem:[%s6126_s11 + $0xaa4] ss:$8 sps:$4 sm:$0xff]  }
 0x16d   : > { %4092 = vmatprep.subr.bf16.mxu1 %v5653_v10  ;;  %v5737_v10 = vld [vmem:[%s6126_s11 + $0xba4] ss:$8 sps:$4 sm:$0xff]  }
 0x16f   : > { %4050 = vmatpush2.bf16.msra.mxu0 %v5648_v13  ;;  %v5732_v13 = vld [vmem:[%s6126_s11 + $0xaa0] ss:$8 sps:$4 sm:$0xff]  }
 0x170   : > { %4093 = vmatpush2.bf16.msra.mxu1 %v5651_v14  ;;  %4105 = vmatprep.subr.bf16.mxu0 %v5656_v63  ;;  %v5735_v14 = vld [vmem:[%s6126_s11 + $0xba0] ss:$8 sps:$4 sm:$0xff]   ;;  %v5740_v63 = vld [vmem:[%s6126_s11 + $0xa94] ss:$8 sps:$4 sm:$0xff]  }
 0x171   : > { %4148 = vmatprep.subr.bf16.mxu1 %v5659_v0  ;;  %v5743_v0 = vld [vmem:[%s6126_s11 + $0xb94] ss:$8 sps:$4 sm:$0xff]  }
 0x172   : > { %4052 = vmatmul.mubr.bf16.vlgmr.msra.gmra.mxu0 %v4594_v15  ;;  %v5741_v15 = vld [vmem:[%s6126_s11 + $0xb90] ss:$8 sps:$4 sm:$0xff]  }
 0x173   : > { %4095 = vmatmul.mubr.bf16.vlgmr.msra.gmra.mxu1 %v4596_v16  ;;  %4106 = vmatpush1.bf16.msra.mxu0 %v5654_v4  ;;  %v5738_v4 = vld [vmem:[%s6126_s11 + $0xa90] ss:$8 sps:$4 sm:$0xff]   ;;  %v5746_v16 = vld [vmem:[%s6126_s11 + $0xa84] ss:$8 sps:$4 sm:$0xff]  }
 0x174   : > { %4149 = vmatpush1.bf16.msra.mxu1 %v5657_v20  ;;  %4107 = vmatprep.subr.bf16.mxu0 %v5662_v21  ;;  %v5749_v20 = vld [vmem:[%s6126_s11 + $0xb84] ss:$8 sps:$4 sm:$0xff]   ;;  %v5744_v21 = vld [vmem:[%s6126_s11 + $0xa80] ss:$8 sps:$4 sm:$0xff]  }
 0x175   : > { %4150 = vmatprep.subr.bf16.mxu1 %v5665_v7  ;;  %4137 = vmatprep.mubr.bf16.mxu0 %v4599_v11  ;;  %v5747_v7 = vld [vmem:[%s6126_s11 + $0xb80] ss:$8 sps:$4 sm:$0xff]   ;;  %v6618_v11 = vld [vmem:[%s6128_s12 + $0x60] sm:$0xff] }
 0x176   : > { %4180 = vmatprep.mubr.bf16.mxu1 %v4601_v12  ;;  %v4598_v12 = vcombine.low %v6534_v3, %v6542_v17  ;;  %v5758_v3 = vld [vmem:[%s6126_s11 + $0xc64] ss:$8 sps:$4 sm:$0xff]  }
 0x177   : > { %4108 = vmatpush1.bf16.msra.mxu0 %v5660_v8  ;;  %v5752_v8 = vld [vmem:[%s6126_s11 + $0xc74] ss:$8 sps:$4 sm:$0xff]   ;;  %v5761_v17 = vld [vmem:[%s6126_s11 + $0xd64] ss:$8 sps:$4 sm:$0xff]  }
 0x178   : > { %4151 = vmatpush1.bf16.msra.mxu1 %v5663_v22  ;;  %4109 = vmatprep.subr.bf16.mxu0 %v5668_v23  ;;  %v5755_v22 = vld [vmem:[%s6126_s11 + $0xd74] ss:$8 sps:$4 sm:$0xff]   ;;  %v4600_v23 = vcombine.low %v6545_v18, %v6548_v19 }
 0x179   : > { %4152 = vmatprep.subr.bf16.mxu1 %v5671_v24  ;;  %v6625_v24 = vld [vmem:[%s6128_s12 + $0xe0] sm:$0xff] }
 0x17a   : > { %v4603_v18 = vcombine.high %v6618_v11, %v6625_v24 }
 0x17b   : > { %4110 = vmatpush1.bf16.msra.mxu0 %v5666_v25  ;;  %v6628_v25 = vld [vmem:[%s6128_s12 + $0x68] sm:$0xff] }
 0x17c   : > { %4153 = vmatpush1.bf16.msra.mxu1 %v5669_v26  ;;  %4111 = vmatprep.subr.bf16.mxu0 %v5674_v27  ;;  %v6631_v26 = vld [vmem:[%s6128_s12 + $0xe8] sm:$0xff] }
 0x17d   : > { %4154 = vmatprep.subr.bf16.mxu1 %v5677_v28  ;;  %v5750_v27 = vld [vmem:[%s6126_s11 + $0xc70] ss:$8 sps:$4 sm:$0xff]   ;;  %v4605_v19 = vcombine.high %v6628_v25, %v6631_v26 }
 0x17e   : > { %v5753_v28 = vld [vmem:[%s6126_s11 + $0xd70] ss:$8 sps:$4 sm:$0xff]  }
 0x17f   : > { %4112 = vmatpush1.bf16.msra.mxu0 %v5672_v29  ;;  %v5756_v29 = vld [vmem:[%s6126_s11 + $0xc60] ss:$8 sps:$4 sm:$0xff]  }
 0x180   : > { %4155 = vmatpush1.bf16.msra.mxu1 %v5675_v30  ;;  %4113 = vmatprep.subr.bf16.mxu0 %v5680_v31  ;;  %v5759_v30 = vld [vmem:[%s6126_s11 + $0xd60] ss:$8 sps:$4 sm:$0xff]   ;;  %v5764_v31 = vld [vmem:[%s6126_s11 + $0xc54] ss:$8 sps:$4 sm:$0xff]  }
 0x181   : > { %4156 = vmatprep.subr.bf16.mxu1 %v5683_v32  ;;  %v5767_v32 = vld [vmem:[%s6126_s11 + $0xd54] ss:$8 sps:$4 sm:$0xff]  }
 0x183   : > { %4114 = vmatpush1.bf16.msra.mxu0 %v5678_v33  ;;  %v5762_v33 = vld [vmem:[%s6126_s11 + $0xc50] ss:$8 sps:$4 sm:$0xff]  }
 0x184   : > { %4157 = vmatpush1.bf16.msra.mxu1 %v5681_v34  ;;  %4115 = vmatprep.subr.bf16.mxu0 %v5686_v35  ;;  %v5765_v34 = vld [vmem:[%s6126_s11 + $0xd50] ss:$8 sps:$4 sm:$0xff]   ;;  %v5770_v35 = vld [vmem:[%s6126_s11 + $0xc44] ss:$8 sps:$4 sm:$0xff]  }
 0x185   : > { %4158 = vmatprep.subr.bf16.mxu1 %v5689_v36  ;;  %v5773_v36 = vld [vmem:[%s6126_s11 + $0xd44] ss:$8 sps:$4 sm:$0xff]  }
 0x187   : > { %4116 = vmatpush1.bf16.msra.mxu0 %v5684_v37  ;;  %v5768_v37 = vld [vmem:[%s6126_s11 + $0xc40] ss:$8 sps:$4 sm:$0xff]  }
 0x188   : > { %4159 = vmatpush1.bf16.msra.mxu1 %v5687_v38  ;;  %4117 = vmatprep.subr.bf16.mxu0 %v5692_v39  ;;  %v5771_v38 = vld [vmem:[%s6126_s11 + $0xd40] ss:$8 sps:$4 sm:$0xff]   ;;  %v5776_v39 = vld [vmem:[%s6126_s11 + $0xc34] ss:$8 sps:$4 sm:$0xff]  }
 0x189   : > { %4160 = vmatprep.subr.bf16.mxu1 %v5695_v40  ;;  %v5779_v40 = vld [vmem:[%s6126_s11 + $0xd34] ss:$8 sps:$4 sm:$0xff]  }
 0x18b   : > { %4118 = vmatpush1.bf16.msra.mxu0 %v5690_v41  ;;  %v5774_v41 = vld [vmem:[%s6126_s11 + $0xc30] ss:$8 sps:$4 sm:$0xff]  }
 0x18c   : > { %4161 = vmatpush1.bf16.msra.mxu1 %v5693_v42  ;;  %4119 = vmatprep.subr.bf16.mxu0 %v5698_v43  ;;  %v5777_v42 = vld [vmem:[%s6126_s11 + $0xd30] ss:$8 sps:$4 sm:$0xff]   ;;  %v5782_v43 = vld [vmem:[%s6126_s11 + $0xc24] ss:$8 sps:$4 sm:$0xff]  }
 0x18d   : > { %4162 = vmatprep.subr.bf16.mxu1 %v5701_v44  ;;  %v5785_v44 = vld [vmem:[%s6126_s11 + $0xd24] ss:$8 sps:$4 sm:$0xff]  }
 0x18f   : > { %4120 = vmatpush1.bf16.msra.mxu0 %v5696_v45  ;;  %v5780_v45 = vld [vmem:[%s6126_s11 + $0xc20] ss:$8 sps:$4 sm:$0xff]  }
 0x190   : > { %4163 = vmatpush1.bf16.msra.mxu1 %v5699_v46  ;;  %4121 = vmatprep.subr.bf16.mxu0 %v5704_v47  ;;  %v5783_v46 = vld [vmem:[%s6126_s11 + $0xd20] ss:$8 sps:$4 sm:$0xff]   ;;  %v5788_v47 = vld [vmem:[%s6126_s11 + $0xc14] ss:$8 sps:$4 sm:$0xff]  }
 0x191   : > { %4164 = vmatprep.subr.bf16.mxu1 %v5707_v48  ;;  %v5791_v48 = vld [vmem:[%s6126_s11 + $0xd14] ss:$8 sps:$4 sm:$0xff]  }
 0x193   : > { %4122 = vmatpush2.bf16.msra.mxu0 %v5702_v49  ;;  %v5786_v49 = vld [vmem:[%s6126_s11 + $0xc10] ss:$8 sps:$4 sm:$0xff]  }
 0x194   : > { %4165 = vmatpush2.bf16.msra.mxu1 %v5705_v50  ;;  %4123 = vmatprep.subr.bf16.mxu0 %v5710_v51  ;;  %v5789_v50 = vld [vmem:[%s6126_s11 + $0xd10] ss:$8 sps:$4 sm:$0xff]   ;;  %v5794_v51 = vld [vmem:[%s6126_s11 + $0xc04] ss:$8 sps:$4 sm:$0xff]  }
 0x195   : > { %4166 = vmatprep.subr.bf16.mxu1 %v5713_v52  ;;  %v5797_v52 = vld [vmem:[%s6126_s11 + $0xd04] ss:$8 sps:$4 sm:$0xff]  }
 0x197   : > { %4124 = vmatpush2.bf16.msra.mxu0 %v5708_v53  ;;  %v5792_v53 = vld [vmem:[%s6126_s11 + $0xc00] ss:$8 sps:$4 sm:$0xff]  }
 0x198   : > { %4167 = vmatpush2.bf16.msra.mxu1 %v5711_v54  ;;  %4125 = vmatprep.subr.bf16.mxu0 %v5716_v55  ;;  %v5795_v54 = vld [vmem:[%s6126_s11 + $0xd00] ss:$8 sps:$4 sm:$0xff]   ;;  %v5800_v55 = vld [vmem:[%s6126_s11 + $0xcf4] ss:$8 sps:$4 sm:$0xff]  }
 0x199   : > { %4168 = vmatprep.subr.bf16.mxu1 %v5719_v56  ;;  %v5803_v56 = vld [vmem:[%s6126_s11 + $0xdf4] ss:$8 sps:$4 sm:$0xff]  }
 0x19b   : > { %4126 = vmatpush2.bf16.msra.mxu0 %v5714_v61  ;;  %v5798_v61 = vld [vmem:[%s6126_s11 + $0xcf0] ss:$8 sps:$4 sm:$0xff]  }
 0x19c   : > { %4169 = vmatpush2.bf16.msra.mxu1 %v5717_v62  ;;  %4127 = vmatprep.subr.bf16.mxu0 %v5722_v1  ;;  %v5801_v62 = vld [vmem:[%s6126_s11 + $0xdf0] ss:$8 sps:$4 sm:$0xff]   ;;  %v5806_v1 = vld [vmem:[%s6126_s11 + $0xce4] ss:$8 sps:$4 sm:$0xff]  }
 0x19d   : > { %4170 = vmatprep.subr.bf16.mxu1 %v5725_v2  ;;  %v5809_v2 = vld [vmem:[%s6126_s11 + $0xde4] ss:$8 sps:$4 sm:$0xff]  }
 0x19f   : > { %4128 = vmatpush2.bf16.msra.mxu0 %v5720_v5  ;;  %v5804_v5 = vld [vmem:[%s6126_s11 + $0xce0] ss:$8 sps:$4 sm:$0xff]  }
 0x1a0   : > { %4171 = vmatpush2.bf16.msra.mxu1 %v5723_v6  ;;  %4129 = vmatprep.subr.bf16.mxu0 %v5728_v57  ;;  %v5807_v6 = vld [vmem:[%s6126_s11 + $0xde0] ss:$8 sps:$4 sm:$0xff]   ;;  %v5812_v57 = vld [vmem:[%s6126_s11 + $0xcd4] ss:$8 sps:$4 sm:$0xff]  }
 0x1a1   : > { %4172 = vmatprep.subr.bf16.mxu1 %v5731_v58  ;;  %v5815_v58 = vld [vmem:[%s6126_s11 + $0xdd4] ss:$8 sps:$4 sm:$0xff]  }
 0x1a3   : > { %4130 = vmatpush2.bf16.msra.mxu0 %v5726_v59  ;;  %v5810_v59 = vld [vmem:[%s6126_s11 + $0xcd0] ss:$8 sps:$4 sm:$0xff]  }
 0x1a4   : > { %4173 = vmatpush2.bf16.msra.mxu1 %v5729_v60  ;;  %4131 = vmatprep.subr.bf16.mxu0 %v5734_v9  ;;  %v5813_v60 = vld [vmem:[%s6126_s11 + $0xdd0] ss:$8 sps:$4 sm:$0xff]   ;;  %v5818_v9 = vld [vmem:[%s6126_s11 + $0xcc4] ss:$8 sps:$4 sm:$0xff]  }
 0x1a5   : > { %4174 = vmatprep.subr.bf16.mxu1 %v5737_v10  ;;  %v5821_v10 = vld [vmem:[%s6126_s11 + $0xdc4] ss:$8 sps:$4 sm:$0xff]  }
 0x1a7   : > { %4132 = vmatpush2.bf16.msra.mxu0 %v5732_v13  ;;  %v5816_v13 = vld [vmem:[%s6126_s11 + $0xcc0] ss:$8 sps:$4 sm:$0xff]  }
 0x1a8   : > { %4175 = vmatpush2.bf16.msra.mxu1 %v5735_v14  ;;  %4133 = vmatprep.subr.bf16.mxu0 %v5740_v63  ;;  %v5819_v14 = vld [vmem:[%s6126_s11 + $0xdc0] ss:$8 sps:$4 sm:$0xff]   ;;  %v5824_v63 = vld [vmem:[%s6126_s11 + $0xcb4] ss:$8 sps:$4 sm:$0xff]  }
 0x1a9   : > { %4176 = vmatprep.subr.bf16.mxu1 %v5743_v0  ;;  %v5827_v0 = vld [vmem:[%s6126_s11 + $0xdb4] ss:$8 sps:$4 sm:$0xff]  }
 0x1ab   : > { %4134 = vmatpush2.bf16.msra.mxu0 %v5738_v4  ;;  %v5822_v4 = vld [vmem:[%s6126_s11 + $0xcb0] ss:$8 sps:$4 sm:$0xff]  }
 0x1ac   : > { %4177 = vmatpush2.bf16.msra.mxu1 %v5741_v15  ;;  %4135 = vmatprep.subr.bf16.mxu0 %v5746_v16  ;;  %v5825_v15 = vld [vmem:[%s6126_s11 + $0xdb0] ss:$8 sps:$4 sm:$0xff]   ;;  %v5830_v16 = vld [vmem:[%s6126_s11 + $0xca4] ss:$8 sps:$4 sm:$0xff]  }
 0x1ad   : > { %4178 = vmatprep.subr.bf16.mxu1 %v5749_v20  ;;  %v5833_v20 = vld [vmem:[%s6126_s11 + $0xda4] ss:$8 sps:$4 sm:$0xff]  }
 0x1af   : > { %4136 = vmatpush2.bf16.msra.mxu0 %v5744_v21  ;;  %v5828_v21 = vld [vmem:[%s6126_s11 + $0xca0] ss:$8 sps:$4 sm:$0xff]  }
 0x1b0   : > { %4179 = vmatpush2.bf16.msra.mxu1 %v5747_v7  ;;  %4191 = vmatprep.subr.bf16.mxu0 %v5752_v8  ;;  %v5831_v7 = vld [vmem:[%s6126_s11 + $0xda0] ss:$8 sps:$4 sm:$0xff]   ;;  %v5836_v8 = vld [vmem:[%s6126_s11 + $0xc94] ss:$8 sps:$4 sm:$0xff]  }
 0x1b1   : > { %4234 = vmatprep.subr.bf16.mxu1 %v5755_v22  ;;  %v5839_v22 = vld [vmem:[%s6126_s11 + $0xd94] ss:$8 sps:$4 sm:$0xff]  }
 0x1b2   : > { %4138 = vmatmul.mubr.bf16.vlgmr.msra.gmra.mxu0 %v4598_v12  ;;  %v5834_v12 = vld [vmem:[%s6126_s11 + $0xc90] ss:$8 sps:$4 sm:$0xff]  }
 0x1b3   : > { %4181 = vmatmul.mubr.bf16.vlgmr.msra.gmra.mxu1 %v4600_v23  ;;  %4192 = vmatpush1.bf16.msra.mxu0 %v5750_v27  ;;  %v5837_v23 = vld [vmem:[%s6126_s11 + $0xd90] ss:$8 sps:$4 sm:$0xff]   ;;  %v5842_v27 = vld [vmem:[%s6126_s11 + $0xc84] ss:$8 sps:$4 sm:$0xff]  }
 0x1b4   : > { %4235 = vmatpush1.bf16.msra.mxu1 %v5753_v28  ;;  %4193 = vmatprep.subr.bf16.mxu0 %v5758_v3  ;;  %v5845_v28 = vld [vmem:[%s6126_s11 + $0xd84] ss:$8 sps:$4 sm:$0xff]   ;;  %v5840_v3 = vld [vmem:[%s6126_s11 + $0xc80] ss:$8 sps:$4 sm:$0xff]  }
 0x1b5   : > { %4236 = vmatprep.subr.bf16.mxu1 %v5761_v17  ;;  %4223 = vmatprep.mubr.bf16.mxu0 %v4603_v18  ;;  %v5843_v17 = vld [vmem:[%s6126_s11 + $0xd80] ss:$8 sps:$4 sm:$0xff]   ;;  %v5848_v18 = vld [vmem:[%s6126_s11 + $0xe74] ss:$8 sps:$4 sm:$0xff]  }
 0x1b6   : > { %4266 = vmatprep.mubr.bf16.mxu1 %v4605_v19  ;;  %v5851_v19 = vld [vmem:[%s6126_s11 + $0xf74] ss:$8 sps:$4 sm:$0xff]  }
 0x1b7   : > { %4194 = vmatpush1.bf16.msra.mxu0 %v5756_v29  ;;  %v6702_v29 = vld [vmem:[%s6128_s12 + $0x70] sm:$0xff] }
 0x1b8   : > { %4237 = vmatpush1.bf16.msra.mxu1 %v5759_v30  ;;  %4195 = vmatprep.subr.bf16.mxu0 %v5764_v31  ;;  %v4602_v30 = vcombine.low %v6618_v11, %v6625_v24  ;;  %v4604_v31 = vcombine.low %v6628_v25, %v6631_v26  ;;  %v5854_v11 = vld [vmem:[%s6126_s11 + $0xe64] ss:$8 sps:$4 sm:$0xff]  }
 0x1b9   : > { %4238 = vmatprep.subr.bf16.mxu1 %v5767_v32  ;;  %v6709_v32 = vld [vmem:[%s6128_s12 + $0xf0] sm:$0xff] }
 0x1ba   : > { %v5857_v24 = vld [vmem:[%s6126_s11 + $0xf64] ss:$8 sps:$4 sm:$0xff]   ;;  %v4607_v25 = vcombine.high %v6702_v29, %v6709_v32 }
 0x1bb   : > { %4196 = vmatpush1.bf16.msra.mxu0 %v5762_v33  ;;  %v6712_v33 = vld [vmem:[%s6128_s12 + $0x78] sm:$0xff] }
 0x1bc   : > { %4239 = vmatpush1.bf16.msra.mxu1 %v5765_v34  ;;  %4197 = vmatprep.subr.bf16.mxu0 %v5770_v35  ;;  %v6715_v34 = vld [vmem:[%s6128_s12 + $0xf8] sm:$0xff]  ;;  %v5846_v35 = vld [vmem:[%s6126_s11 + $0xe70] ss:$8 sps:$4 sm:$0xff]  }
 0x1bd   : > { %4240 = vmatprep.subr.bf16.mxu1 %v5773_v36  ;;  %v5849_v36 = vld [vmem:[%s6126_s11 + $0xf70] ss:$8 sps:$4 sm:$0xff]   ;;  %v4609_v26 = vcombine.high %v6712_v33, %v6715_v34 }
 0x1bf   : > { %4198 = vmatpush1.bf16.msra.mxu0 %v5768_v37  ;;  %v5852_v37 = vld [vmem:[%s6126_s11 + $0xe60] ss:$8 sps:$4 sm:$0xff]  }
 0x1c0   : > { %4241 = vmatpush1.bf16.msra.mxu1 %v5771_v38  ;;  %4199 = vmatprep.subr.bf16.mxu0 %v5776_v39  ;;  %v5855_v38 = vld [vmem:[%s6126_s11 + $0xf60] ss:$8 sps:$4 sm:$0xff]   ;;  %v5860_v39 = vld [vmem:[%s6126_s11 + $0xe54] ss:$8 sps:$4 sm:$0xff]  }
 0x1c1   : > { %4242 = vmatprep.subr.bf16.mxu1 %v5779_v40  ;;  %v5863_v40 = vld [vmem:[%s6126_s11 + $0xf54] ss:$8 sps:$4 sm:$0xff]  }
 0x1c3   : > { %4200 = vmatpush1.bf16.msra.mxu0 %v5774_v41  ;;  %v5858_v41 = vld [vmem:[%s6126_s11 + $0xe50] ss:$8 sps:$4 sm:$0xff]  }
 0x1c4   : > { %4243 = vmatpush1.bf16.msra.mxu1 %v5777_v42  ;;  %4201 = vmatprep.subr.bf16.mxu0 %v5782_v43  ;;  %v5861_v42 = vld [vmem:[%s6126_s11 + $0xf50] ss:$8 sps:$4 sm:$0xff]   ;;  %v5866_v43 = vld [vmem:[%s6126_s11 + $0xe44] ss:$8 sps:$4 sm:$0xff]  }
 0x1c5   : > { %4244 = vmatprep.subr.bf16.mxu1 %v5785_v44  ;;  %v5869_v44 = vld [vmem:[%s6126_s11 + $0xf44] ss:$8 sps:$4 sm:$0xff]  }
 0x1c7   : > { %4202 = vmatpush1.bf16.msra.mxu0 %v5780_v45  ;;  %v5864_v45 = vld [vmem:[%s6126_s11 + $0xe40] ss:$8 sps:$4 sm:$0xff]  }
 0x1c8   : > { %4245 = vmatpush1.bf16.msra.mxu1 %v5783_v46  ;;  %4203 = vmatprep.subr.bf16.mxu0 %v5788_v47  ;;  %v5867_v46 = vld [vmem:[%s6126_s11 + $0xf40] ss:$8 sps:$4 sm:$0xff]   ;;  %v5872_v47 = vld [vmem:[%s6126_s11 + $0xe34] ss:$8 sps:$4 sm:$0xff]  }
 0x1c9   : > { %4246 = vmatprep.subr.bf16.mxu1 %v5791_v48  ;;  %v5875_v48 = vld [vmem:[%s6126_s11 + $0xf34] ss:$8 sps:$4 sm:$0xff]  }
 0x1cb   : > { %4204 = vmatpush1.bf16.msra.mxu0 %v5786_v49  ;;  %v5870_v49 = vld [vmem:[%s6126_s11 + $0xe30] ss:$8 sps:$4 sm:$0xff]  }
 0x1cc   : > { %4247 = vmatpush1.bf16.msra.mxu1 %v5789_v50  ;;  %4205 = vmatprep.subr.bf16.mxu0 %v5794_v51  ;;  %v5873_v50 = vld [vmem:[%s6126_s11 + $0xf30] ss:$8 sps:$4 sm:$0xff]   ;;  %v5878_v51 = vld [vmem:[%s6126_s11 + $0xe24] ss:$8 sps:$4 sm:$0xff]  }
 0x1cd   : > { %4248 = vmatprep.subr.bf16.mxu1 %v5797_v52  ;;  %v5881_v52 = vld [vmem:[%s6126_s11 + $0xf24] ss:$8 sps:$4 sm:$0xff]  }
 0x1cf   : > { %4206 = vmatpush1.bf16.msra.mxu0 %v5792_v53  ;;  %v5876_v53 = vld [vmem:[%s6126_s11 + $0xe20] ss:$8 sps:$4 sm:$0xff]  }
 0x1d0   : > { %4249 = vmatpush1.bf16.msra.mxu1 %v5795_v54  ;;  %4207 = vmatprep.subr.bf16.mxu0 %v5800_v55  ;;  %v5879_v54 = vld [vmem:[%s6126_s11 + $0xf20] ss:$8 sps:$4 sm:$0xff]   ;;  %v5884_v55 = vld [vmem:[%s6126_s11 + $0xe14] ss:$8 sps:$4 sm:$0xff]  }
 0x1d1   : > { %4250 = vmatprep.subr.bf16.mxu1 %v5803_v56  ;;  %v5887_v56 = vld [vmem:[%s6126_s11 + $0xf14] ss:$8 sps:$4 sm:$0xff]  }
 0x1d3   : > { %4208 = vmatpush2.bf16.msra.mxu0 %v5798_v61  ;;  %v5882_v61 = vld [vmem:[%s6126_s11 + $0xe10] ss:$8 sps:$4 sm:$0xff]  }
 0x1d4   : > { %4251 = vmatpush2.bf16.msra.mxu1 %v5801_v62  ;;  %4209 = vmatprep.subr.bf16.mxu0 %v5806_v1  ;;  %v5885_v62 = vld [vmem:[%s6126_s11 + $0xf10] ss:$8 sps:$4 sm:$0xff]   ;;  %v5890_v1 = vld [vmem:[%s6126_s11 + $0xe04] ss:$8 sps:$4 sm:$0xff]  }
 0x1d5   : > { %4252 = vmatprep.subr.bf16.mxu1 %v5809_v2  ;;  %v5893_v2 = vld [vmem:[%s6126_s11 + $0xf04] ss:$8 sps:$4 sm:$0xff]  }
 0x1d7   : > { %4210 = vmatpush2.bf16.msra.mxu0 %v5804_v5  ;;  %v5888_v5 = vld [vmem:[%s6126_s11 + $0xe00] ss:$8 sps:$4 sm:$0xff]  }
 0x1d8   : > { %4253 = vmatpush2.bf16.msra.mxu1 %v5807_v6  ;;  %4211 = vmatprep.subr.bf16.mxu0 %v5812_v57  ;;  %v5891_v6 = vld [vmem:[%s6126_s11 + $0xf00] ss:$8 sps:$4 sm:$0xff]   ;;  %v5896_v57 = vld [vmem:[%s6126_s11 + $0xef4] ss:$8 sps:$4 sm:$0xff]  }
 0x1d9   : > { %4254 = vmatprep.subr.bf16.mxu1 %v5815_v58  ;;  %v5899_v58 = vld [vmem:[%s6126_s11 + $0xff4] ss:$8 sps:$4 sm:$0xff]  }
 0x1db   : > { %4212 = vmatpush2.bf16.msra.mxu0 %v5810_v59  ;;  %v5894_v59 = vld [vmem:[%s6126_s11 + $0xef0] ss:$8 sps:$4 sm:$0xff]  }
 0x1dc   : > { %4255 = vmatpush2.bf16.msra.mxu1 %v5813_v60  ;;  %4213 = vmatprep.subr.bf16.mxu0 %v5818_v9  ;;  %v5897_v60 = vld [vmem:[%s6126_s11 + $0xff0] ss:$8 sps:$4 sm:$0xff]   ;;  %v5902_v9 = vld [vmem:[%s6126_s11 + $0xee4] ss:$8 sps:$4 sm:$0xff]  }
 0x1dd   : > { %4256 = vmatprep.subr.bf16.mxu1 %v5821_v10  ;;  %v5905_v10 = vld [vmem:[%s6126_s11 + $0xfe4] ss:$8 sps:$4 sm:$0xff]  }
 0x1df   : > { %4214 = vmatpush2.bf16.msra.mxu0 %v5816_v13  ;;  %v5900_v13 = vld [vmem:[%s6126_s11 + $0xee0] ss:$8 sps:$4 sm:$0xff]  }
 0x1e0   : > { %4257 = vmatpush2.bf16.msra.mxu1 %v5819_v14  ;;  %4215 = vmatprep.subr.bf16.mxu0 %v5824_v63  ;;  %v5903_v14 = vld [vmem:[%s6126_s11 + $0xfe0] ss:$8 sps:$4 sm:$0xff]   ;;  %v5908_v63 = vld [vmem:[%s6126_s11 + $0xed4] ss:$8 sps:$4 sm:$0xff]  }
 0x1e1   : > { %4258 = vmatprep.subr.bf16.mxu1 %v5827_v0  ;;  %v5911_v0 = vld [vmem:[%s6126_s11 + $0xfd4] ss:$8 sps:$4 sm:$0xff]  }
 0x1e3   : > { %4216 = vmatpush2.bf16.msra.mxu0 %v5822_v4  ;;  %v5906_v4 = vld [vmem:[%s6126_s11 + $0xed0] ss:$8 sps:$4 sm:$0xff]  }
 0x1e4   : > { %4259 = vmatpush2.bf16.msra.mxu1 %v5825_v15  ;;  %4217 = vmatprep.subr.bf16.mxu0 %v5830_v16  ;;  %v5909_v15 = vld [vmem:[%s6126_s11 + $0xfd0] ss:$8 sps:$4 sm:$0xff]   ;;  %v5914_v16 = vld [vmem:[%s6126_s11 + $0xec4] ss:$8 sps:$4 sm:$0xff]  }
 0x1e5   : > { %4260 = vmatprep.subr.bf16.mxu1 %v5833_v20  ;;  %v5917_v20 = vld [vmem:[%s6126_s11 + $0xfc4] ss:$8 sps:$4 sm:$0xff]  }
 0x1e7   : > { %4218 = vmatpush2.bf16.msra.mxu0 %v5828_v21  ;;  %v5912_v21 = vld [vmem:[%s6126_s11 + $0xec0] ss:$8 sps:$4 sm:$0xff]  }
 0x1e8   : > { %4261 = vmatpush2.bf16.msra.mxu1 %v5831_v7  ;;  %4219 = vmatprep.subr.bf16.mxu0 %v5836_v8  ;;  %v5915_v7 = vld [vmem:[%s6126_s11 + $0xfc0] ss:$8 sps:$4 sm:$0xff]   ;;  %v5920_v8 = vld [vmem:[%s6126_s11 + $0xeb4] ss:$8 sps:$4 sm:$0xff]  }
 0x1e9   : > { %4262 = vmatprep.subr.bf16.mxu1 %v5839_v22  ;;  %v5923_v22 = vld [vmem:[%s6126_s11 + $0xfb4] ss:$8 sps:$4 sm:$0xff]  }
 0x1eb   : > { %4220 = vmatpush2.bf16.msra.mxu0 %v5834_v12  ;;  %v5918_v12 = vld [vmem:[%s6126_s11 + $0xeb0] ss:$8 sps:$4 sm:$0xff]  }
 0x1ec   : > { %4263 = vmatpush2.bf16.msra.mxu1 %v5837_v23  ;;  %4221 = vmatprep.subr.bf16.mxu0 %v5842_v27  ;;  %v5921_v23 = vld [vmem:[%s6126_s11 + $0xfb0] ss:$8 sps:$4 sm:$0xff]   ;;  %v5926_v27 = vld [vmem:[%s6126_s11 + $0xea4] ss:$8 sps:$4 sm:$0xff]  }
 0x1ed   : > { %4264 = vmatprep.subr.bf16.mxu1 %v5845_v28  ;;  %v5929_v28 = vld [vmem:[%s6126_s11 + $0xfa4] ss:$8 sps:$4 sm:$0xff]  }
 0x1ef   : > { %4222 = vmatpush2.bf16.msra.mxu0 %v5840_v3  ;;  %v5924_v3 = vld [vmem:[%s6126_s11 + $0xea0] ss:$8 sps:$4 sm:$0xff]  }
 0x1f0   : > { %4265 = vmatpush2.bf16.msra.mxu1 %v5843_v17  ;;  %4277 = vmatprep.subr.bf16.mxu0 %v5848_v18  ;;  %v5927_v17 = vld [vmem:[%s6126_s11 + $0xfa0] ss:$8 sps:$4 sm:$0xff]   ;;  %v5932_v18 = vld [vmem:[%s6126_s11 + $0xe94] ss:$8 sps:$4 sm:$0xff]  }
 0x1f1   : > { %4320 = vmatprep.subr.bf16.mxu1 %v5851_v19  ;;  %v5935_v19 = vld [vmem:[%s6126_s11 + $0xf94] ss:$8 sps:$4 sm:$0xff]  }
 0x1f2   : > { %4224 = vmatmul.mubr.bf16.vlgmr.msra.gmra.mxu0 %v4602_v30  ;;  %v5930_v30 = vld [vmem:[%s6126_s11 + $0xe90] ss:$8 sps:$4 sm:$0xff]  }
 0x1f3   : > { %4267 = vmatmul.mubr.bf16.vlgmr.msra.gmra.mxu1 %v4604_v31  ;;  %4278 = vmatpush1.bf16.msra.mxu0 %v5846_v35  ;;  %v5933_v31 = vld [vmem:[%s6126_s11 + $0xf90] ss:$8 sps:$4 sm:$0xff]   ;;  %v5938_v35 = vld [vmem:[%s6126_s11 + $0xe84] ss:$8 sps:$4 sm:$0xff]  }
 0x1f4   : > { %4321 = vmatpush1.bf16.msra.mxu1 %v5849_v36  ;;  %4279 = vmatprep.subr.bf16.mxu0 %v5854_v11  ;;  %v5941_v36 = vld [vmem:[%s6126_s11 + $0xf84] ss:$8 sps:$4 sm:$0xff]   ;;  %v5936_v11 = vld [vmem:[%s6126_s11 + $0xe80] ss:$8 sps:$4 sm:$0xff]  }
 0x1f5   : > { %4322 = vmatprep.subr.bf16.mxu1 %v5857_v24  ;;  %4309 = vmatprep.mubr.bf16.mxu0 %v4607_v25  ;;  %v5939_v24 = vld [vmem:[%s6126_s11 + $0xf80] ss:$8 sps:$4 sm:$0xff]   ;;  %v4606_v25 = vcombine.low %v6702_v29, %v6709_v32 }
 0x1f6   : > { %4352 = vmatprep.mubr.bf16.mxu1 %v4609_v26  ;;  %v4608_v26 = vcombine.low %v6712_v33, %v6715_v34 }
 0x1f7   : > { %4280 = vmatpush1.bf16.msra.mxu0 %v5852_v37  ;;  %v3709_v37 = vpop.f32.mrf.mxu0 }
 0x1f8   : > { %4323 = vmatpush1.bf16.msra.mxu1 %v5855_v38  ;;  %4281 = vmatprep.subr.bf16.mxu0 %v5860_v39  ;;  %v3752_v38 = vpop.f32.mrf.mxu1 }
 0x1f9   : > { %4324 = vmatprep.subr.bf16.mxu1 %v5863_v40  ;;  %v3711_v39 = vpop.f32.mrf.mxu0 }
 0x1fa   : > { %v3754_v40 = vpop.f32.mrf.mxu1 }
 0x1fb   : > { %4282 = vmatpush1.bf16.msra.mxu0 %v5858_v41  ;;  %v3713_v41 = vpop.f32.mrf.mxu0 }
 0x1fc   : > { %4325 = vmatpush1.bf16.msra.mxu1 %v5861_v42  ;;  %4283 = vmatprep.subr.bf16.mxu0 %v5866_v43  ;;  %v3756_v42 = vpop.f32.mrf.mxu1 }
 0x1fd   : > { %4326 = vmatprep.subr.bf16.mxu1 %v5869_v44  ;;  %v3715_v43 = vpop.f32.mrf.mxu0 }
 0x1fe   : > { %v3758_v44 = vpop.f32.mrf.mxu1 }
 0x1ff   : > { %4284 = vmatpush1.bf16.msra.mxu0 %v5864_v45  ;;  %v3795_v45 = vpop.f32.mrf.mxu0 }
 0x200   : > { %4327 = vmatpush1.bf16.msra.mxu1 %v5867_v46  ;;  %4285 = vmatprep.subr.bf16.mxu0 %v5872_v47  ;;  %v3838_v46 = vpop.f32.mrf.mxu1 }
 0x201   : > { %4328 = vmatprep.subr.bf16.mxu1 %v5875_v48  ;;  %v3797_v47 = vpop.f32.mrf.mxu0 }
 0x202   : > { %v3840_v48 = vpop.f32.mrf.mxu1 }
 0x203   : > { %4286 = vmatpush1.bf16.msra.mxu0 %v5870_v49  ;;  %v3799_v29 = vpop.f32.mrf.mxu0 }
 0x204   : > { %4329 = vmatpush1.bf16.msra.mxu1 %v5873_v50  ;;  %4287 = vmatprep.subr.bf16.mxu0 %v5878_v51  ;;  %v3842_v32 = vpop.f32.mrf.mxu1 }
 0x205   : > { %4330 = vmatprep.subr.bf16.mxu1 %v5881_v52  ;;  %v3801_v49 = vpop.f32.mrf.mxu0 }
 0x206   : > { %v3844_v33 = vpop.f32.mrf.mxu1 }
 0x207   : > { %4288 = vmatpush1.bf16.msra.mxu0 %v5876_v53  ;;  %v3881_v34 = vpop.f32.mrf.mxu0 }
 0x208   : > { %4331 = vmatpush1.bf16.msra.mxu1 %v5879_v54  ;;  %4289 = vmatprep.subr.bf16.mxu0 %v5884_v55  ;;  %v3924_v50 = vpop.f32.mrf.mxu1 }
 0x209   : > { %4332 = vmatprep.subr.bf16.mxu1 %v5887_v56  ;;  %v3883_v51 = vpop.f32.mrf.mxu0 }
 0x20a   : > { %v3926_v52 = vpop.f32.mrf.mxu1 }
 0x20b   : > { %4290 = vmatpush1.bf16.msra.mxu0 %v5882_v61  ;;  %v3885_v53 = vpop.f32.mrf.mxu0 }
 0x20c   : > { %4333 = vmatpush1.bf16.msra.mxu1 %v5885_v62  ;;  %4291 = vmatprep.subr.bf16.mxu0 %v5890_v1  ;;  %v3928_v54 = vpop.f32.mrf.mxu1 }
 0x20d   : > { %4334 = vmatprep.subr.bf16.mxu1 %v5893_v2  ;;  %v3887_v55 = vpop.f32.mrf.mxu0 }
 0x20e   : > { %v3930_v56 = vpop.f32.mrf.mxu1 }
 0x20f   : > { %4292 = vmatpush1.bf16.msra.mxu0 %v5888_v5  ;;  %v3967_v61 = vpop.f32.mrf.mxu0 }
 0x210   : > { %4335 = vmatpush1.bf16.msra.mxu1 %v5891_v6  ;;  %4293 = vmatprep.subr.bf16.mxu0 %v5896_v57  ;;  %v4010_v62 = vpop.f32.mrf.mxu1 }
 0x211   : > { %4336 = vmatprep.subr.bf16.mxu1 %v5899_v58  ;;  %v3969_v1 = vpop.f32.mrf.mxu0 }
 0x212   : > { %v4012_v2 = vpop.f32.mrf.mxu1 }
 0x213   : > { %4294 = vmatpush2.bf16.msra.mxu0 %v5894_v59  ;;  %v3971_v5 = vpop.f32.mrf.mxu0 }
 0x214   : > { %4337 = vmatpush2.bf16.msra.mxu1 %v5897_v60  ;;  %4295 = vmatprep.subr.bf16.mxu0 %v5902_v9  ;;  %v4014_v6 = vpop.f32.mrf.mxu1 }
 0x215   : > { %4338 = vmatprep.subr.bf16.mxu1 %v5905_v10  ;;  %v3973_v57 = vpop.f32.mrf.mxu0 }
 0x216   : > { %v4016_v58 = vpop.f32.mrf.mxu1 }
 0x217   : > { %4296 = vmatpush2.bf16.msra.mxu0 %v5900_v13  ;;  %v3753_v13 = vadd.f32 %v3752_v38, %v3709_v37 }
 0x218   : > { %4339 = vmatpush2.bf16.msra.mxu1 %v5903_v14  ;;  %4297 = vmatprep.subr.bf16.mxu0 %v5908_v63  ;;  %v3755_v14 = vadd.f32 %v3754_v40, %v3711_v39 }
 0x219   : > { %4340 = vmatprep.subr.bf16.mxu1 %v5911_v0  ;;  %v3796_v63 = vadd.f32 %v3795_v45, %v3753_v13 }
 0x21b   : > { %4298 = vmatpush2.bf16.msra.mxu0 %v5906_v4 }
 0x21c   : > { %4341 = vmatpush2.bf16.msra.mxu1 %v5909_v15  ;;  %4299 = vmatprep.subr.bf16.mxu0 %v5914_v16  ;;  %v3757_v15 = vadd.f32 %v3756_v42, %v3713_v41  ;;  %v3798_v16 = vadd.f32 %v3797_v47, %v3755_v14 }
 0x21d   : > { %4342 = vmatprep.subr.bf16.mxu1 %v5917_v20  ;;  %v3759_v20 = vadd.f32 %v3758_v44, %v3715_v43 }
 0x21f   : > { %4300 = vmatpush2.bf16.msra.mxu0 %v5912_v21  ;;  %v3839_v21 = vadd.f32 %v3838_v46, %v3796_v63 }
 0x220   : > { %4343 = vmatpush2.bf16.msra.mxu1 %v5915_v7  ;;  %4301 = vmatprep.subr.bf16.mxu0 %v5920_v8  ;;  %v3800_v7 = vadd.f32 %v3799_v29, %v3757_v15 }
 0x221   : > { %4344 = vmatprep.subr.bf16.mxu1 %v5923_v22 }
 0x223   : > { %4302 = vmatpush2.bf16.msra.mxu0 %v5918_v12  ;;  %v3841_v12 = vadd.f32 %v3840_v48, %v3798_v16 }
 0x224   : > { %4345 = vmatpush2.bf16.msra.mxu1 %v5921_v23  ;;  %4303 = vmatprep.subr.bf16.mxu0 %v5926_v27  ;;  %v3802_v23 = vadd.f32 %v3801_v49, %v3759_v20  ;;  %v3882_v27 = vadd.f32 %v3881_v34, %v3839_v21 }
 0x225   : > { %4346 = vmatprep.subr.bf16.mxu1 %v5929_v28 }
 0x227   : > { %4304 = vmatpush2.bf16.msra.mxu0 %v5924_v3 }
 0x228   : > { %4347 = vmatpush2.bf16.msra.mxu1 %v5927_v17  ;;  %4305 = vmatprep.subr.bf16.mxu0 %v5932_v18  ;;  %v3843_v17 = vadd.f32 %v3842_v32, %v3800_v7  ;;  %v3884_v18 = vadd.f32 %v3883_v51, %v3841_v12  ;;  %v407_v7 = vld [vmem:[#allocation2 + $0x10] sm:$0xff] }
 0x229   : > { %4348 = vmatprep.subr.bf16.mxu1 %v5935_v19  ;;  %v3845_v19 = vadd.f32 %v3844_v33, %v3802_v23 }
 0x22b   : > { %4306 = vmatpush2.bf16.msra.mxu0 %v5930_v30  ;;  %v3925_v30 = vadd.f32 %v3924_v50, %v3882_v27 }
 0x22c   : > { %4349 = vmatpush2.bf16.msra.mxu1 %v5933_v31  ;;  %4307 = vmatprep.subr.bf16.mxu0 %v5938_v35  ;;  %v3886_v31 = vadd.f32 %v3885_v53, %v3843_v17 }
 0x22d   : > { %4350 = vmatprep.subr.bf16.mxu1 %v5941_v36 }
 0x22f   : > { %4308 = vmatpush2.bf16.msra.mxu0 %v5936_v11  ;;  %v3927_v11 = vadd.f32 %v3926_v52, %v3884_v18 }
 0x230   : > { %4351 = vmatpush2.bf16.msra.mxu1 %v5939_v24  ;;  %v3888_v24 = vadd.f32 %v3887_v55, %v3845_v19 }
 0x231   : > { %v3970_v37 = vadd.f32 %v3969_v1, %v3927_v11 }
 0x232   : > { %4310 = vmatmul.mubr.bf16.vlgmr.msra.gmra.mxu0 %v4606_v25  ;;  %v4053_v59 = vpop.f32.mrf.mxu0  ;;  %v3968_v25 = vadd.f32 %v3967_v61, %v3925_v30  ;;  %v3931_v40 = vadd.f32 %v3930_v56, %v3888_v24 }
 0x233   : > { %4353 = vmatmul.mubr.bf16.vlgmr.msra.gmra.mxu1 %v4608_v26  ;;  %v4096_v60 = vpop.f32.mrf.mxu1  ;;  %v3929_v26 = vadd.f32 %v3928_v54, %v3886_v31  ;;  %v4013_v43 = vadd.f32 %v4012_v2, %v3970_v37 }
 0x234   : > { %v4055_v9 = vpop.f32.mrf.mxu0  ;;  %v4011_v41 = vadd.f32 %v4010_v62, %v3968_v25  ;;  %v3974_v44 = vadd.f32 %v3973_v57, %v3931_v40 }
 0x235   : > { %v4098_v10 = vpop.f32.mrf.mxu1  ;;  %v3972_v42 = vadd.f32 %v3971_v5, %v3929_v26  ;;  %v4056_v29 = vadd.f32 %v4055_v9, %v4013_v43  ;;  %v410_v26 = vld [vmem:[#allocation2 + $0x8] sm:$0xff] }
 0x236   : > { %v4057_v0 = vpop.f32.mrf.mxu0  ;;  %v4054_v45 = vadd.f32 %v4053_v59, %v4011_v41  ;;  %v4017_v33 = vadd.f32 %v4016_v58, %v3974_v44 }
 0x237   : > { %v4100_v4 = vpop.f32.mrf.mxu1  ;;  %v4015_v48 = vadd.f32 %v4014_v6, %v3972_v42  ;;  %v4099_v51 = vadd.f32 %v4098_v10, %v4056_v29 }
 0x238   : > { %v4059_v8 = vpop.f32.mrf.mxu0  ;;  %v4097_v34 = vadd.f32 %v4096_v60, %v4054_v45 }
 0x239   : > { %v4102_v22 = vpop.f32.mrf.mxu1  ;;  %v4058_v50 = vadd.f32 %v4057_v0, %v4015_v48  ;;  %v4060_v52 = vadd.f32 %v4059_v8, %v4017_v33 }
 0x23b   : > { %v4101_v56 = vadd.f32 %v4100_v4, %v4058_v50  ;;  %v4103_v62 = vadd.f32 %v4102_v22, %v4060_v52 }
 0x272   : > { %v4139_v28 = vpop.f32.mrf.mxu0 }
 0x273   : > { %v4182_v3 = vpop.f32.mrf.mxu1  ;;  %v4140_v53 = vadd.f32 %v4139_v28, %v4097_v34  ;;  %v408_v28 = vld [vmem:[#allocation2] sm:$0xff] }
 0x274   : > { %v4141_v35 = vpop.f32.mrf.mxu0 }
 0x275   : > { %v4184_v36 = vpop.f32.mrf.mxu1  ;;  %v4142_v61 = vadd.f32 %v4141_v35, %v4099_v51  ;;  %v4183_v1 = vadd.f32 %v4182_v3, %v4140_v53  ;;  %v409_v35 = vld [vmem:[#allocation2 + $0x18] sm:$0xff] }
 0x276   : > { %v4143_v38 = vpop.f32.mrf.mxu0 }
 0x277   : > { %v4186_v39 = vpop.f32.mrf.mxu1  ;;  %v4144_v2 = vadd.f32 %v4143_v38, %v4101_v56  ;;  %v4185_v59 = vadd.f32 %v4184_v36, %v4142_v61 }
 0x278   : > { %v4145_v46 = vpop.f32.mrf.mxu0 }
 0x279   : > { %v4188_v47 = vpop.f32.mrf.mxu1  ;;  %v4146_v6 = vadd.f32 %v4145_v46, %v4103_v62  ;;  %v4187_v13 = vadd.f32 %v4186_v39, %v4144_v2 }
 0x27b   : > { %v4189_v63 = vadd.f32 %v4188_v47, %v4146_v6 }
 0x2b2   : > { %v4225_v32 = vpop.f32.mrf.mxu0 }
 0x2b3   : > { %v4268_v49 = vpop.f32.mrf.mxu1  ;;  %v4226_v9 = vadd.f32 %v4225_v32, %v4183_v1 }
 0x2b4   : > { %v4227_v54 = vpop.f32.mrf.mxu0 }
 0x2b5   : > { %v4270_v55 = vpop.f32.mrf.mxu1  ;;  %v4228_v14 = vadd.f32 %v4227_v54, %v4185_v59  ;;  %v4269_v10 = vadd.f32 %v4268_v49, %v4226_v9 }
 0x2b6   : > { %v4229_v5 = vpop.f32.mrf.mxu0 }
 0x2b7   : > { %v4272_v57 = vpop.f32.mrf.mxu1  ;;  %v4230_v0 = vadd.f32 %v4229_v5, %v4187_v13  ;;  %v4271_v20 = vadd.f32 %v4270_v55, %v4228_v14 }
 0x2b8   : > { %v4231_v58 = vpop.f32.mrf.mxu0 }
 0x2b9   : > { %v4274_v60 = vpop.f32.mrf.mxu1  ;;  %v4232_v4 = vadd.f32 %v4231_v58, %v4189_v63  ;;  %v4273_v12 = vadd.f32 %v4272_v57, %v4230_v0 }
 0x2bb   : > { %v4275_v18 = vadd.f32 %v4274_v60, %v4232_v4 }
 0x2f2   : > { %v4311_v15 = vpop.f32.mrf.mxu0 }
 0x2f3   : > { %v4354_v16 = vpop.f32.mrf.mxu1  ;;  %v4312_v21 = vadd.f32 %v4311_v15, %v4269_v10 }
 0x2f4   : > { %v4313_v8 = vpop.f32.mrf.mxu0 }
 0x2f5   : > { %v4356_v22 = vpop.f32.mrf.mxu1  ;;  %v4355_v23 = vadd.f32 %v4354_v16, %v4312_v21  ;;  %v4314_v27 = vadd.f32 %v4313_v8, %v4271_v20 }
 0x2f6   : > { %v4315_v3 = vpop.f32.mrf.mxu0 }
 0x2f7   : > { %v4358_v17 = vpop.f32.mrf.mxu1  ;;  %v4363_v19 = vadd.f32 %v4355_v23, %v407_v7  ;;  %v4357_v30 = vadd.f32 %v4356_v22, %v4314_v27  ;;  %v4316_v31 = vadd.f32 %v4315_v3, %v4273_v12 }
 0x2f8   : > { %v4317_v36 = vpop.f32.mrf.mxu0 }
 0x2f9   : > { %4367 = vst [vmem:[#allocation2 + $0x10] sm:$0xff] %v4363_v19  ;;  %v4364_v11 = vadd.f32 %v4357_v30, %v408_v28  ;;  %v4359_v24 = vadd.f32 %v4358_v17, %v4316_v31  ;;  %v4318_v25 = vadd.f32 %v4317_v36, %v4275_v18  ;;  %v4360_v37 = vpop.f32.mrf.mxu1 }
 0x2fb   : > { %4368 = vst [vmem:[#allocation2] sm:$0xff] %v4364_v11  ;;  %v4365_v38 = vadd.f32 %v4359_v24, %v409_v35  ;;  %v4361_v39 = vadd.f32 %v4360_v37, %v4318_v25  ;;  %4374 = sbr.rel (%p5122_p11) target bundleno = 785 (0x311), region = 67 }
 0x2fd   : > { %4369 = vst [vmem:[#allocation2 + $0x18] sm:$0xff] %v4365_v38  ;;  %v4366_v40 = vadd.f32 %v4361_v39, %v410_v26 }
 0x2ff   : > { %4370 = vst [vmem:[#allocation2 + $0x8] sm:$0xff] %v4366_v40 }
 0x300   : > { %v4381_v41 = vlaneseq  ;;  %v4379_v43 = vld [vmem:[%s6817_s2] sm:$0x3] }
 0x301   : > { %v4395_v44 = vld [vmem:[%s6818_s3] sm:$0x3] }
 0x302   : > { %v4382_v42 = vshrl.u32 %v4381_v41, 7  ;;  %v4375_v45 = vld [vmem:[#allocation2 + $0x10] sm:$0xff]  ;;  %v4376_v48 = vld [vmem:[#allocation2] sm:$0xff] }
 0x304   : > { %v4383_v46 = vsub.s32 0, %v4382_v42  ;;  %v4387_v47 = vsub.s32 1, %v4382_v42  ;;  %v4377_v29 = vld [vmem:[#allocation2 + $0x18] sm:$0xff] }
 0x306   : > { %v4378_v32 = vld [vmem:[#allocation2 + $0x8] sm:$0xff]  ;;  %v4384_v49 = vrot.slane %v4379_v43, %v4383_v46  ;;  %v4388_v33 = vrot.slane %v4379_v43, %v4387_v47  ;;  %v4400_v34 = vrot.slane %v4395_v44, %v4383_v46  ;;  %v4404_v50 = vrot.slane %v4395_v44, %v4387_v47 }
 0x308   : > { %v4391_v51 = vmul.f32 %v4384_v49, %v4375_v45  ;;  %v4392_v52 = vmul.f32 %v4388_v33, %v4376_v48  ;;  %v4393_v53 = vmul.f32 %v4384_v49, %v4377_v29  ;;  %v4394_v54 = vmul.f32 %v4388_v33, %v4378_v32 }
 0x30a   : > { %v4407_v55 = vadd.f32 %v4400_v34, %v4391_v51  ;;  %v4408_v56 = vadd.f32 %v4404_v50, %v4392_v52  ;;  %v4409_v61 = vadd.f32 %v4400_v34, %v4393_v53  ;;  %v4410_v62 = vadd.f32 %v4404_v50, %v4394_v54 }
 0x30c   : > { %v4411_v1 = vmax.f32 %v4407_v55, 0.0  ;;  %v4412_v2 = vmax.f32 %v4408_v56, 0.0  ;;  %v4413_v5 = vmax.f32 %v4409_v61, 0.0  ;;  %v4414_v57 = vmax.f32 %v4410_v62, 0.0 }
 0x30e   : > { %v5131_v59 = vpack.c.bf16 %v4412_v2, %v4411_v1  ;;  %v5132_v6 = vpack.c.bf16 %v4414_v57, %v4413_v5 }
 0x310   : > { %4427 = vst [vmem:[%s6819_s4] sm:$0xff] %v5131_v59  ;;  %4428 = vst [vmem:[%s6819_s4 + $0x8] sm:$0xff] %v5132_v6 }
 0x311 PF: > { %s14_s19 = sadd.s32 1, %s5980_s19   ;;  %s6820_s15 = smov %s5968_s16 }
 0x312   : > { %p11_p12 = scmp.ge.s32.totalorder %s14_s19, 4   ;;  %s6821_s16 = smov %s6043_s23 }
 0x313   : > { %s6822_s17 = smov %s5976_s18  ;;  %s6823_s18 = smov %s6825_s20 }
 0x314   :  { %13 = sbr.rel (!%p11_p12) target bundleno = 3 (0x3), region = 111 }

</bundles_post_ra>
